<compile_context>
chip_gen: v7x
topology: tpu7x:2x2x1
jax: 0.10.0
libtpu: 0.0.40
codegen_flags: <defaults>
</compile_context>

<pallas_src>
import functools

import jax
import jax.numpy as jnp
from jax import lax
from jax.experimental import pallas as pl
from jax.experimental.pallas import tpu as pltpu

_NC_PAD = 128  # lane-dense slab width for the logits output


def _fused_resnet_cam_kernel(x_ref, w1_ref, b1_ref, w2_ref, b2_ref,
                             wl_ref, bl_ref, o_ref, *, H, W):
    """Fused conv3x3+ReLU -> conv3x3+ReLU -> global-avg-pool -> linear."""
    HW = H * W
    # Zero rows padded on both ends of the flattened [H*W, C] map; pad >= W+1
    # so every vertical tap that walks off the image reads zeros.
    pad = ((W + 1 + 7) // 8) * 8

    # Edge masks hoisted once per kernel invocation (shared by both convs):
    # column index of every output row, masks horizontal wrap of the flat map.
    col = lax.broadcasted_iota(jnp.int32, (HW, 1), 0) % W
    left_mask = col == 0            # oj = -1 taps read garbage in column 0
    right_mask = col == (W - 1)     # oj = +1 taps read garbage in column W-1
    zero_bf16 = jnp.bfloat16(0)

    def conv3x3_relu(x_bf16, w_ref_, b_ref_):
        # x_bf16: [HW, Cin] bf16 (cast hoisted out of the tap loop),
        #         row-major over (y, x).
        # w_ref_: [9*Cin, Cout] bf16, tap-major / cin-minor, tap = 3*kh + kw.
        # b_ref_: [1, Cout] f32.
        cin = x_bf16.shape[-1]
        zpad = jnp.zeros((pad, cin), jnp.bfloat16)
        xp = jnp.concatenate([zpad, x_bf16, zpad], axis=0)   # [HW + 2*pad, Cin]

        # Build the im2col slab [HW, 9*Cin]: 9 shifted (and edge-masked) views
        # concatenated along the lane axis, then ONE MXU matmul with K = 9*Cin
        # instead of nine K=Cin dots.
        views = []
        for oi in (-1, 0, 1):        # vertical tap offset (kh - 1)
            for oj in (-1, 0, 1):    # horizontal tap offset (kw - 1)
                start = pad + oi * W + oj
                xv = xp[start:start + HW, :]                 # shifted view
                if oj == -1:                                 # left edge wrap
                    xv = jnp.where(left_mask, zero_bf16, xv)
                elif oj == 1:                                # right edge wrap
                    xv = jnp.where(right_mask, zero_bf16, xv)
                views.append(xv)
        slab = jnp.concatenate(views, axis=-1)               # [HW, 9*Cin] bf16
        acc = jnp.dot(slab, w_ref_[...],
                      preferred_element_type=jnp.float32)    # [HW, Cout] f32
        # Bias + ReLU stay in f32 on the VPU (v5e has no bf16 VPU path).
        return jnp.maximum(acc + b_ref_[...], 0.0)

    # first_part_conv (layer_k = 1)
    x_bf16 = x_ref[0].astype(jnp.bfloat16)                   # cast once
    x1 = conv3x3_relu(x_bf16, w1_ref, b1_ref)                # [HW, Cmid] f32
    # TODO(synk): x.register_hook(activations_hook) (backward gradient capture
    # for Grad-CAM) has no forward-pass Pallas equivalent.

    # second_part_conv
    x2 = conv3x3_relu(x1.astype(jnp.bfloat16), w2_ref, b2_ref)  # [HW, Cout] f32

    # adaptive_avg_pool2d((1,1)) -> view(1,-1) -> linear.
    # Pool FIRST, and do it on the (otherwise idle) MXU: (ones/HW)[1,HW] @ x2
    # is a K=HW contraction with f32 accumulation.  Then a tiny
    # [1,Cout] @ [Cout,128] classifier matmul -- this avoids materializing a
    # [HW,128] scores slab (half the vreg file) and the wide XLU reduce.
    inv_hw = jnp.full((1, HW), 1.0 / HW, jnp.bfloat16)
    pooled = jnp.dot(inv_hw, x2.astype(jnp.bfloat16),
                     preferred_element_type=jnp.float32)     # [1, Cout] f32
    logits = jnp.dot(pooled.astype(jnp.bfloat16), wl_ref[...],
                     preferred_element_type=jnp.float32) + bl_ref[...]
    o_ref[0] = logits                                        # lane-dense [1,128]


def init_params(key, c_in=3, c_mid=8, c_out=16, num_classes=10):
    """Synthetic 2-stage 'ResNet' split at layer_k=1, plus the classifier.

    ALL packing is done once here (never per forward):
      * conv weights: PyTorch [Cout, Cin, 3, 3] -> [kh, kw, Cin, Cout]
        -> [9*Cin, Cout] (tap-major, cin-minor, matching the in-kernel im2col
        slab), cast to bf16 (MXU input dtype),
      * linear weight: transposed to [in_features, num_classes], padded to a
        128-lane slab, cast to bf16,
      * biases reshaped to [1, C] and kept f32 (bias/ReLU run on the VPU).
    """
    k1, k2, k3 = jax.random.split(key, 3)
    # Generate in PyTorch layout, then pack.
    w1_t = 0.1 * jax.random.normal(k1, (c_mid, c_in, 3, 3), jnp.float32)
    w2_t = 0.1 * jax.random.normal(k2, (c_out, c_mid, 3, 3), jnp.float32)
    wl_t = 0.1 * jax.random.normal(k3, (num_classes, c_out), jnp.float32)

    def pack_conv(w):
        co, ci, kh, kw = w.shape
        return (jnp.transpose(w, (2, 3, 1, 0))          # [kh, kw, Cin, Cout]
                .reshape(kh * kw * ci, co)              # [9*Cin, Cout]
                .astype(jnp.bfloat16))

    wl_pad = jnp.zeros((c_out, _NC_PAD), jnp.float32)
    wl_pad = wl_pad.at[:, :num_classes].set(wl_t.T)

    return {
        "w1": pack_conv(w1_t),
        "b1": jnp.zeros((1, c_mid), jnp.float32),
        "w2": pack_conv(w2_t),
        "b2": jnp.zeros((1, c_out), jnp.float32),
        "wl": wl_pad.astype(jnp.bfloat16),
        "bl": jnp.zeros((1, _NC_PAD), jnp.float32),
        "num_classes": num_classes,
    }


def resnet_cam_forward(params, x_nchw):
    """Forward of ResNet_CAM (layer_k = 1 split of a 2-stage conv stack)."""
    N, C, H, W = x_nchw.shape
    HW = H * W
    # NCHW -> NHWC -> flat [N, H*W, C]  (channels on the TPU lane axis).
    x_flat = jnp.transpose(x_nchw, (0, 2, 3, 1)).reshape(N, HW, C)

    num_classes = params["num_classes"]
    w1, b1 = params["w1"], params["b1"]
    w2, b2 = params["w2"], params["b2"]
    wl, bl = params["wl"], params["bl"]

    out_pad = pl.pallas_call(
        functools.partial(_fused_resnet_cam_kernel, H=H, W=W),
        out_shape=jax.ShapeDtypeStruct((N, 1, _NC_PAD), jnp.float32),
        grid=(N,),  # batch axis: shards across v7x's 2 TensorCores
        in_specs=[
            pl.BlockSpec((1, HW, C), lambda n: (n, 0, 0)),
            pl.BlockSpec(w1.shape, lambda n: (0, 0)),
            pl.BlockSpec(b1.shape, lambda n: (0, 0)),
            pl.BlockSpec(w2.shape, lambda n: (0, 0)),
            pl.BlockSpec(b2.shape, lambda n: (0, 0)),
            pl.BlockSpec(wl.shape, lambda n: (0, 0)),
            pl.BlockSpec(bl.shape, lambda n: (0, 0)),
        ],
        out_specs=pl.BlockSpec((1, 1, _NC_PAD), lambda n: (n, 0, 0)),
        compiler_params=pltpu.CompilerParams(
            dimension_semantics=("parallel",)),
    )(x_flat, w1, b1, w2, b2, wl, bl)
    return out_pad[:, 0, :num_classes]


if __name__ == "__main__":
    key = jax.random.PRNGKey(0)
    k_param, k_x = jax.random.split(key)

    params = init_params(k_param)

    # Batch=1: the reference forward does x.view((1,-1)) after pooling, which
    # implies a single image per call.  The kernel still has a parallel batch
    # grid axis so larger batches can light up v7x's second TensorCore.
    x = jax.random.normal(k_x, (1, 3, 16, 16), jnp.float32)

    out = resnet_cam_forward(params, x)
    out = jax.block_until_ready(out)
    assert out.shape == (1, 10)
    print("KERNEL_OK")
</pallas_src>

<mosaic_0001>
module attributes {stable_mosaic.version = 11 : i64} {
  func.func @_fused_resnet_cam_kernel(%arg0: i32, %arg1: memref<1x256x3xf32, #tpu.memory_space<vmem>>, %arg2: memref<27x8xbf16, #tpu.memory_space<vmem>>, %arg3: memref<1x8xf32, #tpu.memory_space<vmem>>, %arg4: memref<72x16xbf16, #tpu.memory_space<vmem>>, %arg5: memref<1x16xf32, #tpu.memory_space<vmem>>, %arg6: memref<16x128xbf16, #tpu.memory_space<vmem>>, %arg7: memref<1x128xf32, #tpu.memory_space<vmem>>, %arg8: memref<1x1x128xf32, #tpu.memory_space<vmem>>) attributes {dimension_semantics = [#tpu.dimension_semantics<parallel>], iteration_bounds = array<i64: 1>, scalar_prefetch = 0 : i64, scratch_operands = 0 : i64, tpu.core_type = #tpu.core_type<tc>, window_params = [{transform_indices = @transform_0, window_bounds = array<i64: 1, 256, 3>}, {pipeline_mode = #tpu.pipeline_mode<synchronous>, transform_indices = @transform_1, window_bounds = array<i64: 27, 8>}, {pipeline_mode = #tpu.pipeline_mode<synchronous>, transform_indices = @transform_2, window_bounds = array<i64: 1, 8>}, {pipeline_mode = #tpu.pipeline_mode<synchronous>, transform_indices = @transform_3, window_bounds = array<i64: 72, 16>}, {pipeline_mode = #tpu.pipeline_mode<synchronous>, transform_indices = @transform_4, window_bounds = array<i64: 1, 16>}, {pipeline_mode = #tpu.pipeline_mode<synchronous>, transform_indices = @transform_5, window_bounds = array<i64: 16, 128>}, {pipeline_mode = #tpu.pipeline_mode<synchronous>, transform_indices = @transform_6, window_bounds = array<i64: 1, 128>}, {transform_indices = @transform_7, window_bounds = array<i64: 1, 1, 128>}]} {
    %0 = tpu.iota {dimensions = array<i32: 0>} : vector<256x1xi32>
    %c16_i32 = arith.constant 16 : i32
    %c0_i32 = arith.constant 0 : i32
    %1 = arith.cmpi eq, %c16_i32, %c0_i32 : i32
    %c1_i32 = arith.constant 1 : i32
    %2 = arith.select %1, %c1_i32, %c16_i32 : i32
    %3 = vector.broadcast %2 : i32 to vector<256x1xi32>
    %4 = arith.remsi %0, %3 : vector<256x1xi32>
    %c0_i32_0 = arith.constant 0 : i32
    %5 = vector.broadcast %c0_i32_0 : i32 to vector<256x1xi32>
    %6 = arith.cmpi ne, %4, %5 : vector<256x1xi32>
    %c0_i32_1 = arith.constant 0 : i32
    %7 = vector.broadcast %c0_i32_1 : i32 to vector<256x1xi32>
    %8 = arith.cmpi slt, %4, %7 : vector<256x1xi32>
    %c0_i32_2 = arith.constant 0 : i32
    %9 = arith.cmpi slt, %2, %c0_i32_2 : i32
    %10 = vector.broadcast %9 : i1 to vector<256x1xi1>
    %11 = vector.broadcast %10 : vector<256x1xi1> to vector<256x1xi1>
    %12 = arith.xori %8, %11 : vector<256x1xi1>
    %13 = arith.andi %12, %6 : vector<256x1xi1>
    %14 = vector.broadcast %2 : i32 to vector<256x1xi32>
    %15 = arith.addi %4, %14 : vector<256x1xi32>
    %16 = arith.select %13, %15, %4 : vector<256x1xi1>, vector<256x1xi32>
    %c0_i32_3 = arith.constant 0 : i32
    %17 = vector.broadcast %c0_i32_3 : i32 to vector<256x1xi32>
    %18 = arith.cmpi eq, %16, %17 : vector<256x1xi32>
    %c15_i32 = arith.constant 15 : i32
    %19 = vector.broadcast %c15_i32 : i32 to vector<256x1xi32>
    %20 = arith.cmpi eq, %16, %19 : vector<256x1xi32>
    %c0 = arith.constant 0 : index
    %c0_4 = arith.constant 0 : index
    %c0_5 = arith.constant 0 : index
    %21 = vector.load %arg1[%c0, %c0_4, %c0_5] : memref<1x256x3xf32, #tpu.memory_space<vmem>>, vector<1x256x3xf32>
    %22 = vector.shape_cast %21 : vector<1x256x3xf32> to vector<256x3xf32>
    %23 = arith.truncf %22 : vector<256x3xf32> to vector<256x3xbf16>
    %cst = arith.constant 0.000000e+00 : bf16
    %24 = vector.broadcast %cst : bf16 to vector<24x3xbf16>
    %25 = tpu.concatenate %24, %23, %24 in 0 : vector<24x3xbf16>, vector<256x3xbf16>, vector<24x3xbf16> -> vector<304x3xbf16>
    %26 = vector.extract_strided_slice %25 {offsets = [7, 0], sizes = [256, 3], strides = [1, 1]} : vector<304x3xbf16> to vector<256x3xbf16>
    %cst_6 = arith.constant 0.000000e+00 : bf16
    %27 = vector.shape_cast %18 : vector<256x1xi1> to vector<256x1xi1>
    %28 = vector.broadcast %27 : vector<256x1xi1> to vector<256x3xi1>
    %29 = vector.broadcast %cst_6 : bf16 to vector<256x3xbf16>
    %30 = arith.select %28, %29, %26 : vector<256x3xi1>, vector<256x3xbf16>
    %31 = vector.extract_strided_slice %25 {offsets = [8, 0], sizes = [256, 3], strides = [1, 1]} : vector<304x3xbf16> to vector<256x3xbf16>
    %32 = vector.extract_strided_slice %25 {offsets = [9, 0], sizes = [256, 3], strides = [1, 1]} : vector<304x3xbf16> to vector<256x3xbf16>
    %cst_7 = arith.constant 0.000000e+00 : bf16
    %33 = vector.shape_cast %20 : vector<256x1xi1> to vector<256x1xi1>
    %34 = vector.broadcast %33 : vector<256x1xi1> to vector<256x3xi1>
    %35 = vector.broadcast %cst_7 : bf16 to vector<256x3xbf16>
    %36 = arith.select %34, %35, %32 : vector<256x3xi1>, vector<256x3xbf16>
    %37 = vector.extract_strided_slice %25 {offsets = [23, 0], sizes = [256, 3], strides = [1, 1]} : vector<304x3xbf16> to vector<256x3xbf16>
    %cst_8 = arith.constant 0.000000e+00 : bf16
    %38 = vector.shape_cast %18 : vector<256x1xi1> to vector<256x1xi1>
    %39 = vector.broadcast %38 : vector<256x1xi1> to vector<256x3xi1>
    %40 = vector.broadcast %cst_8 : bf16 to vector<256x3xbf16>
    %41 = arith.select %39, %40, %37 : vector<256x3xi1>, vector<256x3xbf16>
    %42 = vector.extract_strided_slice %25 {offsets = [24, 0], sizes = [256, 3], strides = [1, 1]} : vector<304x3xbf16> to vector<256x3xbf16>
    %43 = vector.extract_strided_slice %25 {offsets = [25, 0], sizes = [256, 3], strides = [1, 1]} : vector<304x3xbf16> to vector<256x3xbf16>
    %cst_9 = arith.constant 0.000000e+00 : bf16
    %44 = vector.shape_cast %20 : vector<256x1xi1> to vector<256x1xi1>
    %45 = vector.broadcast %44 : vector<256x1xi1> to vector<256x3xi1>
    %46 = vector.broadcast %cst_9 : bf16 to vector<256x3xbf16>
    %47 = arith.select %45, %46, %43 : vector<256x3xi1>, vector<256x3xbf16>
    %48 = vector.extract_strided_slice %25 {offsets = [39, 0], sizes = [256, 3], strides = [1, 1]} : vector<304x3xbf16> to vector<256x3xbf16>
    %cst_10 = arith.constant 0.000000e+00 : bf16
    %49 = vector.shape_cast %18 : vector<256x1xi1> to vector<256x1xi1>
    %50 = vector.broadcast %49 : vector<256x1xi1> to vector<256x3xi1>
    %51 = vector.broadcast %cst_10 : bf16 to vector<256x3xbf16>
    %52 = arith.select %50, %51, %48 : vector<256x3xi1>, vector<256x3xbf16>
    %53 = vector.extract_strided_slice %25 {offsets = [40, 0], sizes = [256, 3], strides = [1, 1]} : vector<304x3xbf16> to vector<256x3xbf16>
    %54 = vector.extract_strided_slice %25 {offsets = [41, 0], sizes = [256, 3], strides = [1, 1]} : vector<304x3xbf16> to vector<256x3xbf16>
    %cst_11 = arith.constant 0.000000e+00 : bf16
    %55 = vector.shape_cast %20 : vector<256x1xi1> to vector<256x1xi1>
    %56 = vector.broadcast %55 : vector<256x1xi1> to vector<256x3xi1>
    %57 = vector.broadcast %cst_11 : bf16 to vector<256x3xbf16>
    %58 = arith.select %56, %57, %54 : vector<256x3xi1>, vector<256x3xbf16>
    %59 = tpu.concatenate %30, %31, %36, %41, %42, %47, %52, %53, %58 in 1 : vector<256x3xbf16>, vector<256x3xbf16>, vector<256x3xbf16>, vector<256x3xbf16>, vector<256x3xbf16>, vector<256x3xbf16>, vector<256x3xbf16>, vector<256x3xbf16>, vector<256x3xbf16> -> vector<256x27xbf16>
    %c0_12 = arith.constant 0 : index
    %c0_13 = arith.constant 0 : index
    %60 = vector.load %arg2[%c0_12, %c0_13] : memref<27x8xbf16, #tpu.memory_space<vmem>>, vector<27x8xbf16>
    %cst_14 = arith.constant dense<0.000000e+00> : vector<256x8xf32>
    %61 = tpu.matmul %59, %60, %cst_14 {dimension_numbers = #tpu.dot_dimension_numbers<[1], [0], [0], [1], [0, 0, 1, 1], [], []>} : vector<256x27xbf16>, vector<27x8xbf16>, vector<256x8xf32> -> vector<256x8xf32>
    %c0_15 = arith.constant 0 : index
    %c0_16 = arith.constant 0 : index
    %62 = vector.load %arg3[%c0_15, %c0_16] : memref<1x8xf32, #tpu.memory_space<vmem>>, vector<1x8xf32>
    %63 = vector.broadcast %62 : vector<1x8xf32> to vector<256x8xf32>
    %64 = arith.addf %61, %63 : vector<256x8xf32>
    %cst_17 = arith.constant 0.000000e+00 : f32
    %65 = vector.broadcast %cst_17 : f32 to vector<256x8xf32>
    %66 = arith.maximumf %64, %65 : vector<256x8xf32>
    %67 = arith.truncf %66 : vector<256x8xf32> to vector<256x8xbf16>
    %cst_18 = arith.constant 0.000000e+00 : bf16
    %68 = vector.broadcast %cst_18 : bf16 to vector<24x8xbf16>
    %69 = tpu.concatenate %68, %67, %68 in 0 : vector<24x8xbf16>, vector<256x8xbf16>, vector<24x8xbf16> -> vector<304x8xbf16>
    %70 = vector.extract_strided_slice %69 {offsets = [7, 0], sizes = [256, 8], strides = [1, 1]} : vector<304x8xbf16> to vector<256x8xbf16>
    %cst_19 = arith.constant 0.000000e+00 : bf16
    %71 = vector.shape_cast %18 : vector<256x1xi1> to vector<256x1xi1>
    %72 = vector.broadcast %71 : vector<256x1xi1> to vector<256x8xi1>
    %73 = vector.broadcast %cst_19 : bf16 to vector<256x8xbf16>
    %74 = arith.select %72, %73, %70 : vector<256x8xi1>, vector<256x8xbf16>
    %75 = vector.extract_strided_slice %69 {offsets = [8, 0], sizes = [256, 8], strides = [1, 1]} : vector<304x8xbf16> to vector<256x8xbf16>
    %76 = vector.extract_strided_slice %69 {offsets = [9, 0], sizes = [256, 8], strides = [1, 1]} : vector<304x8xbf16> to vector<256x8xbf16>
    %cst_20 = arith.constant 0.000000e+00 : bf16
    %77 = vector.shape_cast %20 : vector<256x1xi1> to vector<256x1xi1>
    %78 = vector.broadcast %77 : vector<256x1xi1> to vector<256x8xi1>
    %79 = vector.broadcast %cst_20 : bf16 to vector<256x8xbf16>
    %80 = arith.select %78, %79, %76 : vector<256x8xi1>, vector<256x8xbf16>
    %81 = vector.extract_strided_slice %69 {offsets = [23, 0], sizes = [256, 8], strides = [1, 1]} : vector<304x8xbf16> to vector<256x8xbf16>
    %cst_21 = arith.constant 0.000000e+00 : bf16
    %82 = vector.shape_cast %18 : vector<256x1xi1> to vector<256x1xi1>
    %83 = vector.broadcast %82 : vector<256x1xi1> to vector<256x8xi1>
    %84 = vector.broadcast %cst_21 : bf16 to vector<256x8xbf16>
    %85 = arith.select %83, %84, %81 : vector<256x8xi1>, vector<256x8xbf16>
    %86 = vector.extract_strided_slice %69 {offsets = [24, 0], sizes = [256, 8], strides = [1, 1]} : vector<304x8xbf16> to vector<256x8xbf16>
    %87 = vector.extract_strided_slice %69 {offsets = [25, 0], sizes = [256, 8], strides = [1, 1]} : vector<304x8xbf16> to vector<256x8xbf16>
    %cst_22 = arith.constant 0.000000e+00 : bf16
    %88 = vector.shape_cast %20 : vector<256x1xi1> to vector<256x1xi1>
    %89 = vector.broadcast %88 : vector<256x1xi1> to vector<256x8xi1>
    %90 = vector.broadcast %cst_22 : bf16 to vector<256x8xbf16>
    %91 = arith.select %89, %90, %87 : vector<256x8xi1>, vector<256x8xbf16>
    %92 = vector.extract_strided_slice %69 {offsets = [39, 0], sizes = [256, 8], strides = [1, 1]} : vector<304x8xbf16> to vector<256x8xbf16>
    %cst_23 = arith.constant 0.000000e+00 : bf16
    %93 = vector.shape_cast %18 : vector<256x1xi1> to vector<256x1xi1>
    %94 = vector.broadcast %93 : vector<256x1xi1> to vector<256x8xi1>
    %95 = vector.broadcast %cst_23 : bf16 to vector<256x8xbf16>
    %96 = arith.select %94, %95, %92 : vector<256x8xi1>, vector<256x8xbf16>
    %97 = vector.extract_strided_slice %69 {offsets = [40, 0], sizes = [256, 8], strides = [1, 1]} : vector<304x8xbf16> to vector<256x8xbf16>
    %98 = vector.extract_strided_slice %69 {offsets = [41, 0], sizes = [256, 8], strides = [1, 1]} : vector<304x8xbf16> to vector<256x8xbf16>
    %cst_24 = arith.constant 0.000000e+00 : bf16
    %99 = vector.shape_cast %20 : vector<256x1xi1> to vector<256x1xi1>
    %100 = vector.broadcast %99 : vector<256x1xi1> to vector<256x8xi1>
    %101 = vector.broadcast %cst_24 : bf16 to vector<256x8xbf16>
    %102 = arith.select %100, %101, %98 : vector<256x8xi1>, vector<256x8xbf16>
    %103 = tpu.concatenate %74, %75, %80, %85, %86, %91, %96, %97, %102 in 1 : vector<256x8xbf16>, vector<256x8xbf16>, vector<256x8xbf16>, vector<256x8xbf16>, vector<256x8xbf16>, vector<256x8xbf16>, vector<256x8xbf16>, vector<256x8xbf16>, vector<256x8xbf16> -> vector<256x72xbf16>
    %c0_25 = arith.constant 0 : index
    %c0_26 = arith.constant 0 : index
    %104 = vector.load %arg4[%c0_25, %c0_26] : memref<72x16xbf16, #tpu.memory_space<vmem>>, vector<72x16xbf16>
    %cst_27 = arith.constant dense<0.000000e+00> : vector<256x16xf32>
    %105 = tpu.matmul %103, %104, %cst_27 {dimension_numbers = #tpu.dot_dimension_numbers<[1], [0], [0], [1], [0, 0, 1, 1], [], []>} : vector<256x72xbf16>, vector<72x16xbf16>, vector<256x16xf32> -> vector<256x16xf32>
    %c0_28 = arith.constant 0 : index
    %c0_29 = arith.constant 0 : index
    %106 = vector.load %arg5[%c0_28, %c0_29] : memref<1x16xf32, #tpu.memory_space<vmem>>, vector<1x16xf32>
    %107 = vector.broadcast %106 : vector<1x16xf32> to vector<256x16xf32>
    %108 = arith.addf %105, %107 : vector<256x16xf32>
    %cst_30 = arith.constant 0.000000e+00 : f32
    %109 = vector.broadcast %cst_30 : f32 to vector<256x16xf32>
    %110 = arith.maximumf %108, %109 : vector<256x16xf32>
    %cst_31 = arith.constant 3.906250e-03 : bf16
    %111 = vector.broadcast %cst_31 : bf16 to vector<1x256xbf16>
    %112 = arith.truncf %110 : vector<256x16xf32> to vector<256x16xbf16>
    %cst_32 = arith.constant dense<0.000000e+00> : vector<1x16xf32>
    %113 = tpu.matmul %111, %112, %cst_32 {dimension_numbers = #tpu.dot_dimension_numbers<[1], [0], [0], [1], [0, 0, 1, 1], [], []>} : vector<1x256xbf16>, vector<256x16xbf16>, vector<1x16xf32> -> vector<1x16xf32>
    %114 = arith.truncf %113 : vector<1x16xf32> to vector<1x16xbf16>
    %c0_33 = arith.constant 0 : index
    %c0_34 = arith.constant 0 : index
    %115 = vector.load %arg6[%c0_33, %c0_34] : memref<16x128xbf16, #tpu.memory_space<vmem>>, vector<16x128xbf16>
    %cst_35 = arith.constant dense<0.000000e+00> : vector<1x128xf32>
    %116 = tpu.matmul %114, %115, %cst_35 {dimension_numbers = #tpu.dot_dimension_numbers<[1], [0], [0], [1], [0, 0, 1, 1], [], []>} : vector<1x16xbf16>, vector<16x128xbf16>, vector<1x128xf32> -> vector<1x128xf32>
    %c0_36 = arith.constant 0 : index
    %c0_37 = arith.constant 0 : index
    %117 = vector.load %arg7[%c0_36, %c0_37] : memref<1x128xf32, #tpu.memory_space<vmem>>, vector<1x128xf32>
    %118 = arith.addf %116, %117 : vector<1x128xf32>
    %c0_38 = arith.constant 0 : index
    %c0_39 = arith.constant 0 : index
    %c0_40 = arith.constant 0 : index
    %119 = vector.load %arg8[%c0_38, %c0_39, %c0_40] : memref<1x1x128xf32, #tpu.memory_space<vmem>>, vector<1x1x128xf32>
    %120 = vector.shape_cast %119 : vector<1x1x128xf32> to vector<1x128xf32>
    %121 = vector.shape_cast %118 : vector<1x128xf32> to vector<1x1x128xf32>
    tpu.vector_store %arg8[%c0_38, %c0_39, %c0_40], %121 {strides = array<i32>} : memref<1x1x128xf32, #tpu.memory_space<vmem>>, vector<1x1x128xf32>,
    return
  }
  func.func @transform_0(%arg0: i32) -> (i32, i32, i32) {
    %c0_i32 = arith.constant 0 : i32
    %c0_i32_0 = arith.constant 0 : i32
    %c0_i32_1 = arith.constant 0 : i32
    return %arg0, %c0_i32, %c0_i32_0 : i32, i32, i32
  }
  func.func @transform_1(%arg0: i32) -> (i32, i32) {
    %c0_i32 = arith.constant 0 : i32
    %c0_i32_0 = arith.constant 0 : i32
    %c0_i32_1 = arith.constant 0 : i32
    return %c0_i32, %c0_i32_0 : i32, i32
  }
  func.func @transform_2(%arg0: i32) -> (i32, i32) {
    %c0_i32 = arith.constant 0 : i32
    %c0_i32_0 = arith.constant 0 : i32
    %c0_i32_1 = arith.constant 0 : i32
    return %c0_i32, %c0_i32_0 : i32, i32
  }
  func.func @transform_3(%arg0: i32) -> (i32, i32) {
    %c0_i32 = arith.constant 0 : i32
    %c0_i32_0 = arith.constant 0 : i32
    %c0_i32_1 = arith.constant 0 : i32
    return %c0_i32, %c0_i32_0 : i32, i32
  }
  func.func @transform_4(%arg0: i32) -> (i32, i32) {
    %c0_i32 = arith.constant 0 : i32
    %c0_i32_0 = arith.constant 0 : i32
    %c0_i32_1 = arith.constant 0 : i32
    return %c0_i32, %c0_i32_0 : i32, i32
  }
  func.func @transform_5(%arg0: i32) -> (i32, i32) {
    %c0_i32 = arith.constant 0 : i32
    %c0_i32_0 = arith.constant 0 : i32
    %c0_i32_1 = arith.constant 0 : i32
    return %c0_i32, %c0_i32_0 : i32, i32
  }
  func.func @transform_6(%arg0: i32) -> (i32, i32) {
    %c0_i32 = arith.constant 0 : i32
    %c0_i32_0 = arith.constant 0 : i32
    %c0_i32_1 = arith.constant 0 : i32
    return %c0_i32, %c0_i32_0 : i32, i32
  }
  func.func @transform_7(%arg0: i32) -> (i32, i32, i32) {
    %c0_i32 = arith.constant 0 : i32
    %c0_i32_0 = arith.constant 0 : i32
    %c0_i32_1 = arith.constant 0 : i32
    return %arg0, %c0_i32, %c0_i32_0 : i32, i32, i32
  }
}

</mosaic_0001>

<bundles_post_ra>
// kernel: tpu_custom_call.1
= control target key start
LH: loop header
LB: loop body
LE: loop exit
PB: predicated region body
PF: predicated region fallthrough
CT: control target
= control target key end

     0   :  { %v31_v3 = vlaneseq  ;;  %vm7756_vm0 = vcmask 1043456   ;;  %vm7729_vm1 = vsmask.f32 7424  ;;  %v7687_v14 = vmov 0   ;;  %s4590_s17 = smov 3   ;;  %s4591_s18 = smov 12   ;;  %s7663_s0 = inlined_call_operand.vmem [shape: f32[1,256,3], index: 0, kind: input, shape index: {}]   ;;  %s7664_s1 = inlined_call_operand.vmem [shape: bf16[27,8], index: 1, kind: input, shape index: {}]   ;;  %s7665_s2 = inlined_call_operand.vmem [shape: f32[1,8], index: 2, kind: input, shape index: {}]   ;;  %s7666_s3 = inlined_call_operand.vmem [shape: bf16[72,16], index: 3, kind: input, shape index: {}]   ;;  %s7667_s4 = inlined_call_operand.vmem [shape: f32[1,16], index: 4, kind: input, shape index: {}]   ;;  %s7668_s5 = inlined_call_operand.vmem [shape: bf16[16,128], index: 5, kind: input, shape index: {}]   ;;  %s7669_s6 = inlined_call_operand.vmem [shape: f32[1,128], index: 6, kind: input, shape index: {}]   ;;  %s7670_s7 = inlined_call_operand.hbm [shape: f32[1,1,128], index: 7, kind: output, shape index: {}]  }
   0x1   :  { %v512_v0 = vld [vmem:[%s7663_s0] sm:$0xff]  ;;  %v513_v1 = vld [vmem:[%s7663_s0 + $0x8] sm:$0xff]  ;;  %v514_v2 = vld [vmem:[%s7663_s0 + $0x10] sm:$0xff]  ;;  %v4676_v15 = vrot.slane %v7687_v14, 1  ;;  %vm7671_vm2 = vmmov 0   ;;  %s4592_s19 = smov 9  }
   0x2   :  { %v515_v4 = vld [vmem:[%s7663_s0 + $0x18] sm:$0xff]  ;;  %v544_v5 = vpack.c.bf16 %v513_v1, %v512_v0  ;;  %v516_v6 = vld [vmem:[%s7663_s0 + $0x20] sm:$0xff]  ;;  %v517_v7 = vld [vmem:[%s7663_s0 + $0x28] sm:$0xff]  ;;  %v4673_v12 = vshrl.u32 %v31_v3, 7  ;;  %vm7672_vm8 = vsmask.f32 3328 }
   0x3   :  { %v545_v8 = vpack.c.bf16 %v515_v4, %v514_v2  ;;  %v546_v9 = vpack.c.bf16 %v517_v7, %v516_v6  ;;  %v518_v10 = vld [vmem:[%s7663_s0 + $0x30] sm:$0xff]  ;;  %v519_v11 = vld [vmem:[%s7663_s0 + $0x38] sm:$0xff]  ;;  %7781 = vst [vmem:[#allocation5_spill] sm:$0xff] %v4676_v15  ;;  %vm696_vm3 = vmpackc.low %vm7671_vm2, %vm7671_vm2  ;;  %vm7727_vm15 = vsmask.f32 4352 }
   0x4   :  { %v577_v13 = vrot.slane %v544_v5, 4  ;;  %v547_v16 = vpack.c.bf16 %v519_v11, %v518_v10  ;;  %v68_v19 = vand.u32 15, %v4673_v12  ;;  %v4682_v20 = vsel %vm696_vm3, 65537, %v7687_v14 }
   0x5   :  { %v578_v17 = vrot.slane %v545_v8, 4  ;;  %v580_v18 = vrot.slane %v546_v9, 4  ;;  %v34_v23 = vadd.s32 16, %v4673_v12  ;;  %v36_v24 = vadd.s32 32, %v4673_v12 }
   0x6   :  { %v4685_v21 = vsel %vm7756_vm0, 0, %v577_v13  ;;  %v4687_v22 = vrot.slane %v547_v16, 4  ;;  %vm448_vm4 = vcmp.eq.s32.totalorder %v68_v19, 0  ;;  %v33_v48 = vadd.s32 8, %v4673_v12 }
   0x7   :  { %v1410_v25 = vshll.u32 %v4685_v21, 16  ;;  %v4693_v26 = vsel %vm7756_vm0, %v577_v13, %v578_v17  ;;  %v4696_v27 = vsel %vm7756_vm0, %v578_v17, %v580_v18  ;;  %v1414_v28 = vshrl.u32 %v4685_v21, 16  ;;  %vm695_vm5 = vmpackc.low %vm448_vm4, %vm448_vm4 }
   0x8   :  { %v1418_v29 = vshll.u32 %v4693_v26, 16  ;;  %v1422_v30 = vshrl.u32 %v4693_v26, 16  ;;  %v1426_v31 = vshll.u32 %v4696_v27, 16  ;;  %v4704_v32 = vsel %vm7756_vm0, %v580_v18, %v4687_v22 }
   0x9   :  { %v1412_v33 = vrot.slane %v1410_v25, 1  ;;  %v1430_v34 = vshrl.u32 %v4696_v27, 16  ;;  %v1434_v35 = vshll.u32 %v4704_v32, 16  ;;  %v82_v38 = vand.u32 15, %v34_v23 }
   0xa   :  { %v1420_v36 = vrot.slane %v1418_v29, 1  ;;  %v1428_v37 = vrot.slane %v1426_v31, 1  ;;  %v96_v39 = vand.u32 15, %v36_v24  ;;  %v727_v43 = vsel %vm695_vm5, 65537, %v7687_v14 }
   0xb   :  { %v1413_v40 = vsel %vm7729_vm1, %v4676_v15, %v1412_v33  ;;  %v1416_v41 = vor.u32 %v1414_v28, %v1412_v33  ;;  %v4710_v42 = vrot.slane %v1434_v35, 1  ;;  %v4311_v46 = vcombine.low %v727_v43, %v4682_v20 }
   0xc   :  { %1537 = vrot.lane.b32.xlu0 %v1413_v40, %s4590_s17  ;;  %v1424_v44 = vor.u32 %v1422_v30, %v1420_v36  ;;  %v1432_v45 = vor.u32 %v1430_v34, %v1428_v37  ;;  %vm450_vm6 = vcmp.eq.s32.totalorder %v82_v38, 0  ;;  %vm452_vm9 = vcmp.eq.s32.totalorder %v96_v39, 0 }
   0xd   :  { %v1421_v47 = vsel %vm7729_vm1, %v1416_v41, %v1420_v36  ;;  %vm697_vm7 = vmpackc.low %vm450_vm6, %vm450_vm6  ;;  %v35_v49 = vadd.s32 24, %v4673_v12  ;;  %v809_v51 = vshrl.u32 %v4311_v46, 16  ;;  %v812_v52 = vshll.u32 %v4311_v46, 16 }
   0xe   :  { %v4719_v50 = vsel %vm7729_vm1, %v1424_v44, %v1428_v37  ;;  %vm699_vm10 = vmpackc.low %vm452_vm9, %vm452_vm9  ;;  %v729_v53 = vsel %vm697_vm7, 65537, %v7687_v14  ;;  %v75_v55 = vand.u32 15, %v33_v48  ;;  %v4730_v61 = vsel %vm7729_vm1, %v1432_v45, %v4710_v42 }
   0xf   :  { %1541 = vrot.lane.b32.xlu1 %v4719_v50, %s4590_s17  ;;  %v731_v54 = vsel %vm699_vm10, 65537, %v7687_v14  ;;  %v89_v56 = vand.u32 15, %v35_v49  ;;  %v811_v57 = vrot.slane %v809_v51, 4  ;;  %v814_v58 = vrot.slane %v812_v52, 5 }
  0x10   :  { %1539 = vrot.lane.b32.xlu0 %v1421_v47, %s4590_s17  ;;  %v4312_v59 = vcombine.low %v729_v53, %v4682_v20  ;;  %v4313_v60 = vcombine.low %v731_v54, %v4682_v20  ;;  %vm481_vm11 = vcmp.eq.s32.totalorder %v75_v55, 15  ;;  %v37_v63 = vadd.s32 40, %v4673_v12 }
  0x11   :  { %vm4732_vm12 = vcmp.eq.s32.totalorder %v89_v56, 15  ;;  %v4737_v0 = vor.u32 %v814_v58, %v811_v57  ;;  %vm1048_vm13 = vmpackc.low %vm481_vm11, %vm481_vm11  ;;  %v39_v7 = vadd.s32 56, %v4673_v12 }
  0x12   :  { %v817_v1 = vshrl.u32 %v4312_v59, 16  ;;  %v820_v2 = vshll.u32 %v4312_v59, 16  ;;  %v826_v3 = vshrl.u32 %v4313_v60, 16  ;;  %v829_v4 = vshll.u32 %v4313_v60, 16  ;;  %vm1050_vm14 = vmpackc.low %vm4732_vm12, %vm4732_vm12 }
  0x13   :  { %7784 = vst [vmem:[#allocation6_spill] sm:$0xff] %v4737_v0  ;;  %1714 = vrot.lane.b32.xlu1 %v1421_v47, %s4591_s18  ;;  %v1080_v5 = vsel %vm1048_vm13, 65537, %v7687_v14  ;;  %v103_v6 = vand.u32 15, %v37_v63  ;;  %vm7681_vm3 = vcmp.ne.s16.totalorder %v4737_v0, 0  ;;  %v1082_v16 = vsel %vm1050_vm14, 65537, %v7687_v14 }
  0x14   :  { %1716 = vrot.lane.b32.xlu0 %v4719_v50, %s4591_s18  ;;  %v819_v8 = vrot.slane %v817_v1, 4  ;;  %v822_v9 = vrot.slane %v820_v2, 5  ;;  %v828_v10 = vrot.slane %v826_v3, 4  ;;  %v1336_v11 = vsel %vm7681_vm3, 0, %v4685_v21 }
  0x15   :  { %v831_v13 = vrot.slane %v829_v4, 5  ;;  %v4327_v17 = vcombine.low %v4682_v20, %v1080_v5  ;;  %v4328_v19 = vcombine.low %v4682_v20, %v1082_v16  ;;  %vm485_vm4 = vcmp.eq.s32.totalorder %v103_v6, 15 }
  0x16   :  { %v823_v18 = vor.u32 %v822_v9, %v819_v8  ;;  %vm1052_vm5 = vmpackc.low %vm485_vm4, %vm485_vm4  ;;  %v117_v28 = vand.u32 15, %v39_v7 }
  0x17   :  { %1718 = vrot.lane.b32.xlu1 %v4730_v61, %s4591_s18  ;;  %v4756_v23 = vor.u32 %v831_v13, %v828_v10  ;;  %v1161_v24 = vshrl.u32 %v4327_v17, 16  ;;  %v1164_v25 = vshll.u32 %v4327_v17, 16  ;;  %v1169_v30 = vshrl.u32 %v4328_v19, 16 }
  0x18   :  { %1673 = vrot.lane.b32.xlu0 %v1336_v11, %s4592_s19  ;;  %v4761_v29 = vsel %vm7672_vm8, %v4737_v0, %v823_v18  ;;  %v1172_v31 = vshll.u32 %v4328_v19, 16  ;;  %v1084_v33 = vsel %vm1052_vm5, 65537, %v7687_v14 }
  0x19   :  { %7785 = vst [vmem:[#allocation7_spill] sm:$0xff] %v4761_v29 }
  0x1a   :  { %12 = vsyncpa [#allocation3], 0  ;;  %vm7723_vm6 = vcmp.ne.s16.totalorder %v4761_v29, 0  ;;  %v4767_v34 = vsel %vm7672_vm8, %v823_v18, %v4756_v23  ;;  %v1163_v35 = vrot.slane %v1161_v24, 3  ;;  %v1166_v36 = vrot.slane %v1164_v25, 4  ;;  %s4593_s20 = smov 6  }
  0x1b   :  { %7786 = vst [vmem:[#allocation8_spill] sm:$0xff] %v4767_v34  ;;  %v1337_v37 = vsel %vm7723_vm6, 0, %v4693_v26  ;;  %vm7714_vm7 = vcmp.ne.s16.totalorder %v4767_v34, 0  ;;  %v1171_v38 = vrot.slane %v1169_v30, 3  ;;  %v1174_v39 = vrot.slane %v1172_v31, 4  ;;  %v520_v3 = vld [vmem:[%s7663_s0 + $0x40] sm:$0xff] }
  0x1c   :  { %1675 = vrot.lane.b32.xlu1 %v1337_v37, %s4592_s19  ;;  %v1338_v40 = vsel %vm7714_vm7, 0, %v4696_v27  ;;  %v4777_v41 = vor.u32 %v1166_v36, %v1163_v35  ;;  %v4329_v43 = vcombine.low %v4682_v20, %v1084_v33  ;;  %vm487_vm9 = vcmp.eq.s32.totalorder %v117_v28, 15  ;;  %v521_v4 = vld [vmem:[%s7663_s0 + $0x48] sm:$0xff]  ;;  %s4594_s25 = smov 15   ;;  %s4595_s26 = smov 18  }
  0x1d   :  { %1677 = vrot.lane.b32.xlu0 %v1338_v40, %s4592_s19  ;;  %v1175_v44 = vor.u32 %v1174_v39, %v1171_v38  ;;  %vm1054_vm10 = vmpackc.low %vm487_vm9, %vm487_vm9  ;;  %vm7755_vm13 = vcmask 1046528   ;;  %v548_v11 = vpack.c.bf16 %v521_v4, %v520_v3  ;;  %v41_v13 = vadd.s32 72, %v4673_v12  ;;  %s4596_s29 = smov 21   ;;  %s4597_s11 = smov 24  }
  0x1e   :  { %7787 = vst [vmem:[#allocation9_spill] sm:$0xff] %v4777_v41  ;;  %v1178_v45 = vshrl.u32 %v4329_v43, 16  ;;  %v1181_v46 = vshll.u32 %v4329_v43, 16  ;;  %v1086_v47 = vsel %vm1054_vm10, 65537, %v7687_v14  ;;  %vm7674_vm12 = vcmp.ne.s16.totalorder %v4777_v41, 0  ;;  %s4605_s28 = smov 56  }
  0x1f   :  { %v4784_v48 = vsel %vm7727_vm15, %v4777_v41, %v1175_v44  ;;  %v4330_v49 = vcombine.low %v4682_v20, %v1086_v47  ;;  %v1354_v60 = vsel %vm7674_vm12, 0, %v4685_v21  ;;  %v131_v30 = vand.u32 15, %v41_v13  ;;  %s4608_s27 = smov [#allocation2]  }
  0x20   :  { %7788 = vst [vmem:[#allocation10_spill] sm:$0xff] %v4784_v48  ;;  %vm7678_vm11 = vcmp.ne.s16.totalorder %v4784_v48, 0  ;;  %v1180_v51 = vrot.slane %v1178_v45, 3  ;;  %v1183_v52 = vrot.slane %v1181_v46, 4  ;;  %v1765_v6 = vrot.slane %v1354_v60, 1 }
  0x21   :  { %v1319_v53 = vsel %vm7678_vm11, 0, %v4685_v21  ;;  %v1187_v54 = vshrl.u32 %v4330_v49, 16  ;;  %v1190_v55 = vshll.u32 %v4330_v49, 16  ;;  %v1355_v1 = vsel %vm7678_vm11, 0, %v4693_v26 }
  0x22   :  { %v1590_v56 = vrot.slane %v1319_v53, 1  ;;  %v1184_v57 = vor.u32 %v1183_v52, %v1180_v51  ;;  %v1766_v9 = vrot.slane %v1355_v1, 1  ;;  %v43_v31 = vadd.s32 88, %v4673_v12 }
  0x23   :  { %v1189_v58 = vrot.slane %v1187_v54, 3  ;;  %v1192_v59 = vrot.slane %v1190_v55, 4  ;;  %v38_v33 = vadd.s32 48, %v4673_v12  ;;  %v4845_v36 = vrot.slane %v548_v11, 4 }
  0x24   :  { %v1591_v62 = vsel %vm7755_vm13, %v4676_v15, %v1590_v56  ;;  %v4798_v63 = vsel %vm7727_vm15, %v1175_v44, %v1184_v57  ;;  %v1767_v28 = vsel %vm7755_vm13, %v1765_v6, %v1766_v9  ;;  %vm489_vm5 = vcmp.eq.s32.totalorder %v131_v30, 15 }
  0x25   :  { %7789 = vst [vmem:[#allocation11_spill] sm:$0xff] %v4798_v63  ;;  %1622 = vrot.lane.b32.xlu1 %v1591_v62, %s4593_s20  ;;  %vm7677_vm14 = vcmp.ne.s16.totalorder %v4798_v63, 0  ;;  %v4805_v2 = vor.u32 %v1192_v59, %v1189_v58  ;;  %v145_v37 = vand.u32 15, %v43_v31  ;;  %v110_v38 = vand.u32 15, %v38_v33  ;;  %vm1056_vm9 = vmpackc.low %vm489_vm5, %vm489_vm5 }
  0x26   :  { %v1320_v5 = vsel %vm7677_vm14, 0, %v4693_v26  ;;  %v1356_v10 = vsel %vm7677_vm14, 0, %v4696_v27  ;;  %v40_v39 = vadd.s32 64, %v4673_v12  ;;  %v1088_v44 = vsel %vm1056_vm9, 65537, %v7687_v14 }
  0x27   :  { %v1592_v7 = vrot.slane %v1320_v5, 1  ;;  %v4818_v8 = vsel %vm7727_vm15, %v1184_v57, %v4805_v2  ;;  %v1768_v24 = vrot.slane %v1356_v10, 1  ;;  %vm491_vm10 = vcmp.eq.s32.totalorder %v145_v37, 15 }
  0x28   :  { %7790 = vst [vmem:[#allocation12_spill] sm:$0xff] %v4818_v8  ;;  %vm7673_vm4 = vcmp.ne.s16.totalorder %v4818_v8, 0  ;;  %vm454_vm2 = vcmp.eq.s32.totalorder %v110_v38, 0  ;;  %v124_v45 = vand.u32 15, %v40_v39  ;;  %v4858_v46 = vsel %vm7756_vm0, %v4687_v22, %v4845_v36  ;;  %vm1058_vm8 = vmpackc.low %vm491_vm10, %vm491_vm10 }
  0x29   :  { %v1593_v16 = vsel %vm7755_vm13, %v1590_v56, %v1592_v7  ;;  %v4829_v17 = vsel %vm7673_vm4, 0, %v4696_v27  ;;  %v4834_v18 = vsel %vm7673_vm4, 0, %v4704_v32  ;;  %v1769_v40 = vsel %vm7755_vm13, %v1766_v9, %v1768_v24  ;;  %vm701_vm5 = vmpackc.low %vm454_vm2, %vm454_vm2 }
  0x2a   :  { %1624 = vrot.lane.b32.xlu0 %v1593_v16, %s4593_s20  ;;  %v1594_v19 = vrot.slane %v4829_v17, 1  ;;  %v1770_v25 = vrot.slane %v4834_v18, 1  ;;  %v4331_v47 = vcombine.low %v4682_v20, %v1088_v44  ;;  %v1371_v49 = vsel %vm7681_vm3, 0, %v4693_v26  ;;  %v525_v17 = vld [vmem:[%s7663_s0 + $0x68] sm:$0xff] }
  0x2b   :  { %v1090_v51 = vsel %vm1058_vm8, 65537, %v7687_v14  ;;  %vm4866_vm9 = vcmp.eq.s32.totalorder %v124_v45, 0  ;;  %v733_v55 = vsel %vm701_vm5, 65537, %v7687_v14  ;;  %v1372_v56 = vsel %vm7723_vm6, 0, %v4696_v27 }
  0x2c   :  { %v1595_v35 = vsel %vm7755_vm13, %v1592_v7, %v1594_v19  ;;  %v1771_v43 = vsel %vm7755_vm13, %v1768_v24, %v1770_v25  ;;  %v1196_v22 = vshrl.u32 %v4331_v47, 16  ;;  %v1199_v53 = vshll.u32 %v4331_v47, 16  ;;  %vm703_vm10 = vmpackc.low %vm4866_vm9, %vm4866_vm9 }
  0x2d   :  { %1626 = vrot.lane.b32.xlu1 %v1595_v35, %s4593_s20  ;;  %v4332_v54 = vcombine.low %v4682_v20, %v1090_v51  ;;  %v1438_v57 = vshrl.u32 %v4704_v32, 16  ;;  %v1442_v58 = vshll.u32 %v4858_v46, 16  ;;  %v4314_v3 = vcombine.low %v733_v55, %v4682_v20 }
  0x2e   :  { %1798 = vrot.lane.b32.xlu0 %v1767_v28, %s4594_s25  ;;  %v1198_v59 = vrot.slane %v1196_v22, 3  ;;  %v1201_v60 = vrot.slane %v1199_v53, 4  ;;  %v735_v4 = vsel %vm703_vm10, 65537, %v7687_v14  ;;  %v1373_v5 = vsel %vm7714_vm7, 0, %v4704_v32 }
  0x2f   :  { %v1205_v62 = vshrl.u32 %v4332_v54, 16  ;;  %v1208_v1 = vshll.u32 %v4332_v54, 16  ;;  %v1440_v10 = vor.u32 %v1438_v57, %v4710_v42  ;;  %v4889_v11 = vrot.slane %v1442_v58, 1  ;;  %v4555_v42 = vld [vmem:[%s7664_s1] sm:$0xff]  }
  0x30   :  { %v1202_v6 = vor.u32 %v1201_v60, %v1198_v59  ;;  %v1387_v13 = vsel %vm7674_vm12, 0, %v4693_v26  ;;  %v1388_v16 = vsel %vm7678_vm11, 0, %v4696_v27  ;;  %v1389_v24 = vsel %vm7677_vm14, 0, %v4704_v32  ;;  %4449 = vmatprep.subr.bf16.mxu0 %v4555_v42 }
  0x31   :  { %1800 = vrot.lane.b32.xlu1 %v1769_v40, %s4594_s25  ;;  %v1207_v7 = vrot.slane %v1205_v62, 3  ;;  %v1210_v9 = vrot.slane %v1208_v1, 4  ;;  %v4315_v28 = vcombine.low %v735_v4, %v4682_v20  ;;  %v835_v31 = vshrl.u32 %v4314_v3, 16  ;;  %4450 = vmatpush3.bf16.msra.mxu0 %v4555_v42 }
  0x32   :  { %1802 = vrot.lane.b32.xlu0 %v1771_v43, %s4594_s25  ;;  %v838_v33 = vshll.u32 %v4314_v3, 16  ;;  %v1933_v35 = vrot.slane %v1387_v13, 1  ;;  %v1934_v37 = vrot.slane %v1388_v16, 1  ;;  %v4911_v38 = vsel %vm7727_vm15, %v4805_v2, %v1202_v6  ;;  %v523_v2 = vld [vmem:[%s7663_s0 + $0x58] sm:$0xff] }
  0x33   :  { %v4905_v30 = vor.u32 %v1210_v9, %v1207_v7  ;;  %7793 = vst [vmem:[#allocation13_spill] sm:$0xff] %v4911_v38  ;;  %v4915_v39 = vsel %vm7729_vm1, %v1440_v10, %v4889_v11  ;;  %v1936_v40 = vrot.slane %v1389_v24, 1  ;;  %v4920_v43 = vsel %vm7673_vm4, 0, %v4858_v46 }
  0x34   :  { %v844_v44 = vshrl.u32 %v4315_v28, 16  ;;  %v847_v45 = vshll.u32 %v4315_v28, 16  ;;  %v45_v47 = vadd.s32 104, %v4673_v12  ;;  %vm7676_vm2 = vcmp.ne.s16.totalorder %v4911_v38, 0 }
  0x35   :  { %1848 = vrot.lane.b32.xlu1 %v1371_v49, %s4595_s26  ;;  %v47_v49 = vadd.s32 120, %v4673_v12  ;;  %v4935_v51 = vsel %vm7727_vm15, %v1202_v6, %v4905_v30  ;;  %v837_v52 = vrot.slane %v835_v31, 4  ;;  %v840_v22 = vrot.slane %v838_v33, 5 }
  0x36   :  { %1850 = vrot.lane.b32.xlu0 %v1372_v56, %s4595_s26  ;;  %7794 = vst [vmem:[#allocation14_spill] sm:$0xff] %v4935_v51  ;;  %v1935_v53 = vsel %vm7755_vm13, %v1933_v35, %v1934_v37  ;;  %v1938_v54 = vrot.slane %v4920_v43, 1  ;;  %v1937_v56 = vsel %vm7755_vm13, %v1934_v37, %v1936_v40  ;;  %v1322_v57 = vsel %vm7676_vm2, 0, %v4704_v32 }
  0x37   :  { %vm7675_vm8 = vcmp.ne.s16.totalorder %v4935_v51, 0  ;;  %v846_v58 = vrot.slane %v844_v44, 4  ;;  %v849_v59 = vrot.slane %v847_v45, 5  ;;  %v841_v60 = vor.u32 %v840_v22, %v837_v52 }
  0x38   :  { %v159_v62 = vand.u32 15, %v45_v47  ;;  %v173_v1 = vand.u32 15, %v47_v49  ;;  %v1939_v3 = vsel %vm7755_vm13, %v1936_v40, %v1938_v54  ;;  %v4954_v6 = vsel %vm7675_vm8, 0, %v4858_v46 }
  0x39   :  { %1852 = vrot.lane.b32.xlu1 %v1373_v5, %s4595_s26  ;;  %v1596_v5 = vrot.slane %v1322_v57, 1  ;;  %v42_v7 = vadd.s32 80, %v4673_v12  ;;  %v4957_v9 = vor.u32 %v849_v59, %v846_v58  ;;  %vm7797_vm4 = vsmask.f32 3328 }
  0x3a   :  { %1883 = vrot.lane.b32.xlu0 %v4719_v50, %s4596_s29  ;;  %v522_v50 = vld [vmem:[%s7663_s0 + $0x50] sm:$0xff]  ;;  %vm493_vm5 = vcmp.eq.s32.totalorder %v159_v62, 15  ;;  %vm4959_vm10 = vcmp.eq.s32.totalorder %v173_v1, 15  ;;  %v4967_v13 = vsel %vm7797_vm4, %v4756_v23, %v841_v60  ;;  %v1598_v16 = vrot.slane %v4954_v6, 1  ;;  %v529_v6 = vld [vmem:[%s7663_s0 + $0x88] sm:$0xff] }
  0x3b   :  { %v549_v55 = vpack.c.bf16 %v523_v2, %v522_v50  ;;  %vm1060_vm9 = vmpackc.low %vm493_vm5, %vm493_vm5  ;;  %v44_v28 = vadd.s32 96, %v4673_v12  ;;  %v1597_v42 = vsel %vm7755_vm13, %v1594_v19, %v1596_v5  ;;  %v138_v23 = vand.u32 15, %v42_v7 }
  0x3c   :  { %vm1062_vm4 = vmpackc.low %vm4959_vm10, %vm4959_vm10  ;;  %vm7726_vm5 = vcmp.ne.s16.totalorder %v4967_v13, 0  ;;  %vm7798_vm12 = vsmask.f32 3328  ;;  %v1446_v19 = vshrl.u32 %v4858_v46, 16  ;;  %v1599_v35 = vsel %vm7755_vm13, %v1596_v5, %v1598_v16 }
  0x3d   :  { %1885 = vrot.lane.b32.xlu1 %v4730_v61, %s4596_s29  ;;  %v586_v4 = vrot.slane %v549_v55, 4  ;;  %v4986_v31 = vsel %vm7798_vm12, %v841_v60, %v4957_v9  ;;  %v1094_v40 = vsel %vm1062_vm4, 65537, %v7687_v14  ;;  %v152_v50 = vand.u32 15, %v44_v28 }
  0x3e   :  { %1887 = vrot.lane.b32.xlu0 %v4915_v39, %s4596_s29  ;;  %v1339_v2 = vsel %vm7726_vm5, 0, %v4704_v32  ;;  %vm7725_vm12 = vcmp.ne.s16.totalorder %v4986_v31, 0  ;;  %v1358_v47 = vsel %vm7676_vm2, 0, %v4858_v46  ;;  %v1448_v49 = vor.u32 %v1446_v19, %v4889_v11 }
  0x3f   :  { %v4973_v24 = vsel %vm7756_vm0, %v4845_v36, %v586_v4  ;;  %v524_v36 = vld [vmem:[%s7663_s0 + $0x60] sm:$0xff]  ;;  %v4334_v22 = vcombine.low %v4682_v20, %v1094_v40  ;;  %vm5025_vm4 = vcmp.eq.s32.totalorder %v152_v50, 0  ;;  %v1772_v11 = vrot.slane %v1358_v47, 1 }
  0x40   :  { %v1450_v33 = vshll.u32 %v4973_v24, 16  ;;  %v550_v44 = vpack.c.bf16 %v525_v17, %v524_v36  ;;  %v5032_v58 = vsel %vm7675_vm8, 0, %v4973_v24  ;;  %v1374_v19 = vsel %vm7726_vm5, 0, %v4858_v46 }
  0x41   :  { %1965 = vrot.lane.b32.xlu1 %v1935_v53, %s4597_s11  ;;  %v1340_v53 = vsel %vm7725_vm12, 0, %v4858_v46  ;;  %v1223_v60 = vshrl.u32 %v4334_v22, 16  ;;  %v1226_v62 = vshll.u32 %v4334_v22, 16  ;;  %v1774_v5 = vrot.slane %v5032_v58, 1 }
  0x42   :  { %1967 = vrot.lane.b32.xlu0 %v1937_v56, %s4597_s11  ;;  %v1452_v52 = vrot.slane %v1450_v33, 1  ;;  %v5034_v59 = vrot.slane %v550_v44, 4  ;;  %v1773_v28 = vsel %vm7755_vm13, %v1770_v25, %v1772_v11  ;;  %v1454_v25 = vshrl.u32 %v4973_v24, 16 }
  0x43   :  { %v1228_v36 = vrot.slane %v1226_v62, 4  ;;  %v1775_v18 = vsel %vm7755_vm13, %v1772_v11, %v1774_v5  ;;  %v1375_v44 = vsel %vm7725_vm12, 0, %v4973_v24  ;;  %vm7810_vm14 = vsmask.f32 3328 }
  0x44   :  { %v1456_v45 = vor.u32 %v1454_v25, %v1452_v52  ;;  %vm7813_vm11 = vsmask.f32 3328  ;;  %vm7826_vm3 = vsmask.f32 3328  ;;  %v57_v63 = vadd.s32 200, %v4673_v12 }
  0x45   :  { %1543 = vrot.lane.b32.xlu1 %v4730_v61, %s4590_s17  ;;  %v1092_v61 = vsel %vm1060_vm9, 65537, %v7687_v14  ;;  %vm5008_vm9 = vcmp.eq.s32.totalorder %v138_v23, 0  ;;  %vm2120_vm12 = vcmask 97280   ;;  %vm2155_vm5 = vcmask 121856  }
  0x46   :  { %1969 = vrot.lane.b32.xlu0 %v1939_v3, %s4597_s11  ;;  %v4333_v37 = vcombine.low %v4682_v20, %v1092_v61  ;;  %vm705_vm10 = vmpackc.low %vm5008_vm9, %vm5008_vm9  ;;  %v5044_v3 = vsel %vm7729_vm1, %v1448_v49, %v1452_v52 }
  0x47   :  { %v737_v1 = vsel %vm705_vm10, 65537, %v7687_v14  ;;  %vm707_vm9 = vmpackc.low %vm5025_vm4, %vm5025_vm4 }
  0x48   :  { %v1214_v55 = vshrl.u32 %v4333_v37, 16  ;;  %v1217_v56 = vshll.u32 %v4333_v37, 16  ;;  %v4316_v61 = vcombine.low %v737_v1, %v4682_v20  ;;  %v739_v23 = vsel %vm707_vm9, 65537, %v7687_v14 }
  0x49   :  { %1545 = vrot.lane.b32.xlu1 %v4915_v39, %s4590_s17  ;;  %v4317_v33 = vcombine.low %v739_v23, %v4682_v20 }
  0x4a   :  { %1628 = vrot.lane.b32.xlu0 %v1597_v42, %s4593_s20  ;;  %v1216_v7 = vrot.slane %v1214_v55, 3  ;;  %v1219_v10 = vrot.slane %v1217_v56, 4  ;;  %v5052_v42 = vsel %vm7756_vm0, %v586_v4, %v5034_v59  ;;  %v853_v37 = vshrl.u32 %v4316_v61, 16  ;;  %v526_v55 = vld [vmem:[%s7663_s0 + $0x70] sm:$0xff]  ;;  %v527_v56 = vld [vmem:[%s7663_s0 + $0x78] sm:$0xff] }
  0x4b   :  { %7803 = vst [vmem:[#allocation15_spill] sm:$0xff] %v5052_v42  ;;  %v1458_v4 = vshll.u32 %v5052_v42, 16  ;;  %v856_v50 = vshll.u32 %v4316_v61, 16  ;;  %v5094_v52 = vsel %vm7675_vm8, 0, %v5052_v42  ;;  %v865_v11 = vshll.u32 %v4317_v33, 16 }
  0x4c   :  { %v1220_v17 = vor.u32 %v1219_v10, %v1216_v7  ;;  %v855_v57 = vrot.slane %v853_v37, 4  ;;  %v551_v10 = vpack.c.bf16 %v527_v56, %v526_v55  ;;  %v1942_v61 = vrot.slane %v5094_v52, 1 }
  0x4d   :  { %1630 = vrot.lane.b32.xlu1 %v1599_v35, %s4593_s20  ;;  %v1391_v35 = vsel %vm7676_vm2, 0, %v4973_v24  ;;  %v5079_v47 = vrot.slane %v1458_v4, 1  ;;  %v858_v62 = vrot.slane %v856_v50, 5 }
  0x4e   :  { %1679 = vrot.lane.b32.xlu0 %v1339_v2, %s4592_s19  ;;  %v49_v2 = vadd.s32 136, %v4673_v12  ;;  %v5083_v49 = vsel %vm7727_vm15, %v4905_v30, %v1220_v17  ;;  %v1940_v22 = vrot.slane %v1391_v35, 1  ;;  %v51_v30 = vadd.s32 152, %v4673_v12 }
  0x4f   :  { %7804 = vst [vmem:[#allocation16_spill] sm:$0xff] %v5083_v49  ;;  %vm7680_vm10 = vcmp.ne.s16.totalorder %v5083_v49, 0  ;;  %v5107_v7 = vsel %vm7729_vm1, %v1456_v45, %v5079_v47  ;;  %v859_v25 = vor.u32 %v858_v62, %v855_v57  ;;  %v590_v43 = vrot.slane %v551_v10, 4 }
  0x50   :  { %v187_v1 = vand.u32 15, %v49_v2  ;;  %v48_v45 = vadd.s32 128, %v4673_v12 }
  0x51   :  { %1681 = vrot.lane.b32.xlu1 %v1340_v53, %s4592_s19  ;;  %v862_v53 = vshrl.u32 %v4317_v33, 16  ;;  %v46_v33 = vadd.s32 112, %v4673_v12  ;;  %v5146_v50 = vsel %vm7810_vm14, %v4957_v9, %v859_v25 }
  0x52   :  { %1720 = vrot.lane.b32.xlu0 %v4915_v39, %s4591_s18  ;;  %v1225_v39 = vrot.slane %v1223_v60, 3  ;;  %vm5119_vm9 = vcmp.eq.s32.totalorder %v187_v1, 15  ;;  %7811 = vst [vmem:[#allocation18_spill] sm:$0xff] %v5146_v50 }
  0x53   :  { %v864_v23 = vrot.slane %v862_v53, 4  ;;  %vm1064_vm8 = vmpackc.low %vm5119_vm9, %vm5119_vm9  ;;  %v166_v9 = vand.u32 15, %v46_v33  ;;  %vm7683_vm9 = vcmp.ne.s16.totalorder %v5146_v50, 0 }
  0x54   :  { %v5072_v40 = vor.u32 %v1228_v36, %v1225_v39  ;;  %v1324_v39 = vsel %vm7680_vm10, 0, %v4973_v24  ;;  %v867_v36 = vrot.slane %v865_v11, 5  ;;  %v1341_v62 = vsel %vm7683_vm9, 0, %v4973_v24 }
  0x55   :  { %1722 = vrot.lane.b32.xlu1 %v5044_v3, %s4591_s18 }
  0x56   :  { %1804 = vrot.lane.b32.xlu0 %v1773_v28, %s4594_s25  ;;  %v5101_v60 = vsel %vm7727_vm15, %v1220_v17, %v5072_v40  ;;  %v1941_v28 = vsel %vm7755_vm13, %v1938_v54, %v1940_v22  ;;  %v1943_v54 = vsel %vm7755_vm13, %v1940_v22, %v1942_v61  ;;  %v1600_v17 = vrot.slane %v1324_v39, 1 }
  0x57   :  { %7805 = vst [vmem:[#allocation17_spill] sm:$0xff] %v5101_v60  ;;  %vm7679_vm4 = vcmp.ne.s16.totalorder %v5101_v60, 0  ;;  %v5133_v35 = vor.u32 %v867_v36, %v864_v23 }
  0x58   :  { %v1601_v22 = vsel %vm7755_vm13, %v1598_v16, %v1600_v17  ;;  %v1462_v16 = vshrl.u32 %v5052_v42, 16 }
  0x59   :  { %1806 = vrot.lane.b32.xlu1 %v1775_v18, %s4594_s25  ;;  %v201_v18 = vand.u32 15, %v51_v30  ;;  %v5165_v53 = vsel %vm7813_vm11, %v859_v25, %v5133_v35  ;;  %v180_v30 = vand.u32 15, %v48_v45 }
  0x5a   :  { %1854 = vrot.lane.b32.xlu0 %v1374_v19, %s4595_s26  ;;  %v5130_v19 = vsel %vm7679_vm4, 0, %v5052_v42  ;;  %7814 = vst [vmem:[#allocation20_spill] sm:$0xff] %v5165_v53  ;;  %vm7682_vm11 = vcmp.ne.s16.totalorder %v5165_v53, 0  ;;  %v1464_v23 = vor.u32 %v1462_v16, %v5079_v47 }
  0x5b   :  { %vm5138_vm2 = vcmp.eq.s32.totalorder %v201_v18, 15  ;;  %v1602_v2 = vrot.slane %v5130_v19, 1  ;;  %v1342_v18 = vsel %vm7682_vm11, 0, %v5052_v42 }
  0x5c   :  { %vm1066_vm14 = vmpackc.low %vm5138_vm2, %vm5138_vm2  ;;  %vm5187_vm2 = vcmp.eq.s32.totalorder %v166_v9, 0 }
  0x5d   :  { %1856 = vrot.lane.b32.xlu1 %v1375_v44, %s4595_s26  ;;  %v5152_v44 = vsel %vm7756_vm0, %v5034_v59, %v590_v43  ;;  %v528_v59 = vld [vmem:[%s7663_s0 + $0x80] sm:$0xff]  ;;  %v1603_v56 = vsel %vm7755_vm13, %v1600_v17, %v1602_v2  ;;  %v1098_v11 = vsel %vm1066_vm14, 65537, %v7687_v14  ;;  %vm5204_vm14 = vcmp.eq.s32.totalorder %v180_v30, 0 }
  0x5e   :  { %1889 = vrot.lane.b32.xlu0 %v5044_v3, %s4596_s29  ;;  %7812 = vst [vmem:[#allocation19_spill] sm:$0xff] %v5152_v44  ;;  %v1466_v55 = vshll.u32 %v5152_v44, 16  ;;  %v552_v1 = vpack.c.bf16 %v529_v6, %v528_v59  ;;  %v4336_v36 = vcombine.low %v4682_v20, %v1098_v11  ;;  %v5211_v17 = vsel %vm7679_vm4, 0, %v5152_v44 }
  0x5f   :  { %v7686_v9 = vrot.slane %v5211_v17, 1 }
  0x60   :  { %v1468_v39 = vrot.slane %v1466_v55, 1  ;;  %v5213_v33 = vrot.slane %v552_v1, 4  ;;  %v1241_v37 = vshrl.u32 %v4336_v36, 16  ;;  %v1244_v45 = vshll.u32 %v4336_v36, 16 }
  0x61   :  { %1891 = vrot.lane.b32.xlu1 %v5107_v7, %s4596_s29  ;;  %v1393_v1 = vsel %vm7680_vm10, 0, %v5152_v44  ;;  %v1377_v36 = vsel %vm7682_vm11, 0, %v5152_v44 }
  0x62   :  { %1971 = vrot.lane.b32.xlu0 %v1941_v28, %s4597_s11  ;;  %v1360_v28 = vsel %vm7680_vm10, 0, %v5052_v42  ;;  %v5231_v55 = vsel %vm7756_vm0, %v590_v43, %v5213_v33  ;;  %v1246_v11 = vrot.slane %v1244_v45, 4  ;;  %v55_v45 = vadd.s32 184, %v4673_v12 }
  0x63   :  { %v1776_v47 = vrot.slane %v1360_v28, 1  ;;  %7819 = vst [vmem:[#allocation21_spill] sm:$0xff] %v5231_v55  ;;  %v1474_v43 = vshll.u32 %v5231_v55, 16  ;;  %v1478_v19 = vshrl.u32 %v5231_v55, 16 }
  0x65   :  { %1547 = vrot.lane.b32.xlu1 %v5044_v3, %s4590_s17  ;;  %v1096_v3 = vsel %vm1064_vm8, 65537, %v7687_v14  ;;  %vm709_vm8 = vmpackc.low %vm5187_vm2, %vm5187_vm2  ;;  %v1777_v16 = vsel %vm7755_vm13, %v1774_v5, %v1776_v47  ;;  %v1779_v58 = vsel %vm7755_vm13, %v1776_v47, %v7686_v9  ;;  %v1470_v5 = vshrl.u32 %v5152_v44, 16 }
  0x66   :  { %1973 = vrot.lane.b32.xlu0 %v1943_v54, %s4597_s11  ;;  %v4335_v57 = vcombine.low %v4682_v20, %v1096_v3  ;;  %vm711_vm2 = vmpackc.low %vm5204_vm14, %vm5204_vm14  ;;  %v5223_v3 = vsel %vm7729_vm1, %v1464_v23, %v1468_v39  ;;  %vm2502_vm14 = vcmask 1045504   ;;  %v5261_v47 = vrot.slane %v1474_v43, 1 }
  0x67   :  { %v1472_v54 = vor.u32 %v1470_v5, %v1468_v39  ;;  %v531_v39 = vld [vmem:[%s7663_s0 + $0x98] sm:$0xff] }
  0x68   :  { %v1232_v25 = vshrl.u32 %v4335_v57, 16  ;;  %v1235_v4 = vshll.u32 %v4335_v57, 16  ;;  %v743_v57 = vsel %vm711_vm2, 65537, %v7687_v14 }
  0x69   :  { %1549 = vrot.lane.b32.xlu1 %v5107_v7, %s4590_s17  ;;  %v4319_v10 = vcombine.low %v743_v57, %v4682_v20 }
  0x6a   :  { %1632 = vrot.lane.b32.xlu0 %v1601_v22, %s4593_s20  ;;  %v741_v22 = vsel %vm709_vm8, 65537, %v7687_v14  ;;  %v1234_v59 = vrot.slane %v1232_v25, 3  ;;  %v1237_v6 = vrot.slane %v1235_v4, 4  ;;  %vm2501_vm8 = vcmask 1044480   ;;  %v4556_v4 = vld [vmem:[%s7664_s1 + $0x8] sm:$0x3f]  }
  0x6b   :  { %v53_v25 = vadd.s32 168, %v4673_v12 }
  0x6c   :  { %v1238_v30 = vor.u32 %v1237_v6, %v1234_v59  ;;  %v5271_v59 = vsel %vm7679_vm4, 0, %v5231_v55  ;;  %v880_v6 = vshrl.u32 %v4319_v10, 16 }
  0x6d   :  { %1634 = vrot.lane.b32.xlu1 %v1603_v56, %s4593_s20  ;;  %v4318_v56 = vcombine.low %v741_v22, %v4682_v20  ;;  %v1944_v22 = vrot.slane %v1393_v1, 1  ;;  %v215_v43 = vand.u32 15, %v53_v25  ;;  %v5291_v1 = vsel %vm7729_vm1, %v1472_v54, %v5261_v47 }
  0x6e   :  { %1683 = vrot.lane.b32.xlu0 %v1341_v62, %s4592_s19  ;;  %v1376_v62 = vsel %vm7683_vm9, 0, %v5052_v42  ;;  %v50_v54 = vadd.s32 144, %v4673_v12 }
  0x6f   :  { %v871_v28 = vshrl.u32 %v4318_v56, 16  ;;  %v874_v23 = vshll.u32 %v4318_v56, 16  ;;  %v4598_v56 = vmov 65535  }
  0x71   :  { %1685 = vrot.lane.b32.xlu1 %v1342_v18, %s4592_s19  ;;  %v873_v57 = vrot.slane %v871_v28, 4  ;;  %v229_v28 = vand.u32 15, %v55_v45  ;;  %v52_v45 = vadd.s32 160, %v4673_v12 }
  0x72   :  { %1724 = vrot.lane.b32.xlu0 %v5107_v7, %s4591_s18  ;;  %v1243_v7 = vrot.slane %v1241_v37, 3  ;;  %v5265_v37 = vsel %vm7727_vm15, %v5072_v40, %v1238_v30  ;;  %v2503_v40 = vsel %vm2501_vm8, 4294967295, %v4598_v56 }
  0x73   :  { %7820 = vst [vmem:[#allocation22_spill] sm:$0xff] %v5265_v37  ;;  %vm7711_vm2 = vcmp.ne.s16.totalorder %v5265_v37, 0  ;;  %vm5314_vm4 = vcmp.eq.s32.totalorder %v229_v28, 15 }
  0x74   :  { %v5254_v18 = vor.u32 %v1246_v11, %v1243_v7  ;;  %v876_v7 = vrot.slane %v874_v23, 5  ;;  %v883_v11 = vshll.u32 %v4319_v10, 16  ;;  %v1945_v23 = vsel %vm7755_vm13, %v1942_v61, %v1944_v22  ;;  %vm1070_vm11 = vmpackc.low %vm5314_vm4, %vm5314_vm4 }
  0x75   :  { %1726 = vrot.lane.b32.xlu1 %v5223_v3, %s4591_s18  ;;  %v1326_v25 = vsel %vm7711_vm2, 0, %v5152_v44  ;;  %vm7829_vm4 = vsmask.f32 3328 }
  0x76   :  { %1808 = vrot.lane.b32.xlu0 %v1777_v16, %s4594_s25  ;;  %v530_v16 = vld [vmem:[%s7663_s0 + $0x90] sm:$0xff]  ;;  %v5285_v5 = vsel %vm7727_vm15, %v1238_v30, %v5254_v18  ;;  %v882_v30 = vrot.slane %v880_v6, 4  ;;  %v877_v52 = vor.u32 %v876_v7, %v873_v57  ;;  %v1604_v57 = vrot.slane %v1326_v25, 1 }
  0x77   :  { %7821 = vst [vmem:[#allocation23_spill] sm:$0xff] %v5285_v5  ;;  %v553_v10 = vpack.c.bf16 %v531_v39, %v530_v16  ;;  %vm7710_vm8 = vcmp.ne.s16.totalorder %v5285_v5, 0  ;;  %v243_v5 = vand.u32 15, %v57_v63 }
  0x78   :  { %v5324_v7 = vsel %vm7710_vm8, 0, %v5231_v55 }
  0x79   :  { %1810 = vrot.lane.b32.xlu1 %v1779_v58, %s4594_s25  ;;  %v2504_v58 = vsel %vm2502_vm14, %v2503_v40, 0  ;;  %vm5306_vm14 = vcmp.eq.s32.totalorder %v215_v43, 15  ;;  %v594_v16 = vrot.slane %v553_v10, 4  ;;  %v194_v43 = vand.u32 15, %v50_v54 }
  0x7a   :  { %1858 = vrot.lane.b32.xlu0 %v1376_v62, %s4595_s26  ;;  %v2506_v62 = vand.u32 %v4556_v4, %v2504_v58  ;;  %v885_v4 = vrot.slane %v883_v11, 5  ;;  %vm1068_vm10 = vmpackc.low %vm5306_vm14, %vm5306_vm14  ;;  %v7684_v10 = vrot.slane %v5324_v7, 1 }
  0x7b   :  { %v5346_v28 = vsel %vm7756_vm0, %v5213_v33, %v594_v16  ;;  %v1100_v25 = vsel %vm1068_vm10, 65537, %v7687_v14  ;;  %vm5366_vm14 = vcmp.eq.s32.totalorder %v194_v43, 0 }
  0x7c   :  { %4451 = vmatprep.subr.bf16.mxu0 %v2506_v62  ;;  %v5328_v58 = vor.u32 %v885_v4, %v882_v30  ;;  %7828 = vst [vmem:[#allocation25_spill] sm:$0xff] %v5346_v28  ;;  %v1102_v4 = vsel %vm1070_vm11, 65537, %v7687_v14  ;;  %v4337_v43 = vcombine.low %v4682_v20, %v1100_v25  ;;  %v1486_v8 = vshrl.u32 %v5346_v28, 16 }
  0x7d   :  { %1860 = vrot.lane.b32.xlu1 %v1377_v36, %s4595_s26  ;;  %v7685_v36 = vrot.slane %v5271_v59, 1  ;;  %4452 = vmatpush3.bf16.msra.mxu0 %v2506_v62  ;;  %v208_v62 = vand.u32 15, %v52_v45 }
  0x7e   :  { %1893 = vrot.lane.b32.xlu0 %v5223_v3, %s4596_s29  ;;  %v5297_v56 = vpop.permute.xlu0 %1537  ;;  %v5363_v33 = vsel %vm7829_vm4, %v877_v52, %v5328_v58  ;;  %vm713_vm4 = vmpackc.low %vm5366_vm14, %vm5366_vm14  ;;  %v1250_v54 = vshrl.u32 %v4337_v43, 16 }
  0x7f   :  { %v1947_v40 = vsel %vm7755_vm13, %v1944_v22, %v7685_v36  ;;  %v5337_v22 = vsel %vm7826_vm3, %v5133_v35, %v877_v52  ;;  %v533_v35 = vld [vmem:[%s7663_s0 + $0xa8] sm:$0xff]  ;;  %7830 = vst [vmem:[#allocation26_spill] sm:$0xff] %v5363_v33  ;;  %vm5374_vm10 = vcmp.eq.s32.totalorder %v208_v62, 0  ;;  %v1607_v52 = vsel %vm7755_vm13, %v1604_v57, %v7684_v10 }
  0x80   :  { %7827 = vst [vmem:[#allocation24_spill] sm:$0xff] %v5337_v22  ;;  %vm7724_vm3 = vcmp.ne.s16.totalorder %v5337_v22, 0  ;;  %vm7715_vm11 = vcmp.ne.s16.totalorder %v5363_v33, 0  ;;  %vm715_vm9 = vmpackc.low %vm5374_vm10, %vm5374_vm10  ;;  %v1253_v36 = vshll.u32 %v4337_v43, 16  ;;  %v745_v45 = vsel %vm713_vm4, 65537, %v7687_v14 }
  0x81   :  { %1895 = vrot.lane.b32.xlu1 %v5291_v1, %s4596_s29  ;;  %v5312_v6 = vpop.permute.xlu1 %1541  ;;  %v1343_v62 = vsel %vm7724_vm3, 0, %v5152_v44  ;;  %v4320_v43 = vcombine.low %v745_v45, %v4682_v20  ;;  %v7836_v45 = vrot.slane %v5211_v17, 1  ;;  %vm5511_vm10 = vcmp.eq.s32.totalorder %v243_v5, 15 }
  0x82   :  { %1975 = vrot.lane.b32.xlu0 %v1945_v23, %s4597_s11  ;;  %v5326_v11 = vpop.permute.xlu0 %1539  ;;  %v1605_v23 = vsel %vm7755_vm13, %v1602_v2, %v1604_v57  ;;  %v1482_v2 = vshll.u32 %v5346_v28, 16  ;;  %vm1999_vm4 = vcmask 23552  }
  0x85   :  { %1551 = vrot.lane.b32.xlu1 %v5223_v3, %s4590_s17  ;;  %v532_v3 = vld [vmem:[%s7663_s0 + $0xa0] sm:$0xff]  ;;  %v5357_v30 = vpop.permute.xlu1 %1714 }
  0x86   :  { %1977 = vrot.lane.b32.xlu0 %v1947_v40, %s4597_s11  ;;  %v554_v61 = vpack.c.bf16 %v533_v35, %v532_v3  ;;  %v5382_v39 = vpop.permute.xlu0 %1716  ;;  %v1362_v40 = vsel %vm7711_vm2, 0, %v5231_v55  ;;  %v4338_v3 = vcombine.low %v4682_v20, %v1102_v4  ;;  %v1480_v35 = vor.u32 %v1478_v19, %v5261_v47 }
  0x87   :  { %v1780_v25 = vrot.slane %v1362_v40, 1  ;;  %v1344_v4 = vsel %vm7715_vm11, 0, %v5231_v55  ;;  %v747_v19 = vsel %vm715_vm9, 65537, %v7687_v14  ;;  %v1255_v14 = vrot.slane %v1253_v36, 4 }
  0x88   :  { %v596_v10 = vrot.slane %v554_v61, 4  ;;  %v1259_v9 = vshrl.u32 %v4338_v3, 16  ;;  %v1262_v47 = vshll.u32 %v4338_v3, 16  ;;  %v535_v3 = vld [vmem:[%s7663_s0 + $0xb8] sm:$0xff]  ;;  %v892_v36 = vshll.u32 %v4320_v43, 16 }
  0x89   :  { %1553 = vrot.lane.b32.xlu1 %v5291_v1, %s4590_s17  ;;  %v5400_v57 = vpop.permute.xlu1 %1718  ;;  %v1781_v49 = vsel %vm7755_vm13, %v7836_v45, %v1780_v25 }
  0x8a   :  { %1636 = vrot.lane.b32.xlu0 %v1605_v23, %s4593_s20  ;;  %v1484_v23 = vrot.slane %v1482_v2, 1  ;;  %v5414_v2 = vpop.permute.xlu0 %1673  ;;  %v5421_v40 = vsel %vm7756_vm0, %v594_v16, %v596_v10  ;;  %v4321_v16 = vcombine.low %v747_v19, %v4682_v20  ;;  %v1261_v51 = vrot.slane %v1259_v9, 3 }
  0x8b   :  { %7835 = vst [vmem:[#allocation27_spill] sm:$0xff] %v5421_v40  ;;  %v1264_v38 = vrot.slane %v1262_v47, 4 }
  0x8c   :  { %v5418_v61 = vsel %vm7729_vm1, %v1480_v35, %v1484_v23  ;;  %v1252_v35 = vrot.slane %v1250_v54, 3  ;;  %v889_v54 = vshrl.u32 %v4320_v43, 16  ;;  %v898_v47 = vshrl.u32 %v4321_v16, 16 }
  0x8d   :  { %1638 = vrot.lane.b32.xlu1 %v1607_v52, %s4593_s20  ;;  %v5411_v52 = vsel %vm7710_vm8, 0, %v5346_v28  ;;  %v901_v45 = vshll.u32 %v4321_v16, 16  ;;  %v1488_v43 = vor.u32 %v1486_v8, %v1484_v23 }
  0x8e   :  { %1687 = vrot.lane.b32.xlu0 %v1343_v62, %s4592_s19  ;;  %v534_v62 = vld [vmem:[%s7663_s0 + $0xb0] sm:$0xff]  ;;  %v5434_v60 = vpop.permute.xlu1 %1675  ;;  %v1256_v9 = vor.u32 %v1255_v14, %v1252_v35 }
  0x8f   :  { %v555_v41 = vpack.c.bf16 %v535_v3, %v534_v62  ;;  %v5444_v19 = vpop.permute.xlu0 %1677  ;;  %v1378_v62 = vsel %vm7724_vm3, 0, %v5231_v55  ;;  %v5452_v3 = vor.u32 %v1264_v38, %v1261_v51  ;;  %v5469_v38 = vsel %vm7710_vm8, 0, %v5421_v40 }
  0x90   :  { %v891_v51 = vrot.slane %v889_v54, 4  ;;  %v5474_v8 = vsel %vm7727_vm15, %v5254_v18, %v1256_v9  ;;  %v903_v23 = vrot.slane %v901_v45, 5  ;;  %v7838_v45 = vrot.slane %v5271_v59, 1 }
  0x91   :  { %1689 = vrot.lane.b32.xlu1 %v1344_v4, %s4592_s19  ;;  %v7703_v4 = vrot.slane %v5411_v52, 1  ;;  %v5461_v14 = vrot.slane %v555_v41, 4  ;;  %7837 = vst [vmem:[#allocation28_spill] sm:$0xff] %v5474_v8  ;;  %v900_v41 = vrot.slane %v898_v47, 4  ;;  %vm7743_vm9 = vcmp.ne.s16.totalorder %v5474_v8, 0 }
  0x92   :  { %1728 = vrot.lane.b32.xlu0 %v5291_v1, %s4591_s18  ;;  %v1490_v1 = vshll.u32 %v5421_v40, 16  ;;  %vm7841_vm8 = vsmask.f32 3328  ;;  %v967_v18 = vsel %vm7723_vm6, 0, %v4685_v21  ;;  %v7846_v29 = vrot.slane %v5469_v38, 1 }
  0x93   :  { %v1783_v17 = vsel %vm7755_vm13, %v1780_v25, %v7703_v4  ;;  %v1395_v25 = vsel %vm7711_vm2, 0, %v5346_v28  ;;  %v894_v4 = vrot.slane %v892_v36, 5  ;;  %v5485_v54 = vsel %vm7756_vm0, %v596_v10, %v5461_v14  ;;  %vm7842_vm2 = vmmov %vm7841_vm8 }
  0x94   :  { %v1492_v16 = vrot.slane %v1490_v1, 1  ;;  %v1948_v37 = vrot.slane %v1395_v25, 1  ;;  %v5479_v1 = vsel %vm7727_vm15, %v1256_v9, %v5452_v3  ;;  %v5496_v63 = vor.u32 %v903_v23, %v900_v41  ;;  %v537_v25 = vld [vmem:[%s7663_s0 + $0xc8] sm:$0xff] }
  0x95   :  { %1730 = vrot.lane.b32.xlu1 %v5418_v61, %s4591_s18  ;;  %v895_v36 = vor.u32 %v894_v4, %v891_v51  ;;  %vm7732_vm14 = vcmp.ne.s16.totalorder %v5479_v1, 0  ;;  %v1498_v4 = vshll.u32 %v5485_v54, 16  ;;  %v1328_v41 = vsel %vm7743_vm9, 0, %v5346_v28 }
  0x96   :  { %1812 = vrot.lane.b32.xlu0 %v1781_v49, %s4594_s25  ;;  %v1379_v49 = vsel %vm7715_vm11, 0, %v5346_v28  ;;  %v5493_v9 = vsel %vm7729_vm1, %v1488_v43, %v1492_v16  ;;  %v536_v43 = vld [vmem:[%s7663_s0 + $0xc0] sm:$0xff]  ;;  %v5523_v23 = vsel %vm7714_vm7, 0, %v4693_v26  ;;  %v5530_v5 = vsel %vm7732_vm14, 0, %v5421_v40  ;;  %vm1072_vm7 = vmpackc.low %vm5511_vm10, %vm5511_vm10 }
  0x97   :  { %v5464_v35 = vpop.permute.xlu1 %1622  ;;  %v5543_v26 = vsel %vm7842_vm2, %v895_v36, %v5496_v63  ;;  %v556_v34 = vpack.c.bf16 %v537_v25, %v536_v43  ;;  %v1951_v21 = vsel %vm7755_vm13, %v1948_v37, %v7846_v29  ;;  %v5557_v15 = vrot.slane %v1498_v4, 1 }
  0x98   :  { %7843 = vst [vmem:[#allocation29_spill] sm:$0xff] %v5543_v26  ;;  %vm2050_vm2 = vcmask 48128   ;;  %v7737_v43 = vrot.slane %v5530_v5, 1  ;;  %vm7744_vm6 = vcmp.ne.s16.totalorder %v5543_v26, 0  ;;  %v7848_v51 = vrot.slane %v5324_v7, 1 }
  0x99   :  { %1814 = vrot.lane.b32.xlu1 %v1783_v17, %s4594_s25  ;;  %v59_v17 = vadd.s32 216, %v4673_v12  ;;  %vm7748_vm15 = vcmask 171008   ;;  %v1346_v7 = vsel %vm7744_vm6, 0, %v5421_v40  ;;  %v2004_v22 = vsel %vm1999_vm4, %v967_v18, %v5326_v11 }
  0x9a   :  { %1862 = vrot.lane.b32.xlu0 %v1378_v62, %s4595_s26  ;;  %v1949_v62 = vsel %vm7755_vm13, %v7838_v45, %v1948_v37  ;;  %v54_v45 = vadd.s32 176, %v4673_v12  ;;  %v56_v37 = vadd.s32 192, %v4673_v12  ;;  %v5636_v11 = vsel %vm7743_vm9, 0, %v5485_v54 }
  0x9b   :  { %v257_v47 = vand.u32 15, %v59_v17  ;;  %v5534_v17 = vsel %vm7841_vm8, %v5328_v58, %v895_v36  ;;  %vm2085_vm8 = vcmask 72704   ;;  %v7853_v8 = vrot.slane %v5411_v52, 1 }
  0x9c   :  { %v5481_v48 = vpop.permute.xlu0 %1624  ;;  %vm7745_vm10 = vcmp.ne.s16.totalorder %v5534_v17, 0  ;;  %v222_v29 = vand.u32 15, %v54_v45 }
  0x9d   :  { %1864 = vrot.lane.b32.xlu1 %v1379_v49, %s4595_s26  ;;  %v1494_v49 = vshrl.u32 %v5421_v40, 16  ;;  %vm5548_vm11 = vcmp.eq.s32.totalorder %v257_v47, 15  ;;  %v7847_v47 = vmov 0  }
  0x9e   :  { %1897 = vrot.lane.b32.xlu0 %v5418_v61, %s4596_s29  ;;  %v1104_v25 = vsel %vm1072_vm7, 65537, %v7847_v47  ;;  %vm1074_vm3 = vmpackc.low %vm5548_vm11, %vm5548_vm11  ;;  %vm2190_vm7 = vcmask 146432  }
  0x9f   :  { %v5498_v10 = vpop.permute.xlu1 %1626  ;;  %v1496_v55 = vor.u32 %v1494_v49, %v1492_v16  ;;  %v1364_v16 = vsel %vm7743_vm9, 0, %v5421_v40  ;;  %v2001_v49 = vsel %vm1999_vm4, 0, %v5297_v56  ;;  %v1345_v56 = vsel %vm7745_vm10, 0, %v5346_v28 }
  0xa0   :  { %v5515_v59 = vpop.permute.xlu0 %1798  ;;  %v1784_v33 = vrot.slane %v1364_v16, 1  ;;  %v2052_v58 = vsel %vm2050_vm2, %v2001_v49, %v5464_v35 }
  0xa1   :  { %1899 = vrot.lane.b32.xlu1 %v5493_v9, %s4596_s29  ;;  %v5586_v45 = vsel %vm7729_vm1, %v1496_v55, %v5557_v15  ;;  %v1106_v55 = vsel %vm1074_vm3, 65537, %v7847_v47  ;;  %vm7747_vm1 = vcmask 195584  }
  0xa2   :  { %1979 = vrot.lane.b32.xlu0 %v1949_v62, %s4597_s11  ;;  %v1608_v62 = vrot.slane %v1328_v41, 1  ;;  %v4340_v35 = vcombine.low %v4682_v20, %v1106_v55  ;;  %v2087_v55 = vsel %vm2085_vm8, %v2052_v58, %v5414_v2 }
  0xa3   :  { %v5552_v0 = vpop.permute.xlu1 %1800 }
  0xa4   :  { %v5559_v36 = vpop.permute.xlu0 %1802  ;;  %v1609_v41 = vsel %vm7755_vm13, %v7848_v51, %v1608_v62  ;;  %v4339_v51 = vcombine.low %v4682_v20, %v1104_v25  ;;  %v1611_v28 = vsel %vm7755_vm13, %v1608_v62, %v7737_v43  ;;  %v236_v25 = vand.u32 15, %v56_v37 }
  0xa5   :  { %1555 = vrot.lane.b32.xlu1 %v5418_v61, %s4590_s17  ;;  %v5575_v61 = vrot.slane %v556_v34, 4  ;;  %v1502_v37 = vshrl.u32 %v5485_v54, 16  ;;  %v1280_v26 = vshll.u32 %v4340_v35, 16 }
  0xa6   :  { %1981 = vrot.lane.b32.xlu0 %v1951_v21, %s4597_s11  ;;  %v5591_v21 = vsel %vm7732_vm14, 0, %v5485_v54  ;;  %vm5613_vm14 = vcmp.eq.s32.totalorder %v222_v29, 0  ;;  %v2054_v29 = vsel %vm2050_vm2, %v2004_v22, %v5481_v48  ;;  %v5647_v48 = vsel %vm7744_vm6, 0, %v5485_v54 }
  0xa7   :  { %v5579_v4 = vpop.permute.xlu1 %1848  ;;  %v5626_v62 = vsel %vm7756_vm0, %v5461_v14, %v5575_v61  ;;  %v5642_v14 = vsel %vm7745_vm10, 0, %v5421_v40  ;;  %v1268_v22 = vshrl.u32 %v4339_v51, 16  ;;  %v1271_v49 = vshll.u32 %v4339_v51, 16  ;;  %vm717_vm3 = vmpackc.low %vm5613_vm14, %vm5613_vm14 }
  0xa8   :  { %v5593_v34 = vpop.permute.xlu0 %1850  ;;  %v1506_v43 = vshll.u32 %v5626_v62, 16  ;;  %vm5659_vm11 = vcmp.eq.s32.totalorder %v236_v25, 0  ;;  %v2089_v51 = vsel %vm2085_vm8, %v2054_v29, %v5434_v60  ;;  %v5676_v25 = vld [vmem:[%s7663_s0 + $0xd0] sm:$0xff]  ;;  %v5681_v60 = vld [vmem:[%s7663_s0 + $0xd8] sm:$0xff]  ;;  %v749_v58 = vsel %vm717_vm3, 65537, %v7847_v47 }
  0xa9   :  { %1557 = vrot.lane.b32.xlu1 %v5493_v9, %s4590_s17  ;;  %v2122_v29 = vsel %vm2120_vm12, %v2087_v55, %v5357_v30  ;;  %v1273_v40 = vrot.slane %v1271_v49, 4  ;;  %vm719_vm9 = vmpackc.low %vm5659_vm11, %vm5659_vm11  ;;  %v557_v30 = vpack.c.bf16 %v5681_v60, %v5676_v25  ;;  %vm7746_vm14 = vcmask 220160  }
  0xaa   :  { %1640 = vrot.lane.b32.xlu0 %v1609_v41, %s4593_s20  ;;  %v2007_v41 = vsel %vm1999_vm4, %v5523_v23, %v5312_v6  ;;  %v1785_v6 = vsel %vm7755_vm13, %v7853_v8, %v1784_v33  ;;  %v7854_v23 = vrot.slane %v5591_v21, 1  ;;  %v5704_v44 = vrot.slane %v1506_v43, 1 }
  0xab   :  { %v5630_v16 = vpop.permute.xlu1 %1852  ;;  %v2056_v52 = vsel %vm2050_vm2, %v2007_v41, %v5498_v10  ;;  %v2124_v10 = vsel %vm2120_vm12, %v2089_v51, %v5382_v39  ;;  %v4322_v39 = vcombine.low %v749_v58, %v4682_v20  ;;  %v1282_v55 = vrot.slane %v1280_v26, 4 }
  0xac   :  { %v1884_v18 = vpop.permute.xlu0 %1883  ;;  %v1787_v2 = vsel %vm7755_vm13, %v1784_v33, %v7854_v23  ;;  %v1277_v33 = vshrl.u32 %v4340_v35, 16  ;;  %v2159_v35 = vsel %vm2155_vm5, %v2124_v10, %v5552_v0  ;;  %v751_v0 = vsel %vm719_vm9, 65537, %v7847_v47 }
  0xad   :  { %1642 = vrot.lane.b32.xlu1 %v1611_v28, %s4593_s20  ;;  %v1270_v28 = vrot.slane %v1268_v22, 3  ;;  %vm7855_vm9 = vsmask.f32 4352  ;;  %vm7856_vm3 = vcmp.ne.s16.totalorder %v5479_v1, 0  ;;  %vm7868_vm10 = vsmask.f32 3328 }
  0xae   :  { %1691 = vrot.lane.b32.xlu0 %v1345_v56, %s4592_s19  ;;  %v5686_v56 = vor.u32 %v1502_v37, %v5557_v15  ;;  %v2157_v15 = vsel %vm2155_vm5, %v2122_v29, %v5515_v59  ;;  %v2091_v37 = vsel %vm2085_vm8, %v2056_v52, %v5444_v19  ;;  %v2194_v59 = vsel %vm2190_vm7, %v2159_v35, %v5593_v34  ;;  %vm7857_vm11 = vmmov %vm7855_vm9 }
  0xaf   :  { %v1886_v8 = vpop.permute.xlu1 %1885  ;;  %v2192_v22 = vsel %vm2190_vm7, %v2157_v15, %v5579_v4  ;;  %v1279_v49 = vrot.slane %v1277_v33, 3  ;;  %v1274_v41 = vor.u32 %v1273_v40, %v1270_v28  ;;  %v2126_v34 = vsel %vm2120_vm12, %v2091_v37, %v5400_v57 }
  0xb0   :  { %v1888_v23 = vpop.permute.xlu0 %1887  ;;  %v2227_v43 = vsel %vm7748_vm15, %v2192_v22, %v1884_v18  ;;  %v2229_v19 = vsel %vm7748_vm15, %v2194_v59, %v1886_v8  ;;  %v2161_v42 = vsel %vm2155_vm5, %v2126_v34, %v5559_v36  ;;  %v4323_v40 = vcombine.low %v751_v0, %v4682_v20 }
  0xb1   :  { %1693 = vrot.lane.b32.xlu1 %v1346_v7, %s4592_s19  ;;  %v2196_v26 = vsel %vm2190_vm7, %v2161_v42, %v5630_v16  ;;  %v61_v29 = vadd.s32 232, %v4673_v12  ;;  %v907_v35 = vshrl.u32 %v4322_v39, 16  ;;  %v5749_v16 = vor.u32 %v1282_v55, %v1279_v49 }
  0xb2   :  { %1732 = vrot.lane.b32.xlu0 %v5493_v9, %s4591_s18  ;;  %v2231_v15 = vsel %vm7748_vm15, %v2196_v26, %v1888_v23  ;;  %v910_v59 = vshll.u32 %v4322_v39, 16  ;;  %vm7875_vm15 = vsmask.f32 7424 }
  0xb3   :  { %v1966_v7 = vpop.permute.xlu1 %1965 }
  0xb4   :  { %v2262_v9 = vsel %vm7747_vm1, %v2227_v43, %v1966_v7  ;;  %v1968_v4 = vpop.permute.xlu0 %1967 }
  0xb5   :  { %v2306_v18 = vshrl.u32 %v2262_v9, 16  ;;  %v2309_v51 = vshll.u32 %v2262_v9, 16  ;;  %v2264_v52 = vsel %vm7747_vm1, %v2229_v19, %v1968_v4  ;;  %1734 = vrot.lane.b32.xlu1 %v5586_v45, %s4591_s18  ;;  %v916_v9 = vshrl.u32 %v4323_v40, 16 }
  0xb6   :  { %v2313_v33 = vshrl.u32 %v2264_v52, 16  ;;  %v2316_v8 = vshll.u32 %v2264_v52, 16  ;;  %1816 = vrot.lane.b32.xlu0 %v1785_v6, %s4594_s25  ;;  %v5747_v6 = vsel %vm7855_vm9, %v5452_v3, %v1274_v41  ;;  %v919_v3 = vshll.u32 %v4323_v40, 16 }
  0xb7   :  { %v2308_v57 = vrot.slane %v2306_v18, 3  ;;  %v2311_v28 = vrot.slane %v2309_v51, 4  ;;  %v5739_v58 = vpop.permute.xlu1 %1543  ;;  %v271_v4 = vand.u32 15, %v61_v29  ;;  %vm7750_vm9 = vcmp.ne.s16.totalorder %v5747_v6, 0 }
  0xb8   :  { %v2315_v10 = vrot.slane %v2313_v33, 3  ;;  %v2318_v37 = vrot.slane %v2316_v8, 4  ;;  %v1970_v36 = vpop.permute.xlu0 %1969  ;;  %v909_v51 = vrot.slane %v907_v35, 4  ;;  %v912_v52 = vrot.slane %v910_v59, 5 }
  0xb9   :  { %v2266_v22 = vsel %vm7747_vm1, %v2231_v15, %v1970_v36  ;;  %1818 = vrot.lane.b32.xlu1 %v1787_v2, %s4594_s25  ;;  %v2312_v23 = vor.u32 %v2311_v28, %v2308_v57  ;;  %v5758_v2 = vsel %vm7856_vm3, 0, %v5626_v62  ;;  %vm7858_vm3 = vmmov %vm7857_vm11  ;;  %v7861_v8 = vrot.slane %v5469_v38, 1 }
  0xba   :  { %v2321_v43 = vshrl.u32 %v2266_v22, 16  ;;  %v2324_v7 = vshll.u32 %v2266_v22, 16  ;;  %1866 = vrot.lane.b32.xlu0 %v5642_v14, %s4595_s26  ;;  %v2319_v0 = vor.u32 %v2318_v37, %v2315_v10  ;;  %v63_v14 = vadd.s32 248, %v4673_v12 }
  0xbb   :  { %v5753_v19 = vpop.permute.xlu1 %1545  ;;  %v5770_v18 = vsel %vm7858_vm3, %v1274_v41, %v5749_v16  ;;  %v5789_v41 = vrot.slane %v557_v30, 4  ;;  %v1954_v57 = vrot.slane %v5758_v2, 1  ;;  %v918_v28 = vrot.slane %v916_v9, 4 }
  0xbc   :  { %v2323_v49 = vrot.slane %v2321_v43, 3  ;;  %v2326_v55 = vrot.slane %v2324_v7, 4  ;;  %v5760_v39 = vpop.permute.xlu0 %1628  ;;  %v2320_v34 = vsel %vm7857_vm11, %v2312_v23, %v2319_v0  ;;  %vm7859_vm11 = vsmask.f32 7424 }
  0xbd   :  { %1868 = vrot.lane.b32.xlu1 %v5647_v48, %s4595_s26  ;;  %4453 = vmatprep.mubr.msk.bf16.mxu0 %vm7746_vm14, %v2320_v34  ;;  %v5779_v33 = vsel %vm7859_vm11, %v5686_v56, %v5704_v44  ;;  %v7860_v48 = vrot.slane %v5636_v11, 1  ;;  %v921_v29 = vrot.slane %v919_v3, 5  ;;  %vm5794_vm3 = vcmp.eq.s32.totalorder %v271_v4, 15  ;;  %v541_v11 = vld [vmem:[%s7663_s0 + $0xe8] sm:$0xff] }
  0xbe   :  { %v5772_v42 = vor.u32 %v2326_v55, %v2323_v49  ;;  %1901 = vrot.lane.b32.xlu0 %v5586_v45, %s4596_s29  ;;  %vm7864_vm11 = vsmask.f32 4352  ;;  %v1330_v25 = vsel %vm7750_vm9, 0, %v5485_v54  ;;  %vm7749_vm6 = vcmp.ne.s16.totalorder %v5770_v18, 0 }
  0xbf   :  { %v1953_v40 = vsel %vm7755_vm13, %v7861_v8, %v7860_v48  ;;  %v5791_v26 = vpop.permute.xlu1 %1630  ;;  %v285_v60 = vand.u32 15, %v63_v14  ;;  %v913_v30 = vor.u32 %v912_v52, %v909_v51  ;;  %v58_v10 = vadd.s32 208, %v4673_v12 }
  0xc0   :  { %v5798_v15 = vpop.permute.xlu0 %1679  ;;  %v2328_v38 = vsel %vm7864_vm11, %v2319_v0, %v5772_v42  ;;  %v5814_v37 = vsel %vm7756_vm0, %v5575_v61, %v5789_v41  ;;  %vm1076_vm11 = vmpackc.low %vm5794_vm3, %vm5794_vm3  ;;  %v7865_v35 = vmov %v7860_v48  ;;  %v1612_v59 = vrot.slane %v1330_v25, 1  ;;  %v540_v0 = vld [vmem:[%s7663_s0 + $0xe0] sm:$0xff] }
  0xc1   :  { %1903 = vrot.lane.b32.xlu1 %v5779_v33, %s4596_s29  ;;  %4454 = vmatmul.mubr.msk.bf16.vlgmr.msra.gmra.mrb[0].mxu0 %vm7746_vm14, %v2328_v38  ;;  %v1955_v22 = vsel %vm7755_vm13, %v7865_v35, %v1954_v57  ;;  %v5829_v43 = vsel %vm7749_vm6, 0, %v5626_v62  ;;  %v5831_v7 = vor.u32 %v921_v29, %v918_v28  ;;  %v1510_v23 = vshrl.u32 %v5626_v62, 16 }
  0xc2   :  { %1983 = vrot.lane.b32.xlu0 %v1953_v40, %s4597_s11  ;;  %vm5840_vm3 = vcmp.eq.s32.totalorder %v285_v60, 15  ;;  %v5848_v3 = vsel %vm7868_vm10, %v5496_v63, %v913_v30  ;;  %v1514_v4 = vshll.u32 %v5814_v37, 16  ;;  %v1108_v49 = vsel %vm1076_vm11, 65537, %v7847_v47 }
  0xc3   :  { %v5819_v36 = vpop.permute.xlu1 %1681  ;;  %v250_v55 = vand.u32 15, %v58_v10  ;;  %v1614_v34 = vrot.slane %v5829_v43, 1  ;;  %v60_v14 = vadd.s32 224, %v4673_v12  ;;  %v7869_v52 = vrot.slane %v5530_v5, 1  ;;  %vm1078_vm10 = vmpackc.low %vm5840_vm3, %vm5840_vm3 }
  0xc4   :  { %v1721_v61 = vpop.permute.xlu0 %1720  ;;  %v558_v48 = vpack.c.bf16 %v541_v11, %v540_v0  ;;  %vm961_vm11 = vcmp.ne.s16.totalorder %v5848_v3, 0  ;;  %vm7870_vm14 = vsmask.f32 3328  ;;  %v4341_v40 = vcombine.low %v4682_v20, %v1108_v49 }
  0xc5   :  { %1559 = vrot.lane.b32.xlu1 %v5586_v45, %s4590_s17  ;;  %v1613_v45 = vsel %vm7755_vm13, %v7869_v52, %v1612_v59  ;;  %v5866_v8 = vsel %vm7870_vm14, %v913_v30, %v5831_v7  ;;  %v1512_v5 = vor.u32 %v1510_v23, %v5704_v44  ;;  %v5872_v28 = vrot.slane %v1514_v4, 1 }
  0xc6   :  { %1985 = vrot.lane.b32.xlu0 %v1955_v22, %s4597_s11  ;;  %vm5874_vm1 = vcmp.eq.s32.totalorder %v250_v55, 0  ;;  %vm7873_vm3 = vcmp.ne.s16.totalorder %v4967_v13, 0  ;;  %v1615_v38 = vsel %vm7755_vm13, %v1612_v59, %v1614_v34  ;;  %v1110_v25 = vsel %vm1078_vm10, 65537, %v7847_v47 }
  0xc7   :  { %v5855_v51 = vpop.permute.xlu1 %1722  ;;  %v969_v56 = vsel %vm7873_vm3, 0, %v4696_v27  ;;  %v264_v60 = vand.u32 15, %v60_v14  ;;  %v1347_v30 = vsel %vm961_vm11, 0, %v5485_v54  ;;  %vm7751_vm14 = vcmp.ne.s16.totalorder %v5866_v8, 0  ;;  %vm721_vm10 = vmpackc.low %vm5874_vm1, %vm5874_vm1 }
  0xc8   :  { %v1805_v63 = vpop.permute.xlu0 %1804  ;;  %v1366_v27 = vsel %vm7750_vm9, 0, %v5626_v62  ;;  %v5893_v10 = vrot.slane %v558_v48, 4  ;;  %v1286_v22 = vshrl.u32 %v4341_v40, 16  ;;  %v1289_v23 = vshll.u32 %v4341_v40, 16 }
  0xc9   :  { %1561 = vrot.lane.b32.xlu1 %v5779_v33, %s4590_s17  ;;  %vm7874_vm3 = vcmp.ne.s16.totalorder %v4986_v31, 0  ;;  %v5904_v0 = vsel %vm7875_vm15, %v1512_v5, %v5872_v28  ;;  %v1518_v11 = vshrl.u32 %v5814_v37, 16  ;;  %v4342_v9 = vcombine.low %v4682_v20, %v1110_v25 }
  0xca   :  { %1644 = vrot.lane.b32.xlu0 %v1613_v45, %s4593_s20  ;;  %v970_v59 = vsel %vm7874_vm3, 0, %v4704_v32  ;;  %v2010_v4 = vsel %vm1999_vm4, %v969_v56, %v5739_v58  ;;  %v1348_v49 = vsel %vm7751_vm14, 0, %v5626_v62  ;;  %v1788_v32 = vrot.slane %v1366_v27, 1 }
  0xcb   :  { %v1807_v44 = vpop.permute.xlu1 %1806  ;;  %vm5914_vm1 = vcmp.eq.s32.totalorder %v264_v60, 0  ;;  %v2058_v14 = vsel %vm2050_vm2, %v2010_v4, %v5760_v39  ;;  %v5923_v45 = vsel %vm7749_vm6, 0, %v5814_v37  ;;  %v5928_v58 = vsel %vm7756_vm0, %v5789_v41, %v5893_v10 }
  0xcc   :  { %v1855_v35 = vpop.permute.xlu0 %1854  ;;  %v753_v48 = vsel %vm721_vm10, 65537, %v7847_v47  ;;  %v2013_v40 = vsel %vm1999_vm4, %v970_v59, %v5753_v19  ;;  %v2093_v5 = vsel %vm2085_vm8, %v2058_v14, %v5798_v15  ;;  %v1288_v29 = vrot.slane %v1286_v22, 3  ;;  %vm723_vm15 = vmpackc.low %vm5914_vm1, %vm5914_vm1 }
  0xcd   :  { %1646 = vrot.lane.b32.xlu1 %v1615_v38, %s4593_s20  ;;  %v1291_v56 = vrot.slane %v1289_v23, 4  ;;  %v2128_v38 = vsel %vm2120_vm12, %v2093_v5, %v1721_v61  ;;  %v1382_v41 = vsel %vm961_vm11, 0, %v5626_v62  ;;  %v1295_v25 = vshrl.u32 %v4342_v9, 16 }
  0xce   :  { %1695 = vrot.lane.b32.xlu0 %v1347_v30, %s4592_s19  ;;  %v1298_v60 = vshll.u32 %v4342_v9, 16  ;;  %v2163_v19 = vsel %vm2155_vm5, %v2128_v38, %v1805_v63  ;;  %v7878_v15 = vrot.slane %v5591_v21, 1  ;;  %v1790_v30 = vrot.slane %v5923_v45, 1 }
  0xcf   :  { %v1857_v52 = vpop.permute.xlu1 %1856  ;;  %v1383_v27 = vsel %vm7751_vm14, 0, %v5814_v37  ;;  %v2060_v22 = vsel %vm2050_vm2, %v2013_v40, %v5791_v26  ;;  %v2198_v23 = vsel %vm2190_vm7, %v2163_v19, %v1855_v35  ;;  %v1522_v63 = vshll.u32 %v5928_v58, 16 }
  0xd0   :  { %v1890_v39 = vpop.permute.xlu0 %1889  ;;  %v1789_v61 = vsel %vm7755_vm13, %v7878_v15, %v1788_v32  ;;  %v2095_v21 = vsel %vm2085_vm8, %v2060_v22, %v5819_v36  ;;  %vm7879_vm10 = vcmask 171008   ;;  %v755_v55 = vsel %vm723_vm15, 65537, %v7847_v47 }
  0xd1   :  { %1697 = vrot.lane.b32.xlu1 %v1348_v49, %s4592_s19  ;;  %v2233_v9 = vsel %vm7879_vm10, %v2198_v23, %v1890_v39  ;;  %v1292_v49 = vor.u32 %v1291_v56, %v1288_v29  ;;  %v2130_v14 = vsel %vm2120_vm12, %v2095_v21, %v5855_v51  ;;  %vm7880_vm3 = vcmask 195584   ;;  %vm7881_vm1 = vmmov %vm7879_vm10 }
  0xd2   :  { %1736 = vrot.lane.b32.xlu0 %v5779_v33, %s4591_s18  ;;  %v4324_v33 = vcombine.low %v753_v48, %v4682_v20  ;;  %v1297_v35 = vrot.slane %v1295_v25, 3  ;;  %v1300_v40 = vrot.slane %v1298_v60, 4  ;;  %v2165_v48 = vsel %vm2155_vm5, %v2130_v14, %v1807_v44  ;;  %vm7883_vm10 = vmmov %vm7880_vm3 }
  0xd3   :  { %v1892_v59 = vpop.permute.xlu1 %1891  ;;  %v1791_v39 = vsel %vm7755_vm13, %v1788_v32, %v1790_v30  ;;  %v2200_v29 = vsel %vm2190_vm7, %v2165_v48, %v1857_v52  ;;  %v1520_v56 = vor.u32 %v1518_v11, %v5872_v28  ;;  %v1399_v38 = vsel %vm7750_vm9, 0, %v5814_v37 }
  0xd4   :  { %v1972_v4 = vpop.permute.xlu0 %1971  ;;  %v4325_v44 = vcombine.low %v755_v55, %v4682_v20  ;;  %v2235_v25 = vsel %vm7881_vm1, %v2200_v29, %v1892_v59  ;;  %vm7882_vm15 = vsmask.f32 4352  ;;  %v5987_v28 = vor.u32 %v1300_v40, %v1297_v35  ;;  %v542_v35 = vld [vmem:[%s7663_s0 + $0xf0] sm:$0xff]  ;;  %v543_v40 = vld [vmem:[%s7663_s0 + $0xf8] sm:$0xff]  ;;  %s4303_s0 = sshll.u32 %s4608_s27, 4  ;;  %s4304_s0 = int_to_ptr.vmem [resolvable:$true] %s4303_s0 }
  0xd5   :  { %v2268_v26 = vsel %vm7880_vm3, %v2233_v9, %v1972_v4  ;;  %1738 = vrot.lane.b32.xlu1 %v5904_v0, %s4591_s18  ;;  %v5983_v32 = vsel %vm7882_vm15, %v5749_v16, %v1292_v49  ;;  %v925_v11 = vshrl.u32 %v4324_v33, 16  ;;  %v5990_v59 = vrot.slane %v1522_v63, 1  ;;  %vm7884_vm1 = vmmov %vm7882_vm15  ;;  %p4569_p1 = scmp.lt.s32.totalorder %s4304_s0, %s4304_s0 }
  0xd6   :  { %v2329_v5 = vshrl.u32 %v2268_v26, 16  ;;  %v2332_v36 = vshll.u32 %v2268_v26, 16  ;;  %1820 = vrot.lane.b32.xlu0 %v1789_v61, %s4594_s25  ;;  %v928_v61 = vshll.u32 %v4324_v33, 16  ;;  %v1956_v4 = vrot.slane %v1399_v38, 1 }
  0xd7   :  { %v5973_v51 = vpop.permute.xlu1 %1547  ;;  %v5997_v16 = vsel %vm7749_vm6, 0, %v5928_v58  ;;  %vm7752_vm3 = vcmp.ne.s16.totalorder %v5983_v32, 0  ;;  %v934_v55 = vshrl.u32 %v4325_v44, 16  ;;  %v937_v63 = vshll.u32 %v4325_v44, 16 }
  0xd8   :  { %v2331_v60 = vrot.slane %v2329_v5, 3  ;;  %v2334_v19 = vrot.slane %v2332_v36, 4  ;;  %v1974_v15 = vpop.permute.xlu0 %1973  ;;  %vm7885_vm15 = vcmask 220160   ;;  %v927_v5 = vrot.slane %v925_v11, 4 }
  0xd9   :  { %v2270_v52 = vsel %vm7883_vm10, %v2235_v25, %v1974_v15  ;;  %1822 = vrot.lane.b32.xlu1 %v1791_v39, %s4594_s25  ;;  %vm7886_vm10 = vmmov %vm7884_vm1  ;;  %v930_v36 = vrot.slane %v928_v61, 5  ;;  %v1332_v38 = vsel %vm7752_vm3, 0, %v5814_v37  ;;  %v559_v44 = vpack.c.bf16 %v543_v40, %v542_v35 }
  0xda   :  { %v2335_v22 = vor.u32 %v2334_v19, %v2331_v60  ;;  %v2337_v23 = vshrl.u32 %v2270_v52, 16  ;;  %v2340_v21 = vshll.u32 %v2270_v52, 16  ;;  %1870 = vrot.lane.b32.xlu0 %v1382_v41, %s4595_s26  ;;  %v6014_v48 = vsel %vm7886_vm10, %v1292_v49, %v5987_v28 }
  0xdb   :  { %v5992_v9 = vpop.permute.xlu1 %1549  ;;  %v1958_v49 = vrot.slane %v5997_v16, 1  ;;  %v939_v19 = vrot.slane %v937_v63, 5  ;;  %v931_v2 = vor.u32 %v930_v36, %v927_v5  ;;  %v1616_v52 = vrot.slane %v1332_v38, 1 }
  0xdc   :  { %v2339_v14 = vrot.slane %v2337_v23, 3  ;;  %v2342_v33 = vrot.slane %v2340_v21, 4  ;;  %v6000_v26 = vpop.permute.xlu0 %1632  ;;  %v2336_v41 = vsel %vm7884_vm1, %v5772_v42, %v2335_v22  ;;  %vm7887_vm1 = vsmask.f32 7424 }
  0xdd   :  { %1872 = vrot.lane.b32.xlu1 %v1383_v27, %s4595_s26  ;;  %4457 = vmatprep.mubr.msk.bf16.mxu0 %vm7885_vm15, %v2336_v41  ;;  %v6022_v39 = vsel %vm7887_vm1, %v1520_v56, %v5990_v59  ;;  %v1957_v27 = vsel %vm7755_vm13, %v1954_v57, %v1956_v4  ;;  %vm7888_vm15 = vmmov %vm7886_vm10  ;;  %vm7753_vm10 = vcmp.ne.s16.totalorder %v6014_v48, 0  ;;  %v936_v56 = vrot.slane %v934_v55, 4 }
  0xde   :  { %v6016_v42 = vor.u32 %v2342_v33, %v2339_v14  ;;  %1905 = vrot.lane.b32.xlu0 %v5904_v0, %s4596_s29  ;;  %vm7889_vm1 = vcmask 220160   ;;  %v1959_v15 = vsel %vm7755_vm13, %v1956_v4, %v1958_v49  ;;  %v6046_v11 = vsel %vm7753_vm10, 0, %v5928_v58 }
  0xdf   :  { %v6024_v29 = vpop.permute.xlu1 %1634  ;;  %v606_v61 = vrot.slane %v559_v44, 4  ;;  %v6048_v23 = vor.u32 %v939_v19, %v936_v56  ;;  %v62_v21 = vadd.s32 240, %v4673_v12  ;;  %v1618_v4 = vrot.slane %v6046_v11, 1 }
  0xe0   :  { %v1684_v25 = vpop.permute.xlu0 %1683  ;;  %v2344_v60 = vsel %vm7888_vm15, %v2335_v22, %v6016_v42  ;;  %vm7890_vm15 = vsmask.f32 3328  ;;  %v1617_v33 = vsel %vm7755_vm13, %v1614_v34, %v1616_v52  ;;  %v1526_v34 = vshrl.u32 %v5928_v58, 16 }
  0xe1   :  { %1907 = vrot.lane.b32.xlu1 %v6022_v39, %s4596_s29  ;;  %4458 = vmatmul.mubr.msk.bf16.gmra.mrb[4].mxu0 %vm7889_vm1, %v2344_v60  ;;  %v6055_v55 = vsel %vm7890_vm15, %v5831_v7, %v931_v2  ;;  %v6064_v41 = vsel %vm7756_vm0, %v5893_v10, %v606_v61  ;;  %vm7891_vm6 = vmmov %vm7890_vm15  ;;  %v1619_v43 = vsel %vm7755_vm13, %v1616_v52, %v1618_v4  ;;  %vm7893_vm15 = vcmp.ne.s16.totalorder %v5146_v50, 0 }
  0xe2   :  { %1987 = vrot.lane.b32.xlu0 %v1957_v27, %s4597_s11  ;;  %vm963_vm1 = vcmp.ne.s16.totalorder %v6055_v55, 0  ;;  %v6069_v7 = vsel %vm7891_vm6, %v931_v2, %v6048_v23  ;;  %v1530_v10 = vshll.u32 %v6064_v41, 16  ;;  %v971_v63 = vsel %vm7893_vm15, 0, %v4858_v46 }
  0xe3   :  { %v1686_v57 = vpop.permute.xlu1 %1685  ;;  %7892 = vst [vmem:[#allocation30_spill] sm:$0xff] %v6069_v7  ;;  %v1349_v40 = vsel %vm963_vm1, 0, %v5814_v37  ;;  %vm964_vm6 = vcmp.ne.s16.totalorder %v6069_v7, 0  ;;  %v1368_v36 = vsel %vm7752_vm3, 0, %v5928_v58  ;;  %vm7896_vm14 = vcmp.ne.s16.totalorder %v5165_v53, 0 }
  0xe4   :  { %v1725_v22 = vpop.permute.xlu0 %1724  ;;  %v972_v46 = vsel %vm7896_vm14, 0, %v4973_v24  ;;  %v2016_v38 = vsel %vm1999_vm4, %v971_v63, %v5973_v51  ;;  %v1350_v44 = vsel %vm964_vm6, 0, %v5928_v58  ;;  %v1528_v60 = vor.u32 %v1526_v34, %v5990_v59 }
  0xe5   :  { %1563 = vrot.lane.b32.xlu1 %v5904_v0, %s4590_s17  ;;  %v278_v0 = vand.u32 15, %v62_v21  ;;  %v1532_v56 = vrot.slane %v1530_v10, 1  ;;  %v2062_v19 = vsel %vm2050_vm2, %v2016_v38, %v6000_v26  ;;  %v6109_v24 = vsel %vm7753_vm10, 0, %v6064_v41 }
  0xe6   :  { %1989 = vrot.lane.b32.xlu0 %v1959_v15, %s4597_s11  ;;  %v1792_v15 = vrot.slane %v1368_v36, 1  ;;  %v2019_v51 = vsel %vm1999_vm4, %v972_v46, %v5992_v9  ;;  %v2097_v59 = vsel %vm2085_vm8, %v2062_v19, %v1684_v25  ;;  %v6120_v26 = vsel %vm7756_vm0, %v606_v61, 0 }
  0xe7   :  { %v1727_v14 = vpop.permute.xlu1 %1726  ;;  %vm6089_vm9 = vcmp.eq.s32.totalorder %v278_v0, 0  ;;  %v2132_v21 = vsel %vm2120_vm12, %v2097_v59, %v1725_v22  ;;  %vm7897_vm15 = vsmask.f32 7424  ;;  %v1794_v9 = vrot.slane %v6109_v24, 1 }
  0xe8   :  { %v1809_v12 = vpop.permute.xlu0 %1808  ;;  %vm725_vm14 = vmpackc.low %vm6089_vm9, %vm6089_vm9  ;;  %v6126_v0 = vsel %vm7897_vm15, %v1528_v60, %v1532_v56  ;;  %v2064_v22 = vsel %vm2050_vm2, %v2019_v51, %v6024_v29  ;;  %v1793_v61 = vsel %vm7755_vm13, %v1790_v30, %v1792_v15  ;;  %vm7898_vm9 = vcmask 171008  }
  0xe9   :  { %1565 = vrot.lane.b32.xlu1 %v6022_v39, %s4590_s17  ;;  %v757_v25 = vsel %vm725_vm14, 65537, %v7847_v47  ;;  %v1534_v63 = vshrl.u32 %v6064_v41, 16  ;;  %vm7899_vm14 = vcmask 195584   ;;  %v1707_v29 = vshll.u32 %v6120_v26, 16  ;;  %vm7900_vm15 = vmmov %vm7898_vm9 }
  0xea   :  { %1648 = vrot.lane.b32.xlu0 %v1617_v33, %s4593_s20  ;;  %v2167_v33 = vsel %vm2155_vm5, %v2132_v21, %v1809_v12  ;;  %v2099_v12 = vsel %vm2085_vm8, %v2064_v22, %v1686_v57  ;;  %v4326_v45 = vcombine.low %v757_v25, %v4682_v20  ;;  %v1795_v27 = vsel %vm7755_vm13, %v1792_v15, %v1794_v9 }
  0xeb   :  { %v1811_v35 = vpop.permute.xlu1 %1810  ;;  %v1384_v38 = vsel %vm963_vm1, 0, %v5928_v58  ;;  %v1401_v20 = vsel %vm7752_vm3, 0, %v6064_v41  ;;  %v1385_v15 = vsel %vm964_vm6, 0, %v6064_v41  ;;  %v1536_v51 = vor.u32 %v1534_v63, %v1532_v56 }
  0xec   :  { %v1859_v5 = vpop.permute.xlu0 %1858  ;;  %v943_v59 = vshrl.u32 %v4326_v45, 16  ;;  %v1709_v22 = vrot.slane %v1707_v29, 1  ;;  %v6171_v56 = vsel %vm7753_vm10, 0, %v6120_v26  ;;  %vm7904_vm3 = vsmask.f32 7424 }
  0xed   :  { %1650 = vrot.lane.b32.xlu1 %v1619_v43, %s4593_s20  ;;  %v2202_v43 = vsel %vm2190_vm7, %v2167_v33, %v1859_v5 }
  0xee   :  { %1699 = vrot.lane.b32.xlu0 %v1349_v40, %s4592_s19  ;;  %v2134_v40 = vsel %vm2120_vm12, %v2099_v12, %v1727_v14  ;;  %v945_v63 = vrot.slane %v943_v59, 4 }
  0xef   :  { %v1861_v2 = vpop.permute.xlu1 %1860  ;;  %v2169_v30 = vsel %vm2155_vm5, %v2134_v40, %v1811_v35 }
  0xf0   :  { %v1894_v52 = vpop.permute.xlu0 %1893  ;;  %v2204_v14 = vsel %vm2190_vm7, %v2169_v30, %v1861_v2  ;;  %v1962_v30 = vrot.slane %v6171_v56, 1  ;;  %v7922_v56 = vld [vmem:[#allocation21_spill] sm:$0xff] }
  0xf1   :  { %1701 = vrot.lane.b32.xlu1 %v1350_v44, %s4592_s19 }
  0xf2   :  { %1740 = vrot.lane.b32.xlu0 %v6022_v39, %s4591_s18  ;;  %v2237_v39 = vsel %vm7898_vm9, %v2202_v43, %v1894_v52  ;;  %vm7901_vm9 = vmmov %vm7899_vm14  ;;  %v946_v52 = vshll.u32 %v4326_v45, 16 }
  0xf3   :  { %v1896_v34 = vpop.permute.xlu1 %1895 }
  0xf4   :  { %v1976_v10 = vpop.permute.xlu0 %1975  ;;  %v2239_v35 = vsel %vm7900_vm15, %v2204_v14, %v1896_v34  ;;  %v1960_v34 = vrot.slane %v1401_v20, 1  ;;  %vm7903_vm15 = vcmask 220160   ;;  %v948_v40 = vrot.slane %v946_v52, 5  ;;  %v7911_v52 = vld [vmem:[#allocation19_spill] sm:$0xff] }
  0xf5   :  { %v2272_v36 = vsel %vm7899_vm14, %v2237_v39, %v1976_v10  ;;  %1742 = vrot.lane.b32.xlu1 %v6126_v0, %s4591_s18  ;;  %vm7902_vm14 = vsmask.f32 4352 }
  0xf6   :  { %v2345_v5 = vshrl.u32 %v2272_v36, 16  ;;  %v2348_v57 = vshll.u32 %v2272_v36, 16  ;;  %1824 = vrot.lane.b32.xlu0 %v1793_v61, %s4594_s25  ;;  %v1961_v45 = vsel %vm7755_vm13, %v1958_v49, %v1960_v34  ;;  %v6192_v14 = vor.u32 %v948_v40, %v945_v63 }
  0xf7   :  { %v6151_v46 = vpop.permute.xlu1 %1551  ;;  %v1963_v49 = vsel %vm7755_vm13, %v1960_v34, %v1962_v30 }
  0xf8   :  { %v2347_v44 = vrot.slane %v2345_v5, 3  ;;  %v2350_v60 = vrot.slane %v2348_v57, 4  ;;  %v1978_v19 = vpop.permute.xlu0 %1977  ;;  %7905 = vst [vmem:[#allocation31_spill] sm:$0xff] %v6192_v14 }
  0xf9   :  { %v2274_v2 = vsel %vm7901_vm9, %v2239_v35, %v1978_v19  ;;  %1826 = vrot.lane.b32.xlu1 %v1795_v27, %s4594_s25  ;;  %vm7754_vm9 = vcmp.ne.s16.totalorder %v5987_v28, 0 }
  0xfa   :  { %v2351_v21 = vor.u32 %v2350_v60, %v2347_v44  ;;  %v2353_v33 = vshrl.u32 %v2274_v2, 16  ;;  %v2356_v25 = vshll.u32 %v2274_v2, 16  ;;  %1874 = vrot.lane.b32.xlu0 %v1384_v38, %s4595_s26  ;;  %v1334_v27 = vsel %vm7754_vm9, 0, %v6064_v41 }
  0xfb   :  { %v1554_v43 = vpop.permute.xlu1 %1553  ;;  %v1620_v38 = vrot.slane %v1334_v27, 1 }
  0xfc   :  { %v2355_v61 = vrot.slane %v2353_v33, 3  ;;  %v2358_v12 = vrot.slane %v2356_v25, 4  ;;  %v1637_v39 = vpop.permute.xlu0 %1636  ;;  %v2352_v10 = vsel %vm7902_vm14, %v6016_v42, %v2351_v21  ;;  %v1710_v42 = vsel %vm7904_vm3, %v1536_v51, %v1709_v22 }
  0xfd   :  { %1876 = vrot.lane.b32.xlu1 %v1385_v15, %s4595_s26  ;;  %4461 = vmatprep.mubr.msk.bf16.mxu0 %vm7903_vm15, %v2352_v10  ;;  %vm7906_vm3 = vsmask.f32 3328  ;;  %v1621_v60 = vsel %vm7755_vm13, %v1618_v4, %v1620_v38  ;;  %v7909_v15 = vld [vmem:[#allocation24_spill] sm:$0xff]  ;;  %v1370_v4 = vsel %vm7754_vm9, 0, %v6120_v26  ;;  %v1711_v33 = vshrl.u32 %v6120_v26, 16 }
  0xfe   :  { %v6176_v36 = vor.u32 %v2358_v12, %v2355_v61  ;;  %1909 = vrot.lane.b32.xlu0 %v6126_v0, %s4596_s29  ;;  %v6203_v35 = vsel %vm7906_vm3, %v6048_v23, %v6192_v14  ;;  %vm7779_vm3 = vcmp.ne.s16.totalorder %v6192_v14, 0  ;;  %v1796_v10 = vrot.slane %v1370_v4, 1 }
  0xff   :  { %v1639_v29 = vpop.permute.xlu1 %1638  ;;  %7907 = vst [vmem:[#allocation32_spill] sm:$0xff] %v6203_v35  ;;  %v1352_v34 = vsel %vm7779_vm3, 0, %v6120_v26  ;;  %vm7917_vm9 = vsmask.f32 7424 }
 0x100   :  { %v1688_v5 = vpop.permute.xlu0 %1687  ;;  %v2360_v57 = vsel %vm7902_vm14, %v2351_v21, %v6176_v36  ;;  %vm7780_vm14 = vcmp.ne.s16.totalorder %v6203_v35, 0 }
 0x101   :  { %1911 = vrot.lane.b32.xlu1 %v1710_v42, %s4596_s29  ;;  %4462 = vmatmul.mubr.msk.bf16.gmra.mrb[8].mxu0 %vm7903_vm15, %v2360_v57  ;;  %vm7910_vm15 = vcmp.ne.s16.totalorder %v7909_v15, 0  ;;  %v1351_v59 = vsel %vm7780_vm14, 0, %v6064_v41 }
 0x102   :  { %1991 = vrot.lane.b32.xlu0 %v1961_v45, %s4597_s11 }
 0x103   :  { %v1690_v16 = vpop.permute.xlu1 %1689 }
 0x104   :  { %v1729_v20 = vpop.permute.xlu0 %1728 }
 0x105   :  { %1567 = vrot.lane.b32.xlu1 %v6126_v0, %s4590_s17  ;;  %v7908_v0 = vld [vmem:[#allocation15_spill] sm:$0xff] }
 0x106   :  { %1993 = vrot.lane.b32.xlu0 %v1963_v49, %s4597_s11  ;;  %v973_v2 = vsel %vm7910_vm15, 0, %v7908_v0  ;;  %vm7915_vm15 = vcmask 195584  }
 0x107   :  { %v1731_v44 = vpop.permute.xlu1 %1730  ;;  %v2022_v25 = vsel %vm1999_vm4, %v973_v2, %v6151_v46  ;;  %v1713_v46 = vor.u32 %v1711_v33, %v1709_v22 }
 0x108   :  { %v1813_v19 = vpop.permute.xlu0 %1812  ;;  %v2066_v61 = vsel %vm2050_vm2, %v2022_v25, %v1637_v39  ;;  %v7916_v25 = vld [vmem:[#allocation5_spill] sm:$0xff] }
 0x109   :  { %1569 = vrot.lane.b32.xlu1 %v1536_v51, %s4590_s17  ;;  %v7912_v51 = vld [vmem:[#allocation26_spill] sm:$0xff]  ;;  %v2101_v40 = vsel %vm2085_vm8, %v2066_v61, %v1688_v5  ;;  %s4568_s17 = scalar_lea.vmem %s4304_s0, 32 }
 0x10a   :  { %1652 = vrot.lane.b32.xlu0 %v1621_v60, %s4593_s20  ;;  %vm7913_vm10 = vcmp.ne.s16.totalorder %v7912_v51, 0  ;;  %v2136_v57 = vsel %vm2120_vm12, %v2101_v40, %v1729_v20 }
 0x10b   :  { %v1815_v23 = vpop.permute.xlu1 %1814  ;;  %v974_v21 = vsel %vm7913_vm10, 0, %v7911_v52  ;;  %v2171_v27 = vsel %vm2155_vm5, %v2136_v57, %v1813_v19  ;;  %vm7914_vm10 = vcmask 171008  }
 0x10c   :  { %v1863_v11 = vpop.permute.xlu0 %1862  ;;  %v2025_v63 = vsel %vm1999_vm4, %v974_v21, %v1554_v43  ;;  %v1797_v43 = vsel %vm7755_vm13, %v1794_v9, %v1796_v10 }
 0x10d   :  { %1654 = vrot.lane.b32.xlu1 %v1620_v38, %s4593_s20  ;;  %v2068_v49 = vsel %vm2050_vm2, %v2025_v63, %v1639_v29  ;;  %v2206_v39 = vsel %vm2190_vm7, %v2171_v27, %v1863_v11  ;;  %s4601_s20 = smov 40  }
 0x10e   :  { %1703 = vrot.lane.b32.xlu0 %v1351_v59, %s4592_s19  ;;  %v2103_v5 = vsel %vm2085_vm8, %v2068_v49, %v1690_v16  ;;  %v1386_v16 = vsel %vm7780_vm14, 0, %v6120_v26 }
 0x10f   :  { %v1865_v12 = vpop.permute.xlu1 %1864  ;;  %v2138_v22 = vsel %vm2120_vm12, %v2103_v5, %v1731_v44  ;;  %v7924_v5 = vld [vmem:[#allocation25_spill] sm:$0xff] }
 0x110   :  { %v1898_v45 = vpop.permute.xlu0 %1897 }
 0x111   :  { %1705 = vrot.lane.b32.xlu1 %v1352_v34, %s4592_s19  ;;  %v2241_v20 = vsel %vm7914_vm10, %v2206_v39, %v1898_v45  ;;  %v1882_v34 = vsel %vm7917_vm9, %v1713_v46, %v7916_v25  ;;  %v1964_v45 = vsel %vm7755_vm13, %v1962_v30, %v7916_v25  ;;  %s4600_s19 = smov 48  }
 0x112   :  { %1744 = vrot.lane.b32.xlu0 %v1710_v42, %s4591_s18  ;;  %v2173_v42 = vsel %vm2155_vm5, %v2138_v22, %v1815_v23 }
 0x113   :  { %v1900_v38 = vpop.permute.xlu1 %1899  ;;  %v2208_v24 = vsel %vm2190_vm7, %v2173_v42, %v1865_v12 }
 0x114   :  { %v1980_v60 = vpop.permute.xlu0 %1979  ;;  %v2243_v2 = vsel %vm7914_vm10, %v2208_v24, %v1900_v38  ;;  %vm7918_vm10 = vsmask.f32 4352 }
 0x115   :  { %v2276_v19 = vsel %vm7915_vm15, %v2241_v20, %v1980_v60  ;;  %1746 = vrot.lane.b32.xlu1 %v1713_v46, %s4591_s18  ;;  %vm7920_vm9 = vmmov %vm7918_vm10  ;;  %v7925_v20 = vld [vmem:[#allocation29_spill] sm:$0xff]  ;;  %s4599_s18 = smov 16  }
 0x116   :  { %v2361_v29 = vshrl.u32 %v2276_v19, 16  ;;  %v2364_v0 = vshll.u32 %v2276_v19, 16  ;;  %1828 = vrot.lane.b32.xlu0 %v1797_v43, %s4594_s25 }
 0x117   :  { %v1556_v9 = vpop.permute.xlu1 %1555 }
 0x118   :  { %v2363_v44 = vrot.slane %v2361_v29, 3  ;;  %v2366_v59 = vrot.slane %v2364_v0, 4  ;;  %v1982_v11 = vpop.permute.xlu0 %1981 }
 0x119   :  { %v2278_v4 = vsel %vm7915_vm15, %v2243_v2, %v1982_v11  ;;  %1830 = vrot.lane.b32.xlu1 %v1796_v10, %s4594_s25  ;;  %vm7919_vm15 = vcmask 220160   ;;  %s4602_s25 = smov 8  }
 0x11a   :  { %v2367_v23 = vor.u32 %v2366_v59, %v2363_v44  ;;  %v2369_v52 = vshrl.u32 %v2278_v4, 16  ;;  %v2372_v21 = vshll.u32 %v2278_v4, 16  ;;  %1878 = vrot.lane.b32.xlu0 %v1386_v16, %s4595_s26 }
 0x11b   :  { %v1558_v33 = vpop.permute.xlu1 %1557 }
 0x11c   :  { %v2371_v61 = vrot.slane %v2369_v52, 3  ;;  %v2374_v26 = vrot.slane %v2372_v21, 4  ;;  %v1641_v12 = vpop.permute.xlu0 %1640  ;;  %v2368_v63 = vsel %vm7918_vm10, %v6176_v36, %v2367_v23  ;;  %vm7921_vm10 = vmmov %vm7919_vm15 }
 0x11d   :  { %1880 = vrot.lane.b32.xlu1 %v7847_v47, %s4595_s26  ;;  %4465 = vmatprep.mubr.msk.bf16.mxu0 %vm7919_vm15, %v2368_v63  ;;  %vm7923_vm15 = vcmp.ne.s16.totalorder %v5534_v17, 0  ;;  %s4603_s26 = smov 32  }
 0x11e   :  { %v2375_v10 = vor.u32 %v2374_v26, %v2371_v61  ;;  %1913 = vrot.lane.b32.xlu0 %v1882_v34, %s4596_s29  ;;  %v975_v30 = vsel %vm7923_vm15, 0, %v7922_v56  ;;  %vm7928_vm15 = vcmask 195584  }
 0x11f   :  { %v1643_v40 = vpop.permute.xlu1 %1642  ;;  %v2028_v22 = vsel %vm1999_vm4, %v975_v30, %v1556_v9  ;;  %vm7930_vm13 = vmmov %vm7928_vm15 }
 0x120   :  { %v1692_v57 = vpop.permute.xlu0 %1691  ;;  %v2376_v46 = vsel %vm7920_vm9, %v2367_v23, %v2375_v10  ;;  %vm7926_vm9 = vcmp.ne.s16.totalorder %v7925_v20, 0  ;;  %v2070_v19 = vsel %vm2050_vm2, %v2028_v22, %v1641_v12 }
 0x121   :  { %1915 = vrot.lane.b32.xlu1 %v7916_v25, %s4596_s29  ;;  %4466 = vmatmul.mubr.msk.bf16.gmra.mrb[12].mxu0 %vm7921_vm10, %v2376_v46  ;;  %v976_v60 = vsel %vm7926_vm9, 0, %v7924_v5  ;;  %v2105_v0 = vsel %vm2085_vm8, %v2070_v19, %v1692_v57  ;;  %vm7927_vm10 = vcmask 171008   ;;  %s4604_s29 = smov 64  }
 0x122   :  { %1995 = vrot.lane.b32.xlu0 %v1964_v45, %s4597_s11  ;;  %v2031_v29 = vsel %vm1999_vm4, %v976_v60, %v1558_v33  ;;  %vm7929_vm9 = vmmov %vm7927_vm10 }
 0x123   :  { %v1694_v36 = vpop.permute.xlu1 %1693  ;;  %v2072_v44 = vsel %vm2050_vm2, %v2031_v29, %v1643_v40 }
 0x124   :  { %v1733_v27 = vpop.permute.xlu0 %1732  ;;  %v2107_v4 = vsel %vm2085_vm8, %v2072_v44, %v1694_v36 }
 0x125   :  { %1997 = vrot.lane.b32.xlu1 %v7916_v25, %s4597_s11  ;;  %v2140_v16 = vsel %vm2120_vm12, %v2105_v0, %v1733_v27 }
 0x127   :  { %v1735_v49 = vpop.permute.xlu1 %1734 }
 0x128   :  { %v1817_v39 = vpop.permute.xlu0 %1816  ;;  %v2142_v52 = vsel %vm2120_vm12, %v2107_v4, %v1735_v49 }
 0x129   :  { %v2175_v2 = vsel %vm2155_vm5, %v2140_v16, %v1817_v39  ;;  %v7935_v16 = vld [vmem:[#allocation27_spill] sm:$0xff] }
 0x12b   :  { %v1819_v38 = vpop.permute.xlu1 %1818 }
 0x12c   :  { %v1867_v43 = vpop.permute.xlu0 %1866  ;;  %v2177_v33 = vsel %vm2155_vm5, %v2142_v52, %v1819_v38 }
 0x12d   :  { %v2210_v59 = vsel %vm2190_vm7, %v2175_v2, %v1867_v43  ;;  %v977_v2 = vsel %vm961_vm11, 0, %v7935_v16 }
 0x12f   :  { %v1869_v42 = vpop.permute.xlu1 %1868 }
 0x130   :  { %v1902_v24 = vpop.permute.xlu0 %1901  ;;  %v2212_v26 = vsel %vm2190_vm7, %v2177_v33, %v1869_v42 }
 0x131   :  { %v2245_v9 = vsel %vm7927_vm10, %v2210_v59, %v1902_v24  ;;  %vm7931_vm10 = vsmask.f32 4352 }
 0x133   :  { %v1904_v11 = vpop.permute.xlu1 %1903 }
 0x134   :  { %v1984_v23 = vpop.permute.xlu0 %1983  ;;  %v2247_v63 = vsel %vm7929_vm9, %v2212_v26, %v1904_v11  ;;  %vm7933_vm9 = vmmov %vm7931_vm10 }
 0x135   :  { %v2280_v21 = vsel %vm7928_vm15, %v2245_v9, %v1984_v23  ;;  %vm7932_vm15 = vcmask 220160  }
 0x136   :  { %v2377_v34 = vshrl.u32 %v2280_v21, 16  ;;  %v2380_v61 = vshll.u32 %v2280_v21, 16  ;;  %vm7934_vm0 = vmmov %vm7932_vm15 }
 0x137   :  { %v1560_v12 = vpop.permute.xlu1 %1559 }
 0x138   :  { %v2379_v40 = vrot.slane %v2377_v34, 3  ;;  %v2382_v45 = vrot.slane %v2380_v61, 4  ;;  %v1986_v57 = vpop.permute.xlu0 %1985  ;;  %v2034_v11 = vsel %vm1999_vm4, %v977_v2, %v1560_v12 }
 0x139   :  { %v2282_v46 = vsel %vm7930_vm13, %v2247_v63, %v1986_v57  ;;  %vm7936_vm13 = vcmp.ne.s16.totalorder %v5866_v8, 0 }
 0x13a   :  { %v2383_v36 = vor.u32 %v2382_v45, %v2379_v40  ;;  %v2385_v27 = vshrl.u32 %v2282_v46, 16  ;;  %v2388_v39 = vshll.u32 %v2282_v46, 16 }
 0x13b   :  { %v1562_v49 = vpop.permute.xlu1 %1561 }
 0x13c   :  { %v2387_v56 = vrot.slane %v2385_v27, 3  ;;  %v2390_v30 = vrot.slane %v2388_v39, 4  ;;  %v1645_v43 = vpop.permute.xlu0 %1644  ;;  %v2384_v38 = vsel %vm7931_vm10, %v2375_v10, %v2383_v36  ;;  %v978_v10 = vsel %vm7936_vm13, 0, %v5485_v54 }
 0x13d   :  { %4469 = vmatprep.mubr.msk.bf16.mxu0 %vm7932_vm15, %v2384_v38  ;;  %v2074_v4 = vsel %vm2050_vm2, %v2034_v11, %v1645_v43  ;;  %v2037_v23 = vsel %vm1999_vm4, %v978_v10, %v1562_v49  ;;  %vm7938_vm10 = vcmask 195584   ;;  %vm7941_vm13 = vsmask.f32 4352 }
 0x13e   :  { %v2391_v5 = vor.u32 %v2390_v30, %v2387_v56 }
 0x13f   :  { %v1647_v60 = vpop.permute.xlu1 %1646 }
 0x140   :  { %v1696_v22 = vpop.permute.xlu0 %1695  ;;  %v2392_v19 = vsel %vm7933_vm9, %v2383_v36, %v2391_v5  ;;  %v2076_v61 = vsel %vm2050_vm2, %v2037_v23, %v1647_v60  ;;  %vm7940_vm9 = vmmov %vm7938_vm10 }
 0x141   :  { %4470 = vmatmul.mubr.msk.bf16.gmra.mrb[16].mxu0 %vm7934_vm0, %v2392_v19  ;;  %v2109_v52 = vsel %vm2085_vm8, %v2074_v4, %v1696_v22  ;;  %vm7937_vm0 = vcmask 171008  }
 0x142   :  { %vm7939_vm15 = vmmov %vm7937_vm0 }
 0x143   :  { %v1698_v42 = vpop.permute.xlu1 %1697 }
 0x144   :  { %v1737_v29 = vpop.permute.xlu0 %1736  ;;  %v2111_v54 = vsel %vm2085_vm8, %v2076_v61, %v1698_v42 }
 0x145   :  { %v2144_v33 = vsel %vm2120_vm12, %v2109_v52, %v1737_v29 }
 0x147   :  { %v1739_v0 = vpop.permute.xlu1 %1738 }
 0x148   :  { %v1821_v24 = vpop.permute.xlu0 %1820  ;;  %v2146_v45 = vsel %vm2120_vm12, %v2111_v54, %v1739_v0 }
 0x149   :  { %v2179_v34 = vsel %vm2155_vm5, %v2144_v33, %v1821_v24 }
 0x14b   :  { %v1823_v44 = vpop.permute.xlu1 %1822 }
 0x14c   :  { %v1871_v59 = vpop.permute.xlu0 %1870  ;;  %v2181_v46 = vsel %vm2155_vm5, %v2146_v45, %v1823_v44 }
 0x14d   :  { %v2214_v26 = vsel %vm2190_vm7, %v2179_v34, %v1871_v59 }
 0x14f   :  { %v1873_v9 = vpop.permute.xlu1 %1872 }
 0x150   :  { %v1906_v21 = vpop.permute.xlu0 %1905  ;;  %v2216_v39 = vsel %vm2190_vm7, %v2181_v46, %v1873_v9 }
 0x151   :  { %v2249_v12 = vsel %vm7937_vm0, %v2214_v26, %v1906_v21  ;;  %vm7942_vm0 = vcmask 220160   ;;  %v979_v21 = vsel %vm963_vm1, 0, %v5626_v62 }
 0x153   :  { %v1908_v63 = vpop.permute.xlu1 %1907 }
 0x154   :  { %v1988_v40 = vpop.permute.xlu0 %1987  ;;  %v2251_v56 = vsel %vm7939_vm15, %v2216_v39, %v1908_v63  ;;  %vm7944_vm15 = vmmov %vm7942_vm0 }
 0x155   :  { %v2284_v57 = vsel %vm7938_vm10, %v2249_v12, %v1988_v40  ;;  %vm7943_vm10 = vmmov %vm7941_vm13 }
 0x156   :  { %v2393_v36 = vshrl.u32 %v2284_v57, 16  ;;  %v2396_v27 = vshll.u32 %v2284_v57, 16 }
 0x157   :  { %v1564_v49 = vpop.permute.xlu1 %1563 }
 0x158   :  { %v2395_v30 = vrot.slane %v2393_v36, 3  ;;  %v2398_v43 = vrot.slane %v2396_v27, 4  ;;  %v1990_v38 = vpop.permute.xlu0 %1989  ;;  %v2040_v61 = vsel %vm1999_vm4, %v979_v21, %v1564_v49 }
 0x159   :  { %v2286_v60 = vsel %vm7940_vm9, %v2251_v56, %v1990_v38  ;;  %vm7945_vm9 = vcmask 171008  }
 0x15a   :  { %v2399_v22 = vor.u32 %v2398_v43, %v2395_v30  ;;  %v2401_v19 = vshrl.u32 %v2286_v60, 16  ;;  %v2404_v42 = vshll.u32 %v2286_v60, 16 }
 0x15b   :  { %v1566_v29 = vpop.permute.xlu1 %1565 }
 0x15c   :  { %v2403_v0 = vrot.slane %v2401_v19, 3  ;;  %v2406_v24 = vrot.slane %v2404_v42, 4  ;;  %v1649_v16 = vpop.permute.xlu0 %1648  ;;  %v2400_v2 = vsel %vm7941_vm13, %v2391_v5, %v2399_v22  ;;  %v980_v5 = vsel %vm964_vm6, 0, %v5814_v37 }
 0x15d   :  { %4473 = vmatprep.mubr.msk.bf16.mxu0 %vm7942_vm0, %v2400_v2  ;;  %v2078_v26 = vsel %vm2050_vm2, %v2040_v61, %v1649_v16  ;;  %v2043_v54 = vsel %vm1999_vm4, %v980_v5, %v1566_v29  ;;  %vm7946_vm13 = vcmask 195584   ;;  %vm7947_vm0 = vmmov %vm7945_vm9 }
 0x15e   :  { %v2407_v44 = vor.u32 %v2406_v24, %v2403_v0 }
 0x15f   :  { %v1651_v59 = vpop.permute.xlu1 %1650 }
 0x160   :  { %v1700_v10 = vpop.permute.xlu0 %1699  ;;  %v2408_v11 = vsel %vm7943_vm10, %v2399_v22, %v2407_v44  ;;  %v2080_v57 = vsel %vm2050_vm2, %v2043_v54, %v1651_v59  ;;  %vm7948_vm10 = vmmov %vm7946_vm13  ;;  %v981_v54 = vsel %vm7780_vm14, 0, %v5928_v58  ;;  %vm8111_vm14 = vsmask.f32 7424 }
 0x161   :  { %4474 = vmatmul.mubr.msk.bf16.gmra.mrb[20].mxu0 %vm7944_vm15, %v2408_v11  ;;  %v2113_v12 = vsel %vm2085_vm8, %v2078_v26, %v1700_v10  ;;  %vm7949_vm15 = vsmask.f32 4352 }
 0x163   :  { %v1702_v4 = vpop.permute.xlu1 %1701 }
 0x164   :  { %v1741_v9 = vpop.permute.xlu0 %1740  ;;  %v2115_v37 = vsel %vm2085_vm8, %v2080_v57, %v1702_v4 }
 0x165   :  { %v2148_v45 = vsel %vm2120_vm12, %v2113_v12, %v1741_v9 }
 0x167   :  { %v1743_v23 = vpop.permute.xlu1 %1742 }
 0x168   :  { %v1825_v52 = vpop.permute.xlu0 %1824  ;;  %v2150_v49 = vsel %vm2120_vm12, %v2115_v37, %v1743_v23 }
 0x169   :  { %v2183_v62 = vsel %vm2155_vm5, %v2148_v45, %v1825_v52 }
 0x16b   :  { %v1827_v33 = vpop.permute.xlu1 %1826 }
 0x16c   :  { %v1875_v34 = vpop.permute.xlu0 %1874  ;;  %v2185_v30 = vsel %vm2155_vm5, %v2150_v49, %v1827_v33 }
 0x16d   :  { %v2218_v46 = vsel %vm2190_vm7, %v2183_v62, %v1875_v34 }
 0x16f   :  { %v1877_v63 = vpop.permute.xlu1 %1876 }
 0x170   :  { %v1910_v40 = vpop.permute.xlu0 %1909  ;;  %v2220_v60 = vsel %vm2190_vm7, %v2185_v30, %v1877_v63 }
 0x171   :  { %v2253_v27 = vsel %vm7945_vm9, %v2218_v46, %v1910_v40  ;;  %vm7950_vm9 = vcmask 220160  }
 0x173   :  { %v1912_v36 = vpop.permute.xlu1 %1911 }
 0x174   :  { %v1992_v39 = vpop.permute.xlu0 %1991  ;;  %v2255_v19 = vsel %vm7947_vm0, %v2220_v60, %v1912_v36  ;;  %vm7952_vm0 = vmmov %vm7950_vm9 }
 0x175   :  { %v2288_v56 = vsel %vm7946_vm13, %v2253_v27, %v1992_v39  ;;  %vm7951_vm13 = vmmov %vm7949_vm15 }
 0x176   :  { %v2409_v43 = vshrl.u32 %v2288_v56, 16  ;;  %v2412_v38 = vshll.u32 %v2288_v56, 16 }
 0x177   :  { %v1568_v22 = vpop.permute.xlu1 %1567 }
 0x178   :  { %v2411_v42 = vrot.slane %v2409_v43, 3  ;;  %v2414_v29 = vrot.slane %v2412_v38, 4  ;;  %v1994_v0 = vpop.permute.xlu0 %1993  ;;  %v2046_v45 = vsel %vm1999_vm4, %v981_v54, %v1568_v22 }
 0x179   :  { %v2290_v24 = vsel %vm7948_vm10, %v2255_v19, %v1994_v0 }
 0x17a   :  { %v2415_v16 = vor.u32 %v2414_v29, %v2411_v42  ;;  %v2417_v2 = vshrl.u32 %v2290_v24, 16  ;;  %v2420_v59 = vshll.u32 %v2290_v24, 16 }
 0x17b   :  { %v1570_v10 = vpop.permute.xlu1 %1569 }
 0x17c   :  { %v2419_v11 = vrot.slane %v2417_v2, 3  ;;  %v2422_v4 = vrot.slane %v2420_v59, 4  ;;  %v1653_v9 = vpop.permute.xlu0 %1652  ;;  %v2416_v23 = vsel %vm7949_vm15, %v2407_v44, %v2415_v16  ;;  %v982_v44 = vsel %vm7779_vm3, 0, %v6064_v41  ;;  %v6373_v41 = vld [vmem:[%s7665_s2] ss:$0 sm:$0xff]  ;;  %vm7960_vm15 = vmmov %vm7952_vm0 }
 0x17d   :  { %4477 = vmatprep.mubr.msk.bf16.mxu0 %vm7950_vm9, %v2416_v23  ;;  %v2049_v62 = vsel %vm1999_vm4, %v982_v44, %v1570_v10  ;;  %v2082_v57 = vsel %vm2050_vm2, %v2046_v45, %v1653_v9  ;;  %vm7953_vm4 = vcmask 171008   ;;  %vm7961_vm9 = vcmask 1043456  }
 0x17e   :  { %v2423_v52 = vor.u32 %v2422_v4, %v2419_v11  ;;  %vm8106_vm3 = vcmp.ne.s16.totalorder %v5747_v6, 0 }
 0x17f   :  { %v1655_v21 = vpop.permute.xlu1 %1654 }
 0x180   :  { %v1704_v33 = vpop.permute.xlu0 %1703  ;;  %v2424_v34 = vsel %vm7951_vm13, %v2415_v16, %v2423_v52  ;;  %v2084_v58 = vsel %vm2050_vm2, %v2049_v62, %v1655_v21  ;;  %vm7954_vm2 = vmmov %vm7948_vm10 }
 0x181   :  { %4478 = vmatmul.mubr.msk.bf16.gmra.mrb[24].mxu0 %vm7952_vm0, %v2424_v34  ;;  %v2117_v36 = vsel %vm2085_vm8, %v2082_v57, %v1704_v33 }
 0x183   :  { %v1706_v5 = vpop.permute.xlu1 %1705 }
 0x184   :  { %v1745_v61 = vpop.permute.xlu0 %1744  ;;  %v2119_v49 = vsel %vm2085_vm8, %v2084_v58, %v1706_v5  ;;  %vm7955_vm8 = vmmov %vm7953_vm4 }
 0x185   :  { %v2152_v27 = vsel %vm2120_vm12, %v2117_v36, %v1745_v61 }
 0x187   :  { %v1747_v26 = vpop.permute.xlu1 %1746 }
 0x188   :  { %v1829_v63 = vpop.permute.xlu0 %1828  ;;  %v2154_v43 = vsel %vm2120_vm12, %v2119_v49, %v1747_v26  ;;  %vm7957_vm12 = vmmov %vm7951_vm13 }
 0x189   :  { %v2187_v39 = vsel %vm2155_vm5, %v2152_v27, %v1829_v63  ;;  %vm7959_vm10 = vmmov %vm7957_vm12 }
 0x18a   :  { %vm7962_vm13 = vmmov %vm7961_vm9 }
 0x18b   :  { %v1831_v12 = vpop.permute.xlu1 %1830 }
 0x18c   :  { %v1879_v40 = vpop.permute.xlu0 %1878  ;;  %v2189_v19 = vsel %vm2155_vm5, %v2154_v43, %v1831_v12  ;;  %vm7956_vm5 = vmmov %vm7954_vm2  ;;  %v7965_v43 = vld [vmem:[#allocation7_spill] sm:$0xff] }
 0x18d   :  { %v2222_v56 = vsel %vm2190_vm7, %v2187_v39, %v1879_v40 }
 0x18f   :  { %v1881_v46 = vpop.permute.xlu1 %1880 }
 0x190   :  { %v1914_v37 = vpop.permute.xlu0 %1913  ;;  %v2224_v24 = vsel %vm2190_vm7, %v2189_v19, %v1881_v46  ;;  %vm7958_vm7 = vmmov %vm7952_vm0  ;;  %v7969_v19 = vld [vmem:[#allocation11_spill] sm:$0xff] }
 0x191   :  { %v2257_v38 = vsel %vm7953_vm4, %v2222_v56, %v1914_v37  ;;  %vm7966_vm4 = vcmp.ne.s16.totalorder %v7965_v43, 0 }
 0x193   :  { %v1916_v30 = vpop.permute.xlu1 %1915 }
 0x194   :  { %v1996_v60 = vpop.permute.xlu0 %1995  ;;  %v4455_v22 = vpop.f32.mrb[0].mxu0  ;;  %v2259_v11 = vsel %vm7955_vm8, %v2224_v24, %v1916_v30  ;;  %vm7970_vm8 = vcmp.ne.s16.totalorder %v7969_v19, 0  ;;  %v7971_v24 = vld [vmem:[#allocation9_spill] sm:$0xff] }
 0x195   :  { %v2292_v42 = vsel %vm7954_vm2, %v2257_v38, %v1996_v60  ;;  %v2551_v29 = vadd.f32 %v4455_v22, %v6373_v41  ;;  %v2542_v0 = vpop.f32.mrb[1].mxu0  ;;  %v7967_v60 = vld [vmem:[#allocation10_spill] sm:$0xff] }
 0x196   :  { %v2425_v16 = vshrl.u32 %v2292_v42, 16  ;;  %v2428_v2 = vshll.u32 %v2292_v42, 16  ;;  %v2543_v59 = vadd.f32 %v6373_v41, %v2542_v0  ;;  %v4456_v10 = vpop.f32.mrb[2].mxu0  ;;  %vm7968_vm2 = vcmp.ne.s16.totalorder %v7967_v60, 0 }
 0x197   :  { %v2554_v4 = vadd.f32 %v4456_v10, %v6373_v41  ;;  %v1998_v9 = vpop.permute.xlu1 %1997  ;;  %v2545_v23 = vpop.f32.mrb[3].mxu0  ;;  %v2671_v34 = vmax.f32 %v2551_v29, 0.0 }
 0x198   :  { %v2427_v21 = vrot.slane %v2425_v16, 3  ;;  %v2430_v33 = vrot.slane %v2428_v2, 4  ;;  %v2294_v5 = vsel %vm7956_vm5, %v2259_v11, %v1998_v9  ;;  %v2546_v54 = vadd.f32 %v6373_v41, %v2545_v23 }
 0x199   :  { %v2672_v61 = vmax.f32 %v2554_v4, 0.0  ;;  %v2433_v26 = vshrl.u32 %v2294_v5, 16  ;;  %v2436_v63 = vshll.u32 %v2294_v5, 16  ;;  %v2669_v44 = vmax.f32 %v2543_v59, 0.0 }
 0x19a   :  { %v2431_v12 = vor.u32 %v2430_v33, %v2427_v21  ;;  %v2670_v57 = vmax.f32 %v2546_v54, 0.0  ;;  %vm7972_vm5 = vcmp.ne.s16.totalorder %v7971_v24, 0 }
 0x19b   :  { %v6388_v40 = vpack.c.bf16 %v2672_v61, %v2671_v34  ;;  %v2435_v45 = vrot.slane %v2433_v26, 3  ;;  %v2438_v62 = vrot.slane %v2436_v63, 4 }
 0x19c   :  { %v2432_v46 = vsel %vm7957_vm12, %v2423_v52, %v2431_v12  ;;  %v2701_v27 = vpack.c.bf16 %v2670_v57, %v2669_v44  ;;  %v7963_v52 = vld [vmem:[#allocation6_spill] sm:$0xff]  ;;  %vm7973_vm12 = vmmov %vm7968_vm2 }
 0x19d   :  { %v2734_v36 = vrot.slane %v6388_v40, 4  ;;  %v2439_v37 = vor.u32 %v2438_v62, %v2435_v45  ;;  %4481 = vmatprep.mubr.msk.bf16.mxu0 %vm7958_vm7, %v2432_v46  ;;  %vm7964_vm0 = vcmp.ne.s16.totalorder %v7963_v52, 0  ;;  %vm7974_vm7 = vcmask 1046528  }
 0x19e   :  { %v2733_v58 = vrot.slane %v2701_v27, 4 }
 0x19f   :  { %v2440_v39 = vsel %vm7959_vm10, %v2431_v12, %v2439_v37  ;;  %vm7975_vm10 = vmmov %vm7964_vm0 }
 0x1a0   :  { %4482 = vmatmul.mubr.msk.bf16.gmra.mrb[28].mxu0 %vm7960_vm15, %v2440_v39  ;;  %v6398_v49 = vsel %vm7961_vm9, %v2733_v58, %v2734_v36  ;;  %v6401_v56 = vsel %vm7962_vm13, 0, %v2733_v58  ;;  %vm7976_vm15 = vmmov %vm7974_vm7  ;;  %vm7978_vm13 = vsmask.f32 7424 }
 0x1a1   :  { %v2817_v30 = vsel %vm7964_vm0, 0, %v6401_v56  ;;  %v2818_v38 = vsel %vm7966_vm4, 0, %v6398_v49  ;;  %v2801_v22 = vsel %vm7968_vm2, 0, %v6401_v56  ;;  %v6415_v42 = vsel %vm7970_vm8, 0, %v6398_v49  ;;  %vm7977_vm9 = vmmov %vm7974_vm7 }
 0x1a2   :  { %3143 = vrot.lane.b32.xlu0 %v2817_v30, %s4597_s11  ;;  %3145 = vrot.lane.b32.xlu1 %v2818_v38, %s4597_s11  ;;  %v3060_v29 = vrot.slane %v2801_v22, 1  ;;  %v3062_v0 = vrot.slane %v6415_v42, 1  ;;  %v2834_v16 = vsel %vm7972_vm5, 0, %v6401_v56  ;;  %v6426_v2 = vsel %vm7973_vm12, 0, %v6398_v49  ;;  %vm7979_vm0 = vmmov %vm7978_vm13 }
 0x1a3   :  { %v3235_v59 = vrot.slane %v2834_v16, 1  ;;  %v2883_v10 = vshll.u32 %v6401_v56, 16  ;;  %v3236_v4 = vrot.slane %v6426_v2, 1  ;;  %v2891_v9 = vshll.u32 %v6398_v49, 16  ;;  %vm7980_vm4 = vmmov %vm7972_vm5 }
 0x1a4   :  { %v3063_v11 = vsel %vm7974_vm7, %v3060_v29, %v3062_v0  ;;  %v2851_v23 = vsel %vm7975_vm10, 0, %v6398_v49  ;;  %v2887_v33 = vshrl.u32 %v6401_v56, 16  ;;  %v3061_v26 = vsel %vm7977_vm9, %v7916_v25, %v3060_v29 }
 0x1a5   :  { %v2885_v21 = vrot.slane %v2883_v10, 1  ;;  %v3237_v34 = vsel %vm7976_vm15, %v3235_v59, %v3236_v4  ;;  %v2893_v61 = vrot.slane %v2891_v9, 1  ;;  %v2867_v16 = vsel %vm7980_vm4, 0, %v6398_v49 }
 0x1a6   :  { %3094 = vrot.lane.b32.xlu0 %v3063_v11, %s4599_s18  ;;  %3318 = vrot.lane.b32.xlu1 %v2851_v23, %s4600_s19  ;;  %v2895_v10 = vshrl.u32 %v6398_v49, 16  ;;  %vm7981_vm2 = vcmask 1043456   ;;  %v3403_v23 = vrot.slane %v2867_v16, 1  ;;  %vm7988_vm10 = vcmp.ne.s16.totalorder %v7965_v43, 0 }
 0x1a7   :  { %v2889_v5 = vor.u32 %v2887_v33, %v2885_v21  ;;  %v2886_v54 = vsel %vm7979_vm0, %v7916_v25, %v2885_v21  ;;  %vm7982_vm8 = vmmov %vm7981_vm2  ;;  %v7983_v21 = vld [vmem:[#allocation8_spill] sm:$0xff]  ;;  %vm7989_vm15 = vcmp.ne.s16.totalorder %v7969_v19, 0  ;;  %vm7993_vm4 = vcmask 1046528  }
 0x1a8   :  { %vm7984_vm5 = vcmp.ne.s16.totalorder %v7983_v21, 0  ;;  %vm7992_vm0 = vmmov %vm7989_vm15 }
 0x1a9   :  { %v2894_v63 = vsel %vm7978_vm13, %v2889_v5, %v2893_v61  ;;  %vm7985_vm12 = vmmov %vm7984_vm5  ;;  %vm7991_vm13 = vcmp.ne.s16.totalorder %v7967_v60, 0 }
 0x1aa   :  { %3268 = vrot.lane.b32.xlu0 %v3237_v34, %s4601_s20  ;;  %3092 = vrot.lane.b32.xlu1 %v3061_v26, %s4599_s18  ;;  %v7986_v34 = vld [vmem:[#allocation12_spill] sm:$0xff] }
 0x1ab   :  { %vm7987_vm7 = vcmp.ne.s16.totalorder %v7986_v34, 0 }
 0x1ac   :  { %vm7990_vm9 = vmmov %vm7987_vm7 }
 0x1ae   :  { %3010 = vrot.lane.b32.xlu0 %v2886_v54, %s4602_s25  ;;  %3012 = vrot.lane.b32.xlu1 %v2894_v63, %s4602_s25 }
 0x1b2   :  { %3184 = vrot.lane.b32.xlu1 %v2894_v63, %s4603_s26 }
 0x1b4   :  { %v4459_v12 = vpop.f32.mrb[4].mxu0 }
 0x1b5   :  { %v2567_v44 = vadd.f32 %v4459_v12, %v6373_v41  ;;  %v2558_v45 = vpop.f32.mrb[5].mxu0 }
 0x1b6   :  { %v2559_v62 = vadd.f32 %v6373_v41, %v2558_v45  ;;  %v4460_v57 = vpop.f32.mrb[6].mxu0 }
 0x1b7   :  { %v2570_v46 = vadd.f32 %v4460_v57, %v6373_v41  ;;  %v2561_v37 = vpop.f32.mrb[7].mxu0  ;;  %v2675_v58 = vmax.f32 %v2567_v44, 0.0 }
 0x1b8   :  { %v2562_v27 = vadd.f32 %v6373_v41, %v2561_v37  ;;  %v2673_v52 = vmax.f32 %v2559_v62, 0.0 }
 0x1b9   :  { %v2676_v39 = vmax.f32 %v2570_v46, 0.0 }
 0x1ba   :  { %v2674_v30 = vmax.f32 %v2562_v27, 0.0 }
 0x1bb   :  { %v6457_v38 = vpack.c.bf16 %v2676_v39, %v2675_v58 }
 0x1bc   :  { %v2703_v22 = vpack.c.bf16 %v2674_v30, %v2673_v52 }
 0x1bd   :  { %v2738_v29 = vrot.slane %v6457_v38, 4  ;;  %v8009_v38 = vld [vmem:[#allocation14_spill] sm:$0xff] }
 0x1be   :  { %v2736_v59 = vrot.slane %v2703_v22, 4 }
 0x1c0   :  { %v6467_v11 = vsel %vm7981_vm2, %v2734_v36, %v2736_v59  ;;  %v6472_v9 = vsel %vm7982_vm8, %v2736_v59, %v2738_v29  ;;  %v2897_v36 = vor.u32 %v2895_v10, %v2893_v61  ;;  %vm7994_vm2 = vmmov %vm7993_vm4 }
 0x1c1   :  { %v2819_v33 = vsel %vm7984_vm5, 0, %v6467_v11  ;;  %v2853_v24 = vsel %vm7985_vm12, 0, %v6472_v9  ;;  %v2803_v40 = vsel %vm7987_vm7, 0, %v6467_v11  ;;  %v2852_v5 = vsel %vm7988_vm10, 0, %v6467_v11  ;;  %vm7995_vm8 = vmmov %vm7994_vm2 }
 0x1c2   :  { %3147 = vrot.lane.b32.xlu0 %v2819_v33, %s4597_s11  ;;  %3322 = vrot.lane.b32.xlu1 %v2853_v24, %s4600_s19  ;;  %v3064_v26 = vrot.slane %v2803_v40, 1  ;;  %v2836_v63 = vsel %vm7989_vm15, 0, %v6467_v11  ;;  %v6494_v54 = vsel %vm7990_vm9, 0, %v6472_v9  ;;  %v2868_v44 = vsel %vm7991_vm13, 0, %v6467_v11  ;;  %vm7996_vm5 = vmmov %vm7994_vm2 }
 0x1c3   :  { %v3238_v12 = vrot.slane %v2836_v63, 1  ;;  %v3240_v61 = vrot.slane %v6494_v54, 1  ;;  %v6503_v45 = vsel %vm7992_vm0, 0, %v6472_v9  ;;  %v3404_v57 = vrot.slane %v2868_v44, 1  ;;  %vm7997_vm12 = vmmov %vm7994_vm2  ;;  %v4557_v54 = vld [vmem:[%s7666_s3] sm:$0xff]  }
 0x1c4   :  { %v3065_v62 = vsel %vm7993_vm4, %v3062_v0, %v3064_v26  ;;  %v3406_v46 = vrot.slane %v6503_v45, 1  ;;  %v2899_v37 = vshll.u32 %v6467_v11, 16  ;;  %v2903_v19 = vshrl.u32 %v6467_v11, 16  ;;  %vm8002_vm9 = vmmov %vm7994_vm2  ;;  %v8019_v45 = vld [vmem:[#allocation16_spill] sm:$0xff]  ;;  %4485 = vmatprep.subr.bf16.mxu1 %v4557_v54 }
 0x1c5   :  { %v3239_v27 = vsel %vm7994_vm2, %v3236_v4, %v3238_v12  ;;  %v3241_v60 = vsel %vm7995_vm8, %v3238_v12, %v3240_v61  ;;  %v2907_v58 = vshll.u32 %v6472_v9, 16  ;;  %v3405_v42 = vsel %vm7996_vm5, %v3403_v23, %v3404_v57  ;;  %v7998_v4 = vld [vmem:[#allocation13_spill] sm:$0xff]  ;;  %4486 = vmatpush3.bf16.msra.mxu1 %v4557_v54 }
 0x1c6   :  { %3320 = vrot.lane.b32.xlu0 %v2852_v5, %s4600_s19  ;;  %3096 = vrot.lane.b32.xlu1 %v3065_v62, %s4599_s18  ;;  %v3407_v0 = vsel %vm7997_vm12, %v3404_v57, %v3406_v46  ;;  %v2901_v2 = vrot.slane %v2899_v37, 1  ;;  %vm7999_vm7 = vcmp.ne.s16.totalorder %v7998_v4, 0  ;;  %vm8000_vm10 = vsmask.f32 7424 }
 0x1c7   :  { %v2804_v39 = vsel %vm7999_vm7, 0, %v6472_v9  ;;  %v2909_v22 = vrot.slane %v2907_v58, 1  ;;  %vm8001_vm15 = vcmp.ne.s16.totalorder %v4967_v13, 0  ;;  %vm8003_vm13 = vmmov %vm8000_vm10  ;;  %vm8004_vm0 = vcmask 1043456  }
 0x1c8   :  { %v3066_v52 = vrot.slane %v2804_v39, 1  ;;  %v2905_v30 = vor.u32 %v2903_v19, %v2901_v2  ;;  %v2902_v16 = vsel %vm8000_vm10, %v2897_v36, %v2901_v2  ;;  %v2820_v59 = vsel %vm8001_vm15, 0, %v6472_v9  ;;  %vm8005_vm4 = vmmov %vm8004_vm0 }
 0x1c9   :  { %vm8007_vm2 = vcmp.ne.s16.totalorder %v4986_v31, 0  ;;  %vm8008_vm8 = vmmov %vm8001_vm15  ;;  %vm8010_vm5 = vcmp.ne.s16.totalorder %v8009_v38, 0  ;;  %vm8011_vm12 = vcmp.ne.s16.totalorder %v7986_v34, 0 }
 0x1ca   :  { %v3067_v10 = vsel %vm8002_vm9, %v3064_v26, %v3066_v52  ;;  %3149 = vrot.lane.b32.xlu0 %v2820_v59, %s4597_s11  ;;  %3270 = vrot.lane.b32.xlu1 %v3239_v27, %s4601_s20  ;;  %v2910_v23 = vsel %vm8003_vm13, %v2905_v30, %v2909_v22  ;;  %vm8012_vm10 = vmmov %vm8010_vm5  ;;  %vm8015_vm13 = vcmask 1046528  }
 0x1cb   :  { %vm8013_vm15 = vmmov %vm8007_vm2 }
 0x1cc   :  { %vm8014_vm9 = vmmov %vm7999_vm7 }
 0x1ce   :  { %3272 = vrot.lane.b32.xlu0 %v3241_v60, %s4601_s20  ;;  %3435 = vrot.lane.b32.xlu1 %v3405_v42, %s4604_s29  ;;  %v2911_v42 = vshrl.u32 %v6472_v9, 16 }
 0x1d0   :  { %v2913_v59 = vor.u32 %v2911_v42, %v2909_v22 }
 0x1d2   :  { %3437 = vrot.lane.b32.xlu0 %v3407_v0, %s4604_s29  ;;  %3188 = vrot.lane.b32.xlu1 %v2910_v23, %s4603_s26 }
 0x1d4   :  { %v4463_v33 = vpop.f32.mrb[8].mxu0 }
 0x1d5   :  { %v2583_v24 = vadd.f32 %v4463_v33, %v6373_v41  ;;  %v2574_v40 = vpop.f32.mrb[9].mxu0 }
 0x1d6   :  { %v2575_v36 = vadd.f32 %v6373_v41, %v2574_v40  ;;  %3098 = vrot.lane.b32.xlu0 %v3067_v10, %s4599_s18  ;;  %v4464_v5 = vpop.f32.mrb[10].mxu0  ;;  %3355 = vrot.lane.b32.xlu1 %v2910_v23, %s4605_s28 }
 0x1d7   :  { %v2586_v26 = vadd.f32 %v4464_v5, %v6373_v41  ;;  %v2577_v63 = vpop.f32.mrb[11].mxu0  ;;  %v2679_v44 = vmax.f32 %v2583_v24, 0.0 }
 0x1d8   :  { %v2578_v12 = vadd.f32 %v6373_v41, %v2577_v63  ;;  %v2677_v57 = vmax.f32 %v2575_v36, 0.0 }
 0x1d9   :  { %v2680_v62 = vmax.f32 %v2586_v26, 0.0 }
 0x1da   :  { %v2678_v37 = vmax.f32 %v2578_v12, 0.0  ;;  %3014 = vrot.lane.b32.xlu0 %v2902_v16, %s4602_s25  ;;  %3016 = vrot.lane.b32.xlu1 %v2910_v23, %s4602_s25 }
 0x1db   :  { %v6547_v27 = vpack.c.bf16 %v2680_v62, %v2679_v44 }
 0x1dc   :  { %v2705_v60 = vpack.c.bf16 %v2678_v37, %v2677_v57 }
 0x1dd   :  { %v2742_v19 = vrot.slane %v6547_v27, 4 }
 0x1de   :  { %v2740_v58 = vrot.slane %v2705_v60, 4  ;;  %3186 = vrot.lane.b32.xlu0 %v2902_v16, %s4603_s26 }
 0x1e0   :  { %v6555_v0 = vsel %vm8004_vm0, %v2738_v29, %v2740_v58  ;;  %v6560_v2 = vsel %vm8005_vm4, %v2740_v58, %v2742_v19  ;;  %vm8016_vm0 = vmmov %vm8015_vm13 }
 0x1e1   :  { %8006 = vst [vmem:[#allocation15_spill] sm:$0xff] %v6560_v2  ;;  %v2821_v39 = vsel %vm8007_vm2, 0, %v6555_v0  ;;  %v2854_v30 = vsel %vm8008_vm8, 0, %v6555_v0  ;;  %v2805_v29 = vsel %vm8010_vm5, 0, %v6555_v0  ;;  %v2870_v10 = vsel %vm8011_vm12, 0, %v6555_v0  ;;  %vm8017_vm4 = vmmov %vm8016_vm0 }
 0x1e2   :  { %3353 = vrot.lane.b32.xlu0 %v2902_v16, %s4605_s28  ;;  %3151 = vrot.lane.b32.xlu1 %v2821_v39, %s4597_s11  ;;  %v2838_v23 = vsel %vm7999_vm7, 0, %v6555_v0  ;;  %v6582_v22 = vsel %vm8012_vm10, 0, %v6560_v2  ;;  %v3068_v16 = vrot.slane %v2805_v29, 1  ;;  %v3408_v33 = vrot.slane %v2870_v10, 1  ;;  %vm8018_vm2 = vmmov %vm8016_vm0  ;;  %v4558_v29 = vld [vmem:[%s7666_s3 + $0x8] sm:$0xff]   ;;  %v4559_v10 = vld [vmem:[%s7666_s3 + $0x10] sm:$0xff]  }
 0x1e3   :  { %v3242_v24 = vrot.slane %v2838_v23, 1  ;;  %v3244_v40 = vrot.slane %v6582_v22, 1  ;;  %v2855_v36 = vsel %vm8013_vm15, 0, %v6560_v2  ;;  %v2915_v34 = vshll.u32 %v6555_v0, 16  ;;  %vm8022_vm12 = vmmov %vm8016_vm0  ;;  %4487 = vmatprep.subr.bf16.mxu1 %v4558_v29 }
 0x1e4   :  { %v6592_v5 = vsel %vm8014_vm9, 0, %v6560_v2  ;;  %v2923_v26 = vshll.u32 %v6560_v2, 16  ;;  %v3069_v63 = vsel %vm8015_vm13, %v3066_v52, %v3068_v16  ;;  %v3409_v12 = vsel %vm8016_vm0, %v3406_v46, %v3408_v33  ;;  %vm8024_vm10 = vmmov %vm8016_vm0  ;;  %4488 = vmatpush3.bf16.msra.mxu1 %v4558_v29 }
 0x1e5   :  { %v3245_v44 = vsel %vm8017_vm4, %v3242_v24, %v3244_v40  ;;  %v3243_v62 = vsel %vm8018_vm2, %v3240_v61, %v3242_v24  ;;  %v2917_v4 = vrot.slane %v2915_v34, 1  ;;  %v3410_v57 = vrot.slane %v6592_v5, 1  ;;  %4489 = vmatprep.subr.bf16.mxu1 %v4559_v10 }
 0x1e6   :  { %3324 = vrot.lane.b32.xlu0 %v2854_v30, %s4600_s19  ;;  %3326 = vrot.lane.b32.xlu1 %v2855_v36, %s4600_s19  ;;  %v2919_v52 = vshrl.u32 %v6555_v0, 16  ;;  %vm8020_vm8 = vcmp.ne.s16.totalorder %v8019_v45, 0  ;;  %vm8021_vm5 = vsmask.f32 7424  ;;  %v2925_v42 = vrot.slane %v2923_v26, 1 }
 0x1e7   :  { %v6612_v46 = vsel %vm8020_vm8, 0, %v6560_v2  ;;  %v2918_v61 = vsel %vm8021_vm5, %v2913_v59, %v2917_v4  ;;  %v3411_v60 = vsel %vm8022_vm12, %v3408_v33, %v3410_v57  ;;  %vm8023_vm7 = vcmp.ne.s16.totalorder %v5146_v50, 0  ;;  %vm8025_vm15 = vmmov %vm8021_vm5 }
 0x1e8   :  { %v3070_v37 = vrot.slane %v6612_v46, 1  ;;  %v2921_v58 = vor.u32 %v2919_v52, %v2917_v4  ;;  %v2822_v39 = vsel %vm8023_vm7, 0, %v6560_v2  ;;  %4490 = vmatpush3.bf16.msra.mxu1 %v4559_v10  ;;  %v2927_v10 = vshrl.u32 %v6560_v2, 16 }
 0x1e9   :  { %vm8026_vm9 = vcmask 1043456   ;;  %vm8032_vm2 = vcmp.ne.s16.totalorder %v5165_v53, 0  ;;  %vm8036_vm12 = vcmp.ne.s16.totalorder %v8019_v45, 0 }
 0x1ea   :  { %v3071_v30 = vsel %vm8024_vm10, %v3068_v16, %v3070_v37  ;;  %3153 = vrot.lane.b32.xlu0 %v2822_v39, %s4597_s11  ;;  %3100 = vrot.lane.b32.xlu1 %v3069_v63, %s4599_s18  ;;  %v6631_v59 = vsel %vm8025_vm15, %v2921_v58, %v2925_v42  ;;  %v4560_v63 = vld [vmem:[%s7666_s3 + $0x18] sm:$0xff]   ;;  %v4561_v39 = vld [vmem:[%s7666_s3 + $0x20] ss:$0 sps:$4 sm:$0xff]   ;;  %vm8027_vm13 = vmmov %vm8026_vm9  ;;  %vm8038_vm10 = vcmp.ne.s16.totalorder %v8009_v38, 0  ;;  %vm8039_vm15 = vcmask 1046528  }
 0x1eb   :  { %4491 = vmatprep.subr.bf16.mxu1 %v4560_v63  ;;  %vm8028_vm0 = vmmov %vm8026_vm9 }
 0x1ec   :  { %4492 = vmatpush3.bf16.msra.mxu1 %v4560_v63  ;;  %vm8030_vm4 = vmmov %vm8028_vm0 }
 0x1ed   :  { %4533 = vmatprep.subr.msk.bf16.mxu1 %vm8026_vm9, %v4561_v39  ;;  %vm8035_vm5 = vmmov %vm8032_vm2 }
 0x1ee   :  { %3439 = vrot.lane.b32.xlu0 %v3409_v12, %s4604_s29  ;;  %3276 = vrot.lane.b32.xlu1 %v3245_v44, %s4601_s20  ;;  %vm8040_vm9 = vmmov %vm8036_vm12 }
 0x1f2   :  { %3274 = vrot.lane.b32.xlu0 %v3243_v62, %s4601_s20  ;;  %3018 = vrot.lane.b32.xlu1 %v2918_v61, %s4602_s25 }
 0x1f4   :  { %v4467_v23 = vpop.f32.mrb[12].mxu0 }
 0x1f5   :  { %v2599_v16 = vadd.f32 %v4467_v23, %v6373_v41  ;;  %v2590_v33 = vpop.f32.mrb[13].mxu0 }
 0x1f6   :  { %v2591_v24 = vadd.f32 %v6373_v41, %v2590_v33  ;;  %3441 = vrot.lane.b32.xlu0 %v3411_v60, %s4604_s29  ;;  %v4468_v36 = vpop.f32.mrb[14].mxu0  ;;  %3192 = vrot.lane.b32.xlu1 %v6631_v59, %s4603_s26 }
 0x1f7   :  { %v2602_v34 = vadd.f32 %v4468_v36, %v6373_v41  ;;  %v2593_v26 = vpop.f32.mrb[15].mxu0  ;;  %v2683_v44 = vmax.f32 %v2599_v16, 0.0 }
 0x1f8   :  { %v2594_v12 = vadd.f32 %v6373_v41, %v2593_v26  ;;  %v2681_v4 = vmax.f32 %v2591_v24, 0.0  ;;  %v8033_v24 = vld [vmem:[#allocation17_spill] sm:$0xff] }
 0x1f9   :  { %v2684_v62 = vmax.f32 %v2602_v34, 0.0  ;;  %vm8034_vm8 = vcmp.ne.s16.totalorder %v8033_v24, 0  ;;  %v2929_v34 = vor.u32 %v2927_v10, %v2925_v42  ;;  %v8044_v10 = vld [vmem:[#allocation22_spill] sm:$0xff] }
 0x1fa   :  { %v2682_v52 = vmax.f32 %v2594_v12, 0.0  ;;  %3102 = vrot.lane.b32.xlu0 %v3071_v30, %s4599_s18  ;;  %3020 = vrot.lane.b32.xlu1 %v6631_v59, %s4602_s25  ;;  %v3992_v30 = vsel %vm8027_vm13, %v4561_v39, 0  ;;  %vm8037_vm7 = vmmov %vm8034_vm8 }
 0x1fb   :  { %v6656_v54 = vpack.c.bf16 %v2684_v62, %v2683_v44  ;;  %4494 = vmatpush3.bf16.msra.mxu1 %v3992_v30  ;;  %vm8041_vm13 = vmmov %vm8039_vm15 }
 0x1fc   :  { %v2707_v60 = vpack.c.bf16 %v2682_v52, %v2681_v4 }
 0x1fd   :  { %v2746_v58 = vrot.slane %v6656_v54, 4 }
 0x1fe   :  { %v2744_v29 = vrot.slane %v2707_v60, 4  ;;  %3357 = vrot.lane.b32.xlu0 %v2918_v61, %s4605_s28 }
 0x200   :  { %v6669_v23 = vsel %vm8028_vm0, %v2742_v19, %v2744_v29  ;;  %v6674_v16 = vsel %vm8030_vm4, %v2744_v29, %v2746_v58  ;;  %vm8042_vm0 = vmmov %vm8041_vm13 }
 0x201   :  { %8029 = vst [vmem:[#allocation19_spill] sm:$0xff] %v6669_v23  ;;  %8031 = vst [vmem:[#allocation21_spill] sm:$0xff] %v6674_v16  ;;  %v2823_v33 = vsel %vm8032_vm2, 0, %v6669_v23  ;;  %v2807_v36 = vsel %vm8034_vm8, 0, %v6669_v23  ;;  %v2857_v27 = vsel %vm8035_vm5, 0, %v6674_v16  ;;  %v2840_v26 = vsel %vm8036_vm12, 0, %v6669_v23 }
 0x202   :  { %3190 = vrot.lane.b32.xlu0 %v2918_v61, %s4603_s26  ;;  %3155 = vrot.lane.b32.xlu1 %v2823_v33, %s4597_s11  ;;  %v3072_v19 = vrot.slane %v2807_v36, 1  ;;  %v6693_v63 = vsel %vm8037_vm7, 0, %v6674_v16  ;;  %v3246_v12 = vrot.slane %v2840_v26, 1  ;;  %v2872_v61 = vsel %vm8038_vm10, 0, %v6669_v23  ;;  %vm8043_vm4 = vmmov %vm8042_vm0 }
 0x203   :  { %v3248_v42 = vrot.slane %v6693_v63, 1  ;;  %v2931_v44 = vshll.u32 %v6669_v23, 16  ;;  %v3412_v4 = vrot.slane %v2872_v61, 1  ;;  %v6706_v52 = vsel %vm8040_vm9, 0, %v6674_v16  ;;  %vm8047_vm5 = vmmov %vm8042_vm0 }
 0x204   :  { %v3073_v62 = vsel %vm8039_vm15, %v3070_v37, %v3072_v19  ;;  %v2935_v60 = vshrl.u32 %v6669_v23, 16  ;;  %v3247_v29 = vsel %vm8042_vm0, %v3244_v40, %v3246_v12  ;;  %v3414_v46 = vrot.slane %v6706_v52, 1  ;;  %vm8049_vm7 = vmmov %vm8042_vm0 }
 0x205   :  { %v3249_v39 = vsel %vm8041_vm13, %v3246_v12, %v3248_v42  ;;  %v2933_v38 = vrot.slane %v2931_v44, 1  ;;  %v3413_v45 = vsel %vm8043_vm4, %v3410_v57, %v3412_v4  ;;  %v2939_v37 = vshll.u32 %v6674_v16, 16 }
 0x206   :  { %3359 = vrot.lane.b32.xlu0 %v6631_v59, %s4605_s28  ;;  %3330 = vrot.lane.b32.xlu1 %v2857_v27, %s4600_s19  ;;  %vm8045_vm2 = vcmp.ne.s16.totalorder %v8044_v10, 0  ;;  %vm8046_vm8 = vsmask.f32 7424  ;;  %v3415_v40 = vsel %vm8047_vm5, %v3412_v4, %v3414_v46  ;;  %vm8048_vm12 = vcmp.ne.s16.totalorder %v5146_v50, 0 }
 0x207   :  { %v2808_v30 = vsel %vm8045_vm2, 0, %v6674_v16  ;;  %v2934_v22 = vsel %vm8046_vm8, %v2929_v34, %v2933_v38  ;;  %v2937_v33 = vor.u32 %v2935_v60, %v2933_v38  ;;  %v2941_v36 = vrot.slane %v2939_v37, 1  ;;  %vm8050_vm10 = vmmov %vm8046_vm8 }
 0x208   :  { %v3074_v59 = vrot.slane %v2808_v30, 1  ;;  %v2856_v5 = vsel %vm8048_vm12, 0, %v6669_v23  ;;  %vm8051_vm15 = vcmp.ne.s16.totalorder %v7909_v15, 0  ;;  %vm8052_vm9 = vcmask 1043456  }
 0x209   :  { %v2942_v27 = vsel %vm8050_vm10, %v2937_v33, %v2941_v36  ;;  %v2824_v34 = vsel %vm8051_vm15, 0, %v6674_v16  ;;  %vm8054_vm13 = vmmov %vm8052_vm9  ;;  %vm8055_vm0 = vcmp.ne.s16.totalorder %v7912_v51, 0  ;;  %vm8058_vm2 = vcmp.ne.s16.totalorder %v8033_v24, 0 }
 0x20a   :  { %v3075_v57 = vsel %vm8049_vm7, %v3072_v19, %v3074_v59  ;;  %3328 = vrot.lane.b32.xlu0 %v2856_v5, %s4600_s19  ;;  %3104 = vrot.lane.b32.xlu1 %v3073_v62, %s4599_s18  ;;  %vm8059_vm8 = vcmp.ne.s16.totalorder %v8044_v10, 0  ;;  %vm8061_vm12 = vmmov %vm8055_vm0 }
 0x20b   :  { %vm8062_vm10 = vmmov %vm8059_vm8 }
 0x20c   :  { %vm8063_vm15 = vmmov %vm8049_vm7 }
 0x20e   :  { %3157 = vrot.lane.b32.xlu0 %v2824_v34, %s4597_s11  ;;  %3280 = vrot.lane.b32.xlu1 %v3249_v39, %s4601_s20 }
 0x212   :  { %3443 = vrot.lane.b32.xlu0 %v3413_v45, %s4604_s29  ;;  %3361 = vrot.lane.b32.xlu1 %v2934_v22, %s4605_s28 }
 0x214   :  { %v4471_v26 = vpop.f32.mrb[16].mxu0  ;;  %v6749_v60 = vpop.permute.xlu1 %3145 }
 0x215   :  { %v2615_v19 = vadd.f32 %v4471_v26, %v6373_v41  ;;  %v2606_v12 = vpop.f32.mrb[17].mxu0  ;;  %v6756_v5 = vpop.permute.xlu0 %3143 }
 0x216   :  { %3278 = vrot.lane.b32.xlu0 %v3247_v29, %s4601_s20  ;;  %3022 = vrot.lane.b32.xlu1 %v2934_v22, %s4602_s25  ;;  %v2607_v61 = vadd.f32 %v6373_v41, %v2606_v12  ;;  %v4472_v44 = vpop.f32.mrb[18].mxu0 }
 0x217   :  { %v2618_v62 = vadd.f32 %v4472_v44, %v6373_v41  ;;  %v2609_v4 = vpop.f32.mrb[19].mxu0  ;;  %v2687_v38 = vmax.f32 %v2615_v19, 0.0 }
 0x218   :  { %v2610_v39 = vadd.f32 %v6373_v41, %v2609_v4  ;;  %v2685_v37 = vmax.f32 %v2607_v61, 0.0  ;;  %v6761_v19 = vpop.permute.xlu1 %3318  ;;  %v8056_v61 = vld [vmem:[#allocation23_spill] sm:$0xff]  ;;  %v2943_v4 = vshrl.u32 %v6674_v16, 16 }
 0x219   :  { %v2688_v45 = vmax.f32 %v2618_v62, 0.0  ;;  %vm8057_vm4 = vcmp.ne.s16.totalorder %v8056_v61, 0  ;;  %v6781_v44 = vpop.permute.xlu0 %3094 }
 0x21a   :  { %3445 = vrot.lane.b32.xlu0 %v3415_v40, %s4604_s29  ;;  %3196 = vrot.lane.b32.xlu1 %v2942_v27, %s4603_s26  ;;  %v2686_v29 = vmax.f32 %v2610_v39, 0.0  ;;  %vm8060_vm5 = vmmov %vm8057_vm4 }
 0x21b   :  { %v6754_v30 = vpack.c.bf16 %v2688_v45, %v2687_v38 }
 0x21c   :  { %v2709_v33 = vpack.c.bf16 %v2686_v29, %v2685_v37  ;;  %v6790_v39 = vpop.permute.xlu1 %3092 }
 0x21d   :  { %v7757_v34 = vrot.slane %v6754_v30, 4 }
 0x21e   :  { %3106 = vrot.lane.b32.xlu0 %v3075_v57, %s4599_s18  ;;  %3024 = vrot.lane.b32.xlu1 %v2942_v27, %s4602_s25  ;;  %v2748_v26 = vrot.slane %v2709_v33, 4 }
 0x220   :  { %v6766_v40 = vsel %vm8052_vm9, %v2746_v58, %v2748_v26  ;;  %v6771_v12 = vsel %vm8054_vm13, %v2748_v26, %v7757_v34  ;;  %vm8064_vm9 = vmmov %vm8049_vm7  ;;  %v8066_v34 = vld [vmem:[#allocation28_spill] sm:$0xff] }
 0x221   :  { %8053 = vst [vmem:[#allocation25_spill] sm:$0xff] %v6766_v40  ;;  %v2825_v57 = vsel %vm8055_vm0, 0, %v6766_v40  ;;  %v2809_v54 = vsel %vm8057_vm4, 0, %v6766_v40  ;;  %v2874_v62 = vsel %vm8058_vm2, 0, %v6766_v40  ;;  %v6795_v45 = vsel %vm8060_vm5, 0, %v6771_v12  ;;  %vm8065_vm13 = vmmov %vm8049_vm7 }
 0x222   :  { %3194 = vrot.lane.b32.xlu0 %v2934_v22, %s4603_s26  ;;  %3159 = vrot.lane.b32.xlu1 %v2825_v57, %s4597_s11  ;;  %v3076_v58 = vrot.slane %v2809_v54, 1  ;;  %v2842_v22 = vsel %vm8059_vm8, 0, %v6766_v40  ;;  %v3416_v38 = vrot.slane %v2874_v62, 1  ;;  %v2947_v29 = vshll.u32 %v6766_v40, 16  ;;  %vm8070_vm8 = vmmov %vm8049_vm7 }
 0x223   :  { %v3250_v37 = vrot.slane %v2842_v22, 1  ;;  %v2859_v24 = vsel %vm8061_vm12, 0, %v6771_v12  ;;  %v7758_v26 = vrot.slane %v6795_v45, 1  ;;  %v6807_v57 = vsel %vm8062_vm10, 0, %v6771_v12  ;;  %vm8071_vm5 = vmmov %vm8049_vm7 }
 0x224   :  { %v3077_v33 = vsel %vm8049_vm7, %v3074_v59, %v3076_v58  ;;  %v3417_v54 = vsel %vm8063_vm15, %v3414_v46, %v3416_v38  ;;  %v2945_v62 = vor.u32 %v2943_v4, %v2941_v36  ;;  %v2949_v22 = vrot.slane %v2947_v29, 1  ;;  %v6832_v4 = vpop.permute.xlu0 %3268 }
 0x225   :  { %v3253_v59 = vsel %vm8065_vm13, %v3250_v37, %v7758_v26  ;;  %v7763_v10 = vrot.slane %v6807_v57, 1  ;;  %vm8067_vm0 = vcmp.ne.s16.totalorder %v8066_v34, 0  ;;  %v2951_v52 = vshrl.u32 %v6766_v40, 16  ;;  %v6838_v26 = vpop.permute.xlu1 %3012 }
 0x226   :  { %3363 = vrot.lane.b32.xlu0 %v2942_v27, %s4605_s28  ;;  %3334 = vrot.lane.b32.xlu1 %v2859_v24, %s4600_s19  ;;  %v3251_v27 = vsel %vm8064_vm9, %v3248_v42, %v3250_v37  ;;  %v6823_v24 = vsel %vm8067_vm0, 0, %v6771_v12  ;;  %vm8068_vm4 = vcmp.ne.s16.totalorder %v7909_v15, 0  ;;  %vm8069_vm2 = vsmask.f32 7424 }
 0x227   :  { %v2858_v63 = vsel %vm8068_vm4, 0, %v6766_v40  ;;  %v2950_v42 = vsel %vm8069_vm2, %v2945_v62, %v2949_v22  ;;  %v7762_v46 = vrot.slane %v6823_v24, 1  ;;  %v2955_v36 = vshll.u32 %v6771_v12, 16  ;;  %vm8072_vm12 = vmmov %vm8069_vm2 }
 0x228   :  { %v3419_v37 = vsel %vm8070_vm8, %v3416_v38, %v7763_v10  ;;  %v2953_v29 = vor.u32 %v2951_v52, %v2949_v22  ;;  %vm3469_vm7 = vcmask 64512   ;;  %vm3520_vm10 = vcmask 130048   ;;  %vm8081_vm8 = vmmov %vm8071_vm5 }
 0x229   :  { %v3079_v62 = vsel %vm8071_vm5, %v3076_v58, %v7762_v46  ;;  %v2957_v40 = vrot.slane %v2955_v36, 1  ;;  %v6847_v25 = vpop.permute.xlu1 %3184  ;;  %vm8074_vm15 = vcmask 1043456   ;;  %vm8076_vm13 = vcmp.ne.s16.totalorder %v7925_v20, 0 }
 0x22a   :  { %3332 = vrot.lane.b32.xlu0 %v2858_v63, %s4600_s19  ;;  %3108 = vrot.lane.b32.xlu1 %v3077_v33, %s4599_s18  ;;  %v3011_v63 = vpop.permute.xlu0 %3010  ;;  %vm8075_vm9 = vmmov %vm8074_vm15  ;;  %vm8077_vm0 = vcmp.ne.s16.totalorder %v8056_v61, 0  ;;  %vm8078_vm4 = vcmp.ne.s16.totalorder %v5479_v1, 0  ;;  %vm8079_vm2 = vcmp.ne.s16.totalorder %v8066_v34, 0 }
 0x22b   :  { %v2958_v47 = vsel %vm8072_vm12, %v2953_v29, %v2957_v40  ;;  %v3471_v53 = vsel %vm3469_vm7, 0, %v3011_v63  ;;  %vm8083_vm12 = vmmov %vm8078_vm4  ;;  %v8085_v63 = vrot.slane %v6795_v45, 1 }
 0x22c   :  { %v3522_v34 = vsel %vm3520_vm10, %v3471_v53, %v6790_v39 }
 0x22e   :  { %3447 = vrot.lane.b32.xlu0 %v3417_v54, %s4604_s29  ;;  %3284 = vrot.lane.b32.xlu1 %v3253_v59, %s4601_s20 }
 0x232   :  { %3282 = vrot.lane.b32.xlu0 %v3251_v27, %s4601_s20  ;;  %3365 = vrot.lane.b32.xlu1 %v2950_v42, %s4605_s28 }
 0x234   :  { %v6851_v38 = vpop.permute.xlu0 %3147  ;;  %v4475_v33 = vpop.f32.mrb[20].mxu0 }
 0x235   :  { %v2631_v22 = vadd.f32 %v4475_v33, %v6373_v41  ;;  %v6854_v58 = vpop.permute.xlu1 %3322  ;;  %v2622_v52 = vpop.f32.mrb[21].mxu0 }
 0x236   :  { %v2623_v36 = vadd.f32 %v6373_v41, %v2622_v52  ;;  %3449 = vrot.lane.b32.xlu0 %v3419_v37, %s4604_s29  ;;  %v4476_v54 = vpop.f32.mrb[22].mxu0  ;;  %3026 = vrot.lane.b32.xlu1 %v2950_v42, %s4602_s25 }
 0x237   :  { %v2634_v59 = vadd.f32 %v4476_v54, %v6373_v41  ;;  %v2625_v27 = vpop.f32.mrb[23].mxu0  ;;  %v2691_v10 = vmax.f32 %v2631_v22, 0.0 }
 0x238   :  { %v2626_v29 = vadd.f32 %v6373_v41, %v2625_v27  ;;  %v6861_v46 = vpop.permute.xlu0 %3320  ;;  %v2689_v51 = vmax.f32 %v2623_v36, 0.0 }
 0x239   :  { %v2692_v14 = vmax.f32 %v2634_v59, 0.0  ;;  %v6863_v33 = vpop.permute.xlu1 %3096 }
 0x23a   :  { %v2690_v16 = vmax.f32 %v2626_v29, 0.0  ;;  %3110 = vrot.lane.b32.xlu0 %v3079_v62, %s4599_s18  ;;  %3200 = vrot.lane.b32.xlu1 %v2958_v47, %s4603_s26  ;;  %v8073_v62 = vrot.slane %v6754_v30, 4 }
 0x23b   :  { %v6866_v52 = vpack.c.bf16 %v2692_v14, %v2691_v10  ;;  %v2959_v10 = vshrl.u32 %v6771_v12, 16 }
 0x23c   :  { %v2711_v37 = vpack.c.bf16 %v2690_v16, %v2689_v51  ;;  %v6869_v54 = vpop.permute.xlu0 %3149 }
 0x23d   :  { %v7771_v35 = vrot.slane %v6866_v52, 4  ;;  %v6872_v27 = vpop.permute.xlu1 %3270 }
 0x23e   :  { %v2752_v15 = vrot.slane %v2711_v37, 4  ;;  %3198 = vrot.lane.b32.xlu0 %v2950_v42, %s4603_s26  ;;  %3028 = vrot.lane.b32.xlu1 %v2958_v47, %s4602_s25  ;;  %v2961_v37 = vor.u32 %v2959_v10, %v2957_v40  ;;  %v8082_v40 = vrot.slane %v6823_v24, 1 }
 0x240   :  { %v6879_v14 = vsel %vm8074_vm15, %v8073_v62, %v2752_v15  ;;  %v6884_v51 = vsel %vm8075_vm9, %v2752_v15, %v7771_v35  ;;  %v6886_v16 = vpop.permute.xlu0 %3272  ;;  %vm8084_vm15 = vsmask.f32 7424  ;;  %vm8086_vm9 = vmmov %vm8071_vm5 }
 0x241   :  { %v6889_v22 = vpop.permute.xlu1 %3435  ;;  %v2827_v42 = vsel %vm8076_vm13, 0, %v6879_v14  ;;  %v2876_v30 = vsel %vm8077_vm0, 0, %v6879_v14  ;;  %v2811_v36 = vsel %vm8078_vm4, 0, %v6879_v14  ;;  %v2963_v15 = vshll.u32 %v6879_v14, 16  ;;  %vm8087_vm13 = vmmov %vm8079_vm2 }
 0x242   :  { %3367 = vrot.lane.b32.xlu0 %v2958_v47, %s4605_s28  ;;  %v3420_v59 = vrot.slane %v2876_v30, 1  ;;  %v3080_v29 = vrot.slane %v2811_v36, 1  ;;  %v2844_v62 = vsel %vm8079_vm2, 0, %v6879_v14  ;;  %3163 = vrot.lane.b32.xlu1 %v2827_v42, %s4597_s11  ;;  %v2967_v23 = vshrl.u32 %v6879_v14, 16  ;;  %vm8089_vm4 = vmmov %vm8084_vm15 }
 0x243   :  { %v2965_v35 = vrot.slane %v2963_v15, 1  ;;  %v3254_v61 = vrot.slane %v2844_v62, 1  ;;  %v2971_v7 = vshll.u32 %v6884_v51, 16  ;;  %v8080_v47 = vrot.slane %v6807_v57, 1  ;;  %vm8090_vm2 = vmmov %vm8071_vm5 }
 0x244   :  { %v3438_v2 = vpop.permute.xlu0 %3437  ;;  %v3081_v10 = vsel %vm8071_vm5, %v8082_v40, %v3080_v29  ;;  %v6918_v42 = vsel %vm8083_vm12, 0, %v6884_v51  ;;  %vm8088_vm0 = vcmp.ne.s16.totalorder %v5747_v6, 0  ;;  %vm8092_vm5 = vcmp.ne.s16.totalorder %v5534_v17, 0  ;;  %vm8093_vm12 = vmmov %vm8090_vm2 }
 0x245   :  { %v3421_v30 = vsel %vm8081_vm8, %v8080_v47, %v3420_v59  ;;  %v6920_v36 = vpop.permute.xlu1 %3188  ;;  %v2966_v15 = vsel %vm8084_vm15, %v2961_v37, %v2965_v35  ;;  %v3255_v62 = vsel %vm8086_vm9, %v8085_v63, %v3254_v61  ;;  %v2969_v57 = vor.u32 %v2967_v23, %v2965_v35  ;;  %vm8094_vm15 = vmmov %vm8090_vm2 }
 0x246   :  { %v6926_v50 = vrot.slane %v2971_v7, 1  ;;  %3451 = vrot.lane.b32.xlu0 %v3421_v30, %s4604_s29  ;;  %v7778_v24 = vrot.slane %v6918_v42, 1  ;;  %v6933_v47 = vsel %vm8087_vm13, 0, %v6884_v51  ;;  %v6938_v37 = vsel %vm8088_vm0, 0, %v6884_v51  ;;  %3112 = vrot.lane.b32.xlu1 %v3081_v10, %s4599_s18 }
 0x247   :  { %v3422_v35 = vrot.slane %v6933_v47, 1  ;;  %v3082_v23 = vrot.slane %v6938_v37, 1  ;;  %vm8091_vm8 = vcmp.ne.s16.totalorder %v7965_v43, 0  ;;  %v2826_v10 = vsel %vm8092_vm5, 0, %v6771_v12 }
 0x248   :  { %v6943_v7 = vsel %vm8089_vm4, %v2969_v57, %v6926_v50  ;;  %v6949_v45 = vpop.permute.xlu0 %3098  ;;  %v3257_v30 = vsel %vm8090_vm2, %v3254_v61, %v7778_v24  ;;  %v2785_v40 = vsel %vm8091_vm8, 0, %v6401_v56  ;;  %vm8095_vm9 = vcmask 195584  }
 0x249   :  { %v6963_v63 = vsel %vm8093_vm12, %v3420_v59, %v3422_v35  ;;  %v6968_v53 = vsel %vm8094_vm15, %v3080_v29, %v3082_v23  ;;  %v3474_v39 = vsel %vm3469_vm7, %v2785_v40, %v6838_v26  ;;  %v3556_v56 = vsel %vm8095_vm9, %v3522_v34, %v6756_v5  ;;  %v3356_v43 = vpop.permute.xlu1 %3355  ;;  %vm8096_vm4 = vmmov %vm8095_vm9 }
 0x24a   :  { %3161 = vrot.lane.b32.xlu0 %v2826_v10, %s4597_s11  ;;  %vm3589_vm13 = vcmask 261120   ;;  %3369 = vrot.lane.b32.xlu1 %v2966_v15, %s4605_s28  ;;  %v3524_v59 = vsel %vm3520_vm10, %v3474_v39, %v6781_v44  ;;  %vm3624_vm0 = vcmask 326656   ;;  %vm3659_vm2 = vcmask 392192  }
 0x24b   :  { %v3591_v29 = vsel %vm3589_vm13, %v3556_v56, %v6847_v25  ;;  %v3558_v5 = vsel %vm8096_vm4, %v3524_v59, %v6749_v60  ;;  %vm3694_vm8 = vcmask 457728   ;;  %vm3729_vm5 = vcmask 523264  }
 0x24c   :  { %v6976_v61 = vpop.permute.xlu0 %3014  ;;  %v3626_v57 = vsel %vm3624_vm0, %v3591_v29, %v6832_v4  ;;  %vm8097_vm12 = vcmp.ne.s16.totalorder %v5534_v17, 0  ;;  %vm8098_vm15 = vcmp.ne.s16.totalorder %v7925_v20, 0  ;;  %vm3942_vm9 = vcmask 588800  }
 0x24d   :  { %v6988_v34 = vpop.permute.xlu1 %3016  ;;  %v3661_v40 = vsel %vm3659_vm2, %v3626_v57, %v6761_v19  ;;  %vm8099_vm4 = vsmask.f32 4352 }
 0x24e   :  { %3202 = vrot.lane.b32.xlu0 %v2966_v15, %s4603_s26  ;;  %3030 = vrot.lane.b32.xlu1 %v2966_v15, %s4602_s25 }
 0x250   :  { %v3187_v26 = vpop.permute.xlu0 %3186 }
 0x251   :  { %v3593_v44 = vsel %vm3589_vm13, %v3558_v5, %v3187_v26 }
 0x252   :  { %v3628_v25 = vsel %vm3624_vm0, %v3593_v44, %v6872_v27  ;;  %3286 = vrot.lane.b32.xlu0 %v3255_v62, %s4601_s20  ;;  %3204 = vrot.lane.b32.xlu1 %v6943_v7, %s4603_s26 }
 0x253   :  { %v3663_v15 = vsel %vm3659_vm2, %v3628_v25, %v6861_v46  ;;  %v2860_v46 = vsel %vm8097_vm12, 0, %v6879_v14  ;;  %vm8100_vm12 = vcmp.ne.s16.totalorder %v7983_v21, 0 }
 0x254   :  { %v3698_v60 = vsel %vm3694_vm8, %v3663_v15, %v3356_v43  ;;  %v3354_v4 = vpop.permute.xlu0 %3353  ;;  %v4479_v10 = vpop.f32.mrb[24].mxu0 }
 0x255   :  { %v3696_v39 = vsel %vm3694_vm8, %v3661_v40, %v3354_v4  ;;  %v2647_v27 = vadd.f32 %v4479_v10, %v6373_v41  ;;  %v7003_v56 = vpop.permute.xlu1 %3151  ;;  %v2638_v62 = vpop.f32.mrb[25].mxu0  ;;  %v3733_v59 = vsel %vm3729_vm5, %v3698_v60, %v3438_v2 }
 0x256   :  { %v3731_v43 = vsel %vm3729_vm5, %v3696_v39, %v6889_v22  ;;  %v2639_v29 = vadd.f32 %v6373_v41, %v2638_v62  ;;  %3336 = vrot.lane.b32.xlu0 %v2860_v46, %s4600_s19  ;;  %v4480_v19 = vpop.f32.mrb[26].mxu0  ;;  %v3787_v26 = vshrl.u32 %v3733_v59, 16  ;;  %v3790_v5 = vshll.u32 %v3733_v59, 16  ;;  %3288 = vrot.lane.b32.xlu1 %v3257_v30, %s4601_s20 }
 0x257   :  { %v3780_v57 = vshrl.u32 %v3731_v43, 16  ;;  %v3783_v44 = vshll.u32 %v3731_v43, 16  ;;  %v2650_v25 = vadd.f32 %v4480_v19, %v6373_v41  ;;  %v2641_v15 = vpop.f32.mrb[27].mxu0  ;;  %v2695_v39 = vmax.f32 %v2647_v27, 0.0 }
 0x258   :  { %v2642_v4 = vadd.f32 %v6373_v41, %v2641_v15  ;;  %v7016_v2 = vpop.permute.xlu0 %3324  ;;  %v3789_v60 = vrot.slane %v3787_v26, 3  ;;  %v3792_v22 = vrot.slane %v3790_v5, 4  ;;  %v2693_v59 = vmax.f32 %v2639_v29, 0.0 }
 0x259   :  { %v3782_v40 = vrot.slane %v3780_v57, 3  ;;  %v3785_v10 = vrot.slane %v3783_v44, 4  ;;  %v2696_v62 = vmax.f32 %v2650_v25, 0.0  ;;  %v7018_v46 = vpop.permute.xlu1 %3326  ;;  %v2861_v30 = vsel %vm8098_vm15, 0, %v6884_v51 }
 0x25a   :  { %v2694_v24 = vmax.f32 %v2642_v4, 0.0  ;;  %3371 = vrot.lane.b32.xlu0 %v6943_v7, %s4605_s28  ;;  %v7025_v41 = vor.u32 %v3792_v22, %v3789_v60  ;;  %3338 = vrot.lane.b32.xlu1 %v2861_v30, %s4600_s19  ;;  %v2786_v25 = vsel %vm8100_vm12, 0, %v6398_v49  ;;  %v8101_v15 = vrot.slane %v6866_v52, 4 }
 0x25b   :  { %v7027_v43 = vpack.c.bf16 %v2696_v62, %v2695_v39  ;;  %v3786_v19 = vor.u32 %v3785_v10, %v3782_v40  ;;  %vm8102_vm15 = vcmask 1043456   ;;  %v2975_v22 = vshrl.u32 %v6884_v51, 16 }
 0x25c   :  { %v2713_v27 = vpack.c.bf16 %v2694_v24, %v2693_v59  ;;  %v7030_v26 = vpop.permute.xlu0 %3153  ;;  %v3477_v24 = vsel %vm3469_vm7, %v2786_v25, %v6976_v61  ;;  %vm8104_vm12 = vcmp.ne.s16.totalorder %v5479_v1, 0 }
 0x25d   :  { %v2758_v29 = vrot.slane %v7027_v43, 4  ;;  %v7033_v5 = vpop.permute.xlu1 %3100  ;;  %v3794_v57 = vsel %vm8099_vm4, %v3786_v19, %v7025_v41  ;;  %vm8103_vm4 = vmmov %vm8102_vm15  ;;  %v2977_v39 = vor.u32 %v2975_v22, %v6926_v50  ;;  %v3526_v30 = vsel %vm3520_vm10, %v3477_v24, %v6863_v33 }
 0x25e   :  { %v2756_v44 = vrot.slane %v2713_v27, 4  ;;  %3453 = vrot.lane.b32.xlu0 %v6963_v63, %s4604_s29  ;;  %4495 = vmatprep.mubr.msk.bf16.mxu1 %vm3942_vm9, %v3794_v57  ;;  %v8109_v50 = vrot.slane %v6918_v42, 1 }
 0x260   :  { %v7048_v4 = vsel %vm8102_vm15, %v8101_v15, %v2756_v44  ;;  %v7053_v60 = vsel %vm8103_vm4, %v2756_v44, %v2758_v29  ;;  %v3440_v63 = vpop.permute.xlu0 %3439  ;;  %vm8105_vm15 = vcmp.ne.s16.totalorder %v5770_v18, 0  ;;  %vm8107_vm4 = vcmask 1046528  }
 0x261   :  { %v7056_v40 = vpop.permute.xlu1 %3276  ;;  %v2878_v49 = vsel %vm8104_vm12, 0, %v7048_v4  ;;  %v2979_v21 = vshll.u32 %v7048_v4, 16  ;;  %v2813_v52 = vsel %vm8105_vm15, 0, %v7048_v4  ;;  %v2846_v61 = vsel %vm8106_vm3, 0, %v7048_v4  ;;  %vm8108_vm3 = vmmov %vm8107_vm4 }
 0x262   :  { %v3424_v10 = vrot.slane %v2878_v49, 1  ;;  %v3084_v62 = vrot.slane %v2813_v52, 1  ;;  %v3258_v59 = vrot.slane %v2846_v61, 1  ;;  %v2983_v19 = vshrl.u32 %v7048_v4, 16  ;;  %vm8110_vm12 = vmmov %vm8108_vm3 }
 0x263   :  { %v2981_v1 = vrot.slane %v2979_v21, 1  ;;  %v2987_v27 = vshll.u32 %v7053_v60, 16  ;;  %v7085_v33 = vsel %vm8105_vm15, 0, %v7053_v60  ;;  %vm8116_vm15 = vcmp.ne.s16.totalorder %v5983_v32, 0 }
 0x264   :  { %v3275_v57 = vpop.permute.xlu0 %3274  ;;  %v3425_v44 = vsel %vm8107_vm4, %v3422_v35, %v3424_v10  ;;  %v3085_v25 = vsel %vm8108_vm3, %v3082_v23, %v3084_v62  ;;  %v3259_v15 = vsel %vm8110_vm12, %v8109_v50, %v3258_v59  ;;  %v3260_v37 = vrot.slane %v7085_v33, 1  ;;  %vm8114_vm12 = vmmov %vm8111_vm14 }
 0x265   :  { %v3019_v24 = vpop.permute.xlu1 %3018  ;;  %3455 = vrot.lane.b32.xlu0 %v3425_v44, %s4604_s29  ;;  %v2982_v47 = vsel %vm8111_vm14, %v2977_v39, %v2981_v1  ;;  %v2985_v22 = vor.u32 %v2983_v19, %v2981_v1  ;;  %v7089_v35 = vrot.slane %v2987_v27, 1  ;;  %vm8112_vm4 = vcmp.ne.s16.totalorder %v5747_v6, 0 }
 0x266   :  { %3373 = vrot.lane.b32.xlu1 %v2982_v47, %s4605_s28  ;;  %v7096_v42 = vsel %vm8112_vm4, 0, %v7053_v60  ;;  %vm8113_vm3 = vcmask 195584   ;;  %vm8115_vm14 = vcmask 1046528   ;;  %v7113_v6 = vsel %vm8116_vm15, 0, %v7053_v60 }
 0x267   :  { %v3560_v23 = vsel %vm8113_vm3, %v3526_v30, %v6851_v38  ;;  %v7102_v49 = vsel %vm8114_vm12, %v2985_v22, %v7089_v35  ;;  %v7107_v21 = vsel %vm8115_vm14, %v3258_v59, %v3260_v37  ;;  %v3426_v52 = vrot.slane %v7096_v42, 1  ;;  %vm8117_vm4 = vmmov %vm8115_vm14 }
 0x268   :  { %v3442_v61 = vpop.permute.xlu0 %3441  ;;  %v3086_v39 = vrot.slane %v7113_v6, 1  ;;  %v3595_v59 = vsel %vm3589_vm13, %v3560_v23, %v6920_v36  ;;  %vm8118_vm3 = vmmov %vm8117_vm4  ;;  %vm8119_vm12 = vcmp.ne.s16.totalorder %v4967_v13, 0  ;;  %vm8120_vm14 = vcmp.ne.s16.totalorder %v4986_v31, 0 }
 0x269   :  { %3114 = vrot.lane.b32.xlu0 %v6968_v53, %s4599_s18  ;;  %v7120_v38 = vsel %vm8117_vm4, %v3424_v10, %v3426_v52  ;;  %v7127_v30 = vpop.permute.xlu1 %3192  ;;  %v2828_v10 = vsel %vm961_vm11, 0, %v6884_v51  ;;  %v3630_v36 = vsel %vm3624_vm0, %v3595_v59, %v6886_v16  ;;  %v2788_v16 = vsel %vm8120_vm14, 0, %v6472_v9 }
 0x26a   :  { %3032 = vrot.lane.b32.xlu1 %v6943_v7, %s4602_s25  ;;  %v7132_v1 = vsel %vm8118_vm3, %v3084_v62, %v3086_v39  ;;  %v2787_v7 = vsel %vm8119_vm12, 0, %v6467_v11  ;;  %v3665_v27 = vsel %vm3659_vm2, %v3630_v36, %v6854_v58  ;;  %v3483_v23 = vsel %vm3469_vm7, %v2788_v16, %v3019_v24 }
 0x26b   :  { %v3480_v19 = vsel %vm3469_vm7, %v2787_v7, %v6988_v34  ;;  %vm8121_vm15 = vcmask 195584   ;;  %vm8122_vm4 = vcmp.ne.s16.totalorder %v5866_v8, 0  ;;  %v3530_v16 = vsel %vm3520_vm10, %v3483_v23, %v7033_v5 }
 0x26c   :  { %v7134_v53 = vpop.permute.xlu0 %3102  ;;  %v3528_v44 = vsel %vm3520_vm10, %v3480_v19, %v6949_v45  ;;  %v4563_v45 = vld [vmem:[%s7665_s2] ss:$0 sm:$0xff]  ;;  %v2829_v31 = vsel %vm8122_vm4, 0, %v7048_v4  ;;  %vm8123_vm3 = vsmask.f32 4352  ;;  %vm8124_vm12 = vmmov %vm8121_vm15  ;;  %v2798_v55 = vsel %vm964_vm6, 0, %v7053_v60 }
 0x26d   :  { %3165 = vrot.lane.b32.xlu0 %v2828_v10, %s4597_s11  ;;  %v7152_v50 = vpop.permute.xlu1 %3020  ;;  %v3564_v23 = vsel %vm8124_vm12, %v3530_v16, %v7003_v56  ;;  %vm8125_vm14 = vmmov %vm8122_vm4  ;;  %vm8129_vm12 = vcmp.ne.s16.totalorder %v5770_v18, 0 }
 0x26e   :  { %3034 = vrot.lane.b32.xlu1 %v2982_v47, %s4602_s25  ;;  %v2863_v56 = vsel %vm8125_vm14, 0, %v7053_v60  ;;  %vm8130_vm14 = vcmp.ne.s16.totalorder %v6014_v48, 0 }
 0x270   :  { %v3358_v62 = vpop.permute.xlu0 %3357 }
 0x271   :  { %v3700_v13 = vsel %vm3694_vm8, %v3665_v27, %v3358_v62  ;;  %3206 = vrot.lane.b32.xlu0 %v2982_v47, %s4603_s26 }
 0x272   :  { %v3735_v11 = vsel %vm3729_vm5, %v3700_v13, %v3440_v63  ;;  %3116 = vrot.lane.b32.xlu1 %v3085_v25, %s4599_s18  ;;  %v3562_v63 = vsel %vm8121_vm15, %v3528_v44, %v6869_v54  ;;  %vm8126_vm15 = vcmask 1043456  }
 0x273   :  { %v3795_v34 = vshrl.u32 %v3735_v11, 16  ;;  %v3798_v22 = vshll.u32 %v3735_v11, 16  ;;  %v4483_v58 = vpop.f32.mrb[28].mxu0  ;;  %vm8127_vm4 = vmmov %vm8126_vm15 }
 0x274   :  { %v2663_v59 = vadd.f32 %v4563_v45, %v4483_v58  ;;  %v2654_v10 = vpop.f32.mrb[29].mxu0  ;;  %v3191_v47 = vpop.permute.xlu0 %3190 }
 0x275   :  { %v3797_v9 = vrot.slane %v3795_v34, 3  ;;  %v3800_v25 = vrot.slane %v3798_v22, 4  ;;  %v2655_v7 = vadd.f32 %v4563_v45, %v2654_v10  ;;  %v3597_v36 = vsel %vm3589_vm13, %v3562_v63, %v3191_v47  ;;  %v4484_v24 = vpop.f32.mrb[30].mxu0  ;;  %v7171_v19 = vpop.permute.xlu1 %3155  ;;  %3290 = vrot.lane.b32.xlu0 %v3259_v15, %s4601_s20 }
 0x276   :  { %v3632_v62 = vsel %vm3624_vm0, %v3597_v36, %v3275_v57  ;;  %v2666_v27 = vadd.f32 %v4563_v45, %v4484_v24  ;;  %v2657_v13 = vpop.f32.mrb[31].mxu0  ;;  %3167 = vrot.lane.b32.xlu1 %v2829_v31, %s4597_s11  ;;  %v2699_v34 = vmax.f32 %v2663_v59, 0.0  ;;  %v2862_v15 = vsel %vm961_vm11, 0, %v7048_v4 }
 0x277   :  { %v3801_v54 = vor.u32 %v3800_v25, %v3797_v9  ;;  %v2658_v44 = vadd.f32 %v4563_v45, %v2657_v13  ;;  %v3667_v11 = vsel %vm3659_vm2, %v3632_v62, %v7016_v2  ;;  %v2697_v57 = vmax.f32 %v2655_v7, 0.0 }
 0x278   :  { %v2700_v22 = vmax.f32 %v2666_v27, 0.0  ;;  %v3360_v58 = vpop.permute.xlu0 %3359  ;;  %v2991_v36 = vshrl.u32 %v7053_v60, 16  ;;  %v3599_v27 = vsel %vm3589_vm13, %v3564_v23, %v7127_v30 }
 0x279   :  { %v2698_v10 = vmax.f32 %v2658_v44, 0.0  ;;  %v3702_v47 = vsel %vm3694_vm8, %v3667_v11, %v3360_v58  ;;  %v7184_v63 = vpop.permute.xlu1 %3330  ;;  %3340 = vrot.lane.b32.xlu0 %v2862_v15, %s4600_s19  ;;  %v3802_v2 = vsel %vm8123_vm3, %v7025_v41, %v3801_v54  ;;  %vm8128_vm3 = vmmov %vm8127_vm4 }
 0x27a   :  { %v2716_v45 = vpack.c.bf16 %v2700_v22, %v2699_v34  ;;  %v3737_v5 = vsel %vm3729_vm5, %v3702_v47, %v3442_v61  ;;  %3208 = vrot.lane.b32.xlu1 %v7102_v49, %s4603_s26  ;;  %4496 = vmatmul.mubr.msk.bf16.vlgmr.msra.gmra.mrb[0].mxu1 %vm3942_vm9, %v3802_v2  ;;  %v2993_v13 = vor.u32 %v2991_v36, %v7089_v35 }
 0x27b   :  { %v2715_v59 = vpack.c.bf16 %v2698_v10, %v2697_v57  ;;  %v3803_v31 = vshrl.u32 %v3737_v5, 16  ;;  %v3806_v9 = vshll.u32 %v3737_v5, 16  ;;  %v3634_v10 = vsel %vm3624_vm0, %v3599_v27, %v7056_v40 }
 0x27c   :  { %v2762_v25 = vrot.slane %v2716_v45, 4  ;;  %v7195_v7 = vpop.permute.xlu0 %3328  ;;  %v3669_v6 = vsel %vm3659_vm2, %v3634_v10, %v7018_v46 }
 0x27d   :  { %v2760_v41 = vrot.slane %v2715_v59, 4  ;;  %v3805_v24 = vrot.slane %v3803_v31, 3  ;;  %v3808_v62 = vrot.slane %v3806_v9, 4  ;;  %v7198_v61 = vpop.permute.xlu1 %3104  ;;  %3375 = vrot.lane.b32.xlu0 %v7102_v49, %s4605_s28 }
 0x27e   :  { %3292 = vrot.lane.b32.xlu1 %v7107_v21, %s4601_s20  ;;  %v7211_v44 = vsel %vm8126_vm15, %v2762_v25, 0  ;;  %vm8131_vm15 = vcmp.ne.s16.totalorder %v5983_v32, 0 }
 0x27f   :  { %v7216_v11 = vsel %vm8127_vm4, %v2758_v29, %v2760_v41  ;;  %v7219_v16 = vsel %vm8128_vm3, %v2760_v41, %v2762_v25  ;;  %v7221_v30 = vor.u32 %v3808_v62, %v3805_v24  ;;  %vm8132_vm4 = vsmask.f32 4352  ;;  %vm8133_vm3 = vmmov %vm8130_vm14 }
 0x280   :  { %v7223_v21 = vpop.permute.xlu0 %3157  ;;  %v2880_v34 = vsel %vm8129_vm12, 0, %v7216_v11  ;;  %v2995_v35 = vshll.u32 %v7216_v11, 16  ;;  %v2815_v43 = vsel %vm8130_vm14, 0, %v7216_v11  ;;  %v2848_v29 = vsel %vm8131_vm15, 0, %v7216_v11 }
 0x281   :  { %v7235_v22 = vpop.permute.xlu1 %3280  ;;  %3457 = vrot.lane.b32.xlu0 %v7120_v38, %s4604_s29  ;;  %v3810_v58 = vsel %vm8132_vm4, %v3801_v54, %v7221_v30  ;;  %v3428_v18 = vrot.slane %v2880_v34, 1  ;;  %v3088_v15 = vrot.slane %v2815_v43, 1  ;;  %v3262_v57 = vrot.slane %v2848_v29, 1 }
 0x282   :  { %3342 = vrot.lane.b32.xlu1 %v2863_v56, %s4600_s19  ;;  %4499 = vmatprep.mubr.msk.bf16.mxu1 %vm3942_vm9, %v3810_v58  ;;  %v2997_v47 = vrot.slane %v2995_v35, 1  ;;  %v2999_v2 = vshrl.u32 %v7216_v11, 16  ;;  %v7249_v38 = vsel %vm8133_vm3, 0, %v7211_v44  ;;  %vm8134_vm12 = vcmask 1046528  }
 0x283   :  { %v3429_v54 = vsel %vm8134_vm12, %v3426_v52, %v3428_v18  ;;  %vm8135_vm14 = vmmov %vm8134_vm12  ;;  %v3003_v5 = vshll.u32 %v7219_v16, 16  ;;  %vm8137_vm4 = vsmask.f32 7424  ;;  %v2849_v42 = vsel %vm8133_vm3, 0, %v7219_v16 }
 0x284   :  { %v3089_v40 = vsel %vm8135_vm14, %v3086_v39, %v3088_v15  ;;  %vm8136_vm15 = vmmov %vm8134_vm12  ;;  %v3444_v23 = vpop.permute.xlu0 %3443  ;;  %v2998_v59 = vsel %vm8137_vm4, %v2993_v13, %v2997_v47  ;;  %v3001_v31 = vor.u32 %v2999_v2, %v2997_v47  ;;  %vm8138_vm12 = vcmp.ne.s16.totalorder %v5983_v32, 0 }
 0x285   :  { %v3263_v45 = vsel %vm8136_vm15, %v3260_v37, %v3262_v57  ;;  %v2881_v52 = vsel %vm8138_vm12, 0, %v7219_v16  ;;  %v3362_v33 = vpop.permute.xlu1 %3361  ;;  %3459 = vrot.lane.b32.xlu0 %v3429_v54, %s4604_s29  ;;  %v3005_v37 = vrot.slane %v3003_v5, 1  ;;  %v3264_v39 = vrot.slane %v2849_v42, 1  ;;  %vm8139_vm14 = vmmov %vm8137_vm4 }
 0x286   :  { %v3430_v9 = vrot.slane %v2881_v52, 1  ;;  %v3704_v25 = vsel %vm3694_vm8, %v3669_v6, %v3362_v33  ;;  %3377 = vrot.lane.b32.xlu1 %v2998_v59, %s4605_s28  ;;  %v3432_v48 = vrot.slane %v7249_v38, 1  ;;  %v3007_v36 = vshrl.u32 %v7219_v16, 16  ;;  %vm8140_vm4 = vmmov %vm8136_vm15 }
 0x287   :  { %v3177_v32 = vshll.u32 %v7211_v44, 16  ;;  %v3739_v41 = vsel %vm3729_vm5, %v3704_v25, %v3444_v23  ;;  %v7278_v46 = vsel %vm8139_vm14, %v3001_v31, %v3005_v37  ;;  %v3265_v24 = vsel %vm8136_vm15, %v3262_v57, %v3264_v39  ;;  %vm8141_vm3 = vmmov %vm8140_vm4  ;;  %v8152_v25 = vld [vmem:[#allocation20_spill] sm:$0xff] }
 0x288   :  { %v7282_v62 = vsel %vm8140_vm4, %v3428_v18, %v3430_v9  ;;  %v3811_v27 = vshrl.u32 %v3739_v41, 16  ;;  %v3814_v56 = vshll.u32 %v3739_v41, 16  ;;  %v3279_v13 = vpop.permute.xlu0 %3278  ;;  %v7287_v34 = vsel %vm8141_vm3, %v3430_v9, %v3432_v48  ;;  %vm8145_vm4 = vmmov %vm8141_vm3  ;;  %v8151_v9 = vld [vmem:[#allocation15_spill] sm:$0xff] }
 0x289   :  { %v7289_v35 = vor.u32 %v3007_v36, %v3005_v37  ;;  %v3023_v43 = vpop.permute.xlu1 %3022  ;;  %3118 = vrot.lane.b32.xlu0 %v7132_v1, %s4599_s18  ;;  %v7293_v29 = vrot.slane %v3177_v32, 1  ;;  %vm8142_vm12 = vcmp.ne.s16.totalorder %v5987_v28, 0  ;;  %vm8144_vm15 = vsmask.f32 7424 }
 0x28a   :  { %v7298_v58 = vsel %vm8142_vm12, 0, %v7219_v16  ;;  %vm8143_vm14 = vmmov %vm8142_vm12  ;;  %v3813_v57 = vrot.slane %v3811_v27, 3  ;;  %v3816_v10 = vrot.slane %v3814_v56, 4  ;;  %3036 = vrot.lane.b32.xlu1 %v7102_v49, %s4602_s25  ;;  %v2830_v28 = vsel %vm963_vm1, 0, %v7053_v60  ;;  %v8146_v49 = vld [vmem:[#allocation18_spill] sm:$0xff] }
 0x28b   :  { %v7303_v18 = vsel %vm8143_vm14, 0, %v7211_v44  ;;  %v3090_v47 = vrot.slane %v7298_v58, 1  ;;  %v7311_v1 = vsel %vm8144_vm15, %v7289_v35, %v7293_v29  ;;  %vm8147_vm3 = vcmp.ne.s16.totalorder %v8146_v49, 0  ;;  %vm8148_vm12 = vmmov %vm8145_vm4 }
 0x28c   :  { %v3266_v2 = vrot.slane %v7303_v18, 1  ;;  %v3817_v54 = vor.u32 %v3816_v10, %v3813_v57  ;;  %v3446_v5 = vpop.permute.xlu0 %3445  ;;  %v2789_v31 = vsel %vm8147_vm3, 0, %v6555_v0  ;;  %vm8149_vm14 = vsmask.f32 4352 }
 0x28d   :  { %v7320_v23 = vsel %vm8145_vm4, %v3088_v15, %v3090_v47  ;;  %v3197_v42 = vpop.permute.xlu1 %3196  ;;  %3169 = vrot.lane.b32.xlu0 %v2830_v28, %s4597_s11  ;;  %v3486_v6 = vsel %vm3469_vm7, %v2789_v31, %v7152_v50  ;;  %vm8150_vm15 = vcmask 195584   ;;  %vm8153_vm4 = vcmp.ne.s16.totalorder %v8152_v25, 0 }
 0x28e   :  { %v7329_v52 = vsel %vm8148_vm12, %v3264_v39, %v3266_v2  ;;  %3038 = vrot.lane.b32.xlu1 %v2998_v59, %s4602_s25  ;;  %v3818_v15 = vsel %vm8149_vm14, %v7221_v30, %v3817_v54  ;;  %v3532_v0 = vsel %vm3520_vm10, %v3486_v6, %v7134_v53  ;;  %v2790_v30 = vsel %vm8153_vm4, 0, %v8151_v9  ;;  %vm8155_vm3 = vmmov %vm8150_vm15 }
 0x28f   :  { %4500 = vmatmul.mubr.msk.bf16.gmra.mrb[4].mxu1 %vm3942_vm9, %v3818_v15  ;;  %v3566_v50 = vsel %vm8150_vm15, %v3532_v0, %v7030_v26  ;;  %v2864_v56 = vsel %vm963_vm1, 0, %v7216_v11  ;;  %vm8156_vm12 = vmmov %vm8149_vm14  ;;  %v8175_v18 = vmov 0  }
 0x290   :  { %v7337_v33 = vpop.permute.xlu0 %3106 }
 0x291   :  { %v3025_v37 = vpop.permute.xlu1 %3024  ;;  %3210 = vrot.lane.b32.xlu0 %v2998_v59, %s4603_s26  ;;  %v2831_v59 = vsel %vm964_vm6, 0, %v7216_v11 }
 0x292   :  { %3120 = vrot.lane.b32.xlu1 %v3089_v40, %s4599_s18  ;;  %v3489_v40 = vsel %vm3469_vm7, %v2790_v30, %v3023_v43 }
 0x294   :  { %v3195_v39 = vpop.permute.xlu0 %3194 }
 0x295   :  { %v3601_v36 = vsel %vm3589_vm13, %v3566_v50, %v3195_v39  ;;  %v7349_v32 = vpop.permute.xlu1 %3159  ;;  %3294 = vrot.lane.b32.xlu0 %v3263_v45, %s4601_s20  ;;  %v3534_v45 = vsel %vm3520_vm10, %v3489_v40, %v7198_v61  ;;  %v8158_v40 = vld [vmem:[#allocation24_spill] sm:$0xff] }
 0x296   :  { %v3636_v41 = vsel %vm3624_vm0, %v3601_v36, %v3279_v13  ;;  %3171 = vrot.lane.b32.xlu1 %v2831_v59, %s4597_s11  ;;  %v3568_v28 = vsel %vm8155_vm3, %v3534_v45, %v7171_v19  ;;  %v2865_v19 = vsel %vm964_vm6, 0, %v7219_v16  ;;  %v8157_v59 = vld [vmem:[#allocation19_spill] sm:$0xff]  ;;  %vm8159_vm14 = vcmp.ne.s16.totalorder %v8158_v40, 0  ;;  %vm8165_vm3 = vmmov %vm8156_vm12 }
 0x297   :  { %v3671_v26 = vsel %vm3659_vm2, %v3636_v41, %v7195_v7  ;;  %v3603_v15 = vsel %vm3589_vm13, %v3568_v28, %v3197_v42  ;;  %v2791_v41 = vsel %vm8159_vm14, 0, %v8157_v59  ;;  %v8163_v28 = vld [vmem:[#allocation26_spill] sm:$0xff] }
 0x298   :  { %v3364_v27 = vpop.permute.xlu0 %3363  ;;  %v3638_v9 = vsel %vm3624_vm0, %v3603_v15, %v7235_v22  ;;  %vm8164_vm4 = vcmp.ne.s16.totalorder %v8163_v28, 0 }
 0x299   :  { %v3706_v57 = vsel %vm3694_vm8, %v3671_v26, %v3364_v27  ;;  %v7366_v10 = vpop.permute.xlu1 %3334  ;;  %3344 = vrot.lane.b32.xlu0 %v2864_v56, %s4600_s19  ;;  %v3673_v42 = vsel %vm3659_vm2, %v3638_v9, %v7184_v63  ;;  %v3492_v63 = vsel %vm3469_vm7, %v2791_v41, %v3025_v37  ;;  %v8171_v41 = vld [vmem:[#allocation5_spill] sm:$0xff] }
 0x29a   :  { %v3741_v13 = vsel %vm3729_vm5, %v3706_v57, %v3446_v5  ;;  %3212 = vrot.lane.b32.xlu1 %v7278_v46, %s4603_s26  ;;  %v8160_v57 = vld [vmem:[#allocation32_spill] sm:$0xff] }
 0x29b   :  { %v3819_v7 = vshrl.u32 %v3741_v13, 16  ;;  %v3822_v43 = vshll.u32 %v3741_v13, 16  ;;  %vm8161_vm15 = vcmp.ne.s16.totalorder %v8160_v57, 0 }
 0x29c   :  { %v3333_v49 = vpop.permute.xlu0 %3332  ;;  %v2832_v13 = vsel %vm8161_vm15, 0, %v7219_v16 }
 0x29d   :  { %v3821_v31 = vrot.slane %v3819_v7, 3  ;;  %v3824_v6 = vrot.slane %v3822_v43, 4  ;;  %v3109_v61 = vpop.permute.xlu1 %3108  ;;  %3379 = vrot.lane.b32.xlu0 %v7278_v46, %s4605_s28  ;;  %v3536_v7 = vsel %vm3520_vm10, %v3492_v63, %v7337_v33  ;;  %v8162_v43 = vld [vmem:[#allocation21_spill] sm:$0xff] }
 0x29e   :  { %3296 = vrot.lane.b32.xlu1 %v3265_v24, %s4601_s20 }
 0x29f   :  { %v3825_v5 = vor.u32 %v3824_v6, %v3821_v31 }
 0x2a0   :  { %v3448_v0 = vpop.permute.xlu0 %3447 }
 0x2a1   :  { %v7378_v39 = vpop.permute.xlu1 %3284  ;;  %3461 = vrot.lane.b32.xlu0 %v7282_v62, %s4604_s29  ;;  %v3826_v50 = vsel %vm8156_vm12, %v3817_v54, %v3825_v5  ;;  %vm8166_vm12 = vcmask 195584  }
 0x2a2   :  { %3346 = vrot.lane.b32.xlu1 %v2865_v19, %s4600_s19  ;;  %4503 = vmatprep.mubr.msk.bf16.mxu1 %vm3942_vm9, %v3826_v50  ;;  %v3570_v33 = vsel %vm8166_vm12, %v3536_v7, %v7223_v21  ;;  %vm8167_vm14 = vmmov %vm8166_vm12  ;;  %vm8173_vm12 = vsmask.f32 4352 }
 0x2a4   :  { %v3283_v24 = vpop.permute.xlu0 %3282 }
 0x2a5   :  { %v3366_v25 = vpop.permute.xlu1 %3365  ;;  %3463 = vrot.lane.b32.xlu0 %v7287_v34, %s4604_s29 }
 0x2a6   :  { %v3708_v62 = vsel %vm3694_vm8, %v3673_v42, %v3366_v25  ;;  %3381 = vrot.lane.b32.xlu1 %v7311_v1, %s4605_s28 }
 0x2a7   :  { %v3743_v54 = vsel %vm3729_vm5, %v3708_v62, %v3448_v0 }
 0x2a8   :  { %v3827_v22 = vshrl.u32 %v3743_v54, 16  ;;  %v3830_v30 = vshll.u32 %v3743_v54, 16  ;;  %v3450_v36 = vpop.permute.xlu0 %3449 }
 0x2a9   :  { %v3027_v26 = vpop.permute.xlu1 %3026  ;;  %3122 = vrot.lane.b32.xlu0 %v7320_v23, %s4599_s18  ;;  %v2792_v23 = vsel %vm8164_vm4, 0, %v8162_v43  ;;  %vm8170_vm4 = vcmp.ne.s16.totalorder %v8160_v57, 0 }
 0x2aa   :  { %v3829_v34 = vrot.slane %v3827_v22, 3  ;;  %v3832_v27 = vrot.slane %v3830_v30, 4  ;;  %3040 = vrot.lane.b32.xlu1 %v7278_v46, %s4602_s25  ;;  %v3495_v31 = vsel %vm3469_vm7, %v2792_v23, %v3027_v26  ;;  %v2866_v62 = vsel %vm8170_vm4, 0, %v7211_v44 }
 0x2ab   :  { %v3538_v15 = vsel %vm3520_vm10, %v3495_v31, %v3109_v61  ;;  %v8177_v31 = vld [vmem:[#allocation25_spill] sm:$0xff]  ;;  %vm8178_vm4 = vcmp.ne.s16.totalorder %v5534_v17, 0 }
 0x2ac   :  { %v3833_v56 = vor.u32 %v3832_v27, %v3829_v34  ;;  %v7406_v45 = vpop.permute.xlu0 %3110  ;;  %v2793_v38 = vsel %vm8178_vm4, 0, %v8177_v31 }
 0x2ad   :  { %v3201_v37 = vpop.permute.xlu1 %3200  ;;  %3173 = vrot.lane.b32.xlu0 %v2832_v13, %s4597_s11 }
 0x2ae   :  { %3042 = vrot.lane.b32.xlu1 %v7289_v35, %s4602_s25  ;;  %v3834_v46 = vsel %vm8165_vm3, %v3825_v5, %v3833_v56  ;;  %v3572_v5 = vsel %vm8167_vm14, %v3538_v15, %v7349_v32  ;;  %vm8172_vm3 = vsmask.f32 7424  ;;  %vm8174_vm14 = vcmask 1046528  }
 0x2af   :  { %4504 = vmatmul.mubr.msk.bf16.gmra.mrb[8].mxu1 %vm3942_vm9, %v3834_v46  ;;  %v3607_v32 = vsel %vm3589_vm13, %v3572_v5, %v3201_v37 }
 0x2b0   :  { %v3199_v6 = vpop.permute.xlu0 %3198 }
 0x2b1   :  { %v3605_v0 = vsel %vm3589_vm13, %v3570_v33, %v3199_v6  ;;  %v3029_v19 = vpop.permute.xlu1 %3028  ;;  %3214 = vrot.lane.b32.xlu0 %v7311_v1, %s4603_s26  ;;  %v8168_v1 = vld [vmem:[#allocation31_spill] sm:$0xff] }
 0x2b2   :  { %v3640_v50 = vsel %vm3624_vm0, %v3605_v0, %v3283_v24  ;;  %3124 = vrot.lane.b32.xlu1 %v3090_v47, %s4599_s18  ;;  %vm8169_vm15 = vcmp.ne.s16.totalorder %v8168_v1, 0  ;;  %v3181_v47 = vshrl.u32 %v7211_v44, 16 }
 0x2b3   :  { %v3675_v35 = vsel %vm3659_vm2, %v3640_v50, %v3333_v49  ;;  %v2833_v24 = vsel %vm8169_vm15, 0, %v7211_v44  ;;  %vm8176_vm15 = vmmov %vm8173_vm12 }
 0x2b4   :  { %v3368_v21 = vpop.permute.xlu0 %3367  ;;  %vm8182_vm4 = vmmov %vm8176_vm15 }
 0x2b5   :  { %v3710_v61 = vsel %vm3694_vm8, %v3675_v35, %v3368_v21  ;;  %v7436_v9 = vpop.permute.xlu1 %3163  ;;  %3298 = vrot.lane.b32.xlu0 %v7329_v52, %s4601_s20  ;;  %v3183_v52 = vor.u32 %v3181_v47, %v7293_v29 }
 0x2b6   :  { %v3745_v58 = vsel %vm3729_vm5, %v3710_v61, %v3450_v36  ;;  %3175 = vrot.lane.b32.xlu1 %v2833_v24, %s4597_s11  ;;  %v3642_v36 = vsel %vm3624_vm0, %v3607_v32, %v7378_v39 }
 0x2b7   :  { %v3835_v49 = vshrl.u32 %v3745_v58, 16  ;;  %v3838_v42 = vshll.u32 %v3745_v58, 16  ;;  %v3352_v26 = vsel %vm8172_vm3, %v3183_v52, %v8171_v41  ;;  %v3677_v44 = vsel %vm3659_vm2, %v3642_v36, %v7366_v10 }
 0x2b8   :  { %v3452_v25 = vpop.permute.xlu0 %3451  ;;  %v3434_v10 = vsel %vm8174_vm14, %v3432_v48, %v8171_v41  ;;  %v3498_v48 = vsel %vm3469_vm7, %v2793_v38, %v3029_v19  ;;  %vm8179_vm3 = vcmask 195584  }
 0x2b9   :  { %v3837_v54 = vrot.slane %v3835_v49, 3  ;;  %v3840_v22 = vrot.slane %v3838_v42, 4  ;;  %v3113_v30 = vpop.permute.xlu1 %3112  ;;  %3348 = vrot.lane.b32.xlu0 %v2866_v62, %s4600_s19  ;;  %v3540_v33 = vsel %vm3520_vm10, %v3498_v48, %v7406_v45  ;;  %vm8181_vm14 = vmmov %vm8179_vm3 }
 0x2ba   :  { %3216 = vrot.lane.b32.xlu1 %v3183_v52, %s4603_s26 }
 0x2bb   :  { %v3841_v59 = vor.u32 %v3840_v22, %v3837_v54 }
 0x2bc   :  { %v3162_v40 = vpop.permute.xlu0 %3161 }
 0x2bd   :  { %v3370_v63 = vpop.permute.xlu1 %3369  ;;  %3383 = vrot.lane.b32.xlu0 %v3352_v26, %s4605_s28  ;;  %v3842_v29 = vsel %vm8173_vm12, %v3833_v56, %v3841_v59  ;;  %v3574_v15 = vsel %vm8179_vm3, %v3540_v33, %v3162_v40  ;;  %vm8180_vm12 = vcmp.ne.s16.totalorder %v7925_v20, 0 }
 0x2be   :  { %v3712_v34 = vsel %vm3694_vm8, %v3677_v44, %v3370_v63  ;;  %3300 = vrot.lane.b32.xlu1 %v3266_v2, %s4601_s20  ;;  %4507 = vmatprep.mubr.msk.bf16.mxu1 %vm3942_vm9, %v3842_v29  ;;  %v2794_v0 = vsel %vm8180_vm12, 0, %v6771_v12  ;;  %vm8183_vm12 = vcmp.ne.s16.totalorder %v5866_v8, 0 }
 0x2bf   :  { %v3747_v39 = vsel %vm3729_vm5, %v3712_v34, %v3452_v25  ;;  %v2796_v3 = vsel %vm8183_vm12, 0, %v6884_v51  ;;  %vm8191_vm12 = vcmp.ne.s16.totalorder %v8160_v57, 0 }
 0x2c0   :  { %v3843_v27 = vshrl.u32 %v3747_v39, 16  ;;  %v3846_v13 = vshll.u32 %v3747_v39, 16  ;;  %v3203_v7 = vpop.permute.xlu0 %3202 }
 0x2c1   :  { %3465 = vrot.lane.b32.xlu0 %v3434_v10, %s4604_s29  ;;  %v3031_v28 = vpop.permute.xlu1 %3030  ;;  %v3609_v50 = vsel %vm3589_vm13, %v3574_v15, %v3203_v7 }
 0x2c2   :  { %v3845_v56 = vrot.slane %v3843_v27, 3  ;;  %v3848_v43 = vrot.slane %v3846_v13, 4  ;;  %3350 = vrot.lane.b32.xlu1 %v8175_v18, %s4600_s19  ;;  %v3501_v35 = vsel %vm3469_vm7, %v2794_v0, %v3031_v28 }
 0x2c3   :  { %v3542_v61 = vsel %vm3520_vm10, %v3501_v35, %v3113_v30 }
 0x2c4   :  { %v3849_v2 = vor.u32 %v3848_v43, %v3845_v56  ;;  %v3287_v23 = vpop.permute.xlu0 %3286  ;;  %v3576_v12 = vsel %vm8181_vm14, %v3542_v61, %v7436_v9  ;;  %v2795_v43 = vsel %vm961_vm11, 0, %v6879_v14  ;;  %vm8184_vm11 = vmmov %vm8179_vm3 }
 0x2c5   :  { %v3205_v46 = vpop.permute.xlu1 %3204  ;;  %v3644_v19 = vsel %vm3624_vm0, %v3609_v50, %v3287_v23  ;;  %vm8185_vm14 = vmmov %vm8182_vm4 }
 0x2c6   :  { %3385 = vrot.lane.b32.xlu1 %v8171_v41, %s4605_s28  ;;  %v3850_v37 = vsel %vm8176_vm15, %v3841_v59, %v3849_v2  ;;  %v3611_v25 = vsel %vm3589_vm13, %v3576_v12, %v3205_v46  ;;  %vm8189_vm6 = vmmov %vm8185_vm14 }
 0x2c7   :  { %4508 = vmatmul.mubr.msk.bf16.gmra.mrb[12].mxu1 %vm3942_vm9, %v3850_v37 }
 0x2c8   :  { %v3337_v6 = vpop.permute.xlu0 %3336 }
 0x2c9   :  { %v3289_v5 = vpop.permute.xlu1 %3288  ;;  %v3679_v21 = vsel %vm3659_vm2, %v3644_v19, %v3337_v6 }
 0x2ca   :  { %3467 = vrot.lane.b32.xlu1 %v8171_v41, %s4604_s29  ;;  %v3646_v52 = vsel %vm3624_vm0, %v3611_v25, %v3289_v5 }
 0x2cc   :  { %v3372_v17 = vpop.permute.xlu0 %3371 }
 0x2cd   :  { %v3714_v45 = vsel %vm3694_vm8, %v3679_v21, %v3372_v17  ;;  %v3339_v32 = vpop.permute.xlu1 %3338 }
 0x2ce   :  { %v3681_v22 = vsel %vm3659_vm2, %v3646_v52, %v3339_v32 }
 0x2d0   :  { %v3454_v24 = vpop.permute.xlu0 %3453 }
 0x2d1   :  { %v3749_v58 = vsel %vm3729_vm5, %v3714_v45, %v3454_v24 }
 0x2d2   :  { %v3851_v47 = vshrl.u32 %v3749_v58, 16  ;;  %v3854_v20 = vshll.u32 %v3749_v58, 16 }
 0x2d4   :  { %v3853_v49 = vrot.slane %v3851_v47, 3  ;;  %v3856_v42 = vrot.slane %v3854_v20, 4 }
 0x2d6   :  { %v3857_v62 = vor.u32 %v3856_v42, %v3853_v49 }
 0x2d7   :  { %v3456_v54 = vpop.permute.xlu0 %3455 }
 0x2d8   :  { %v3374_v30 = vpop.permute.xlu1 %3373  ;;  %v3858_v36 = vsel %vm8176_vm15, %v3849_v2, %v3857_v62  ;;  %vm8186_vm15 = vmmov %vm8182_vm4 }
 0x2d9   :  { %v3716_v59 = vsel %vm3694_vm8, %v3681_v22, %v3374_v30  ;;  %4511 = vmatprep.mubr.msk.bf16.mxu1 %vm3942_vm9, %v3858_v36 }
 0x2da   :  { %v3751_v9 = vsel %vm3729_vm5, %v3716_v59, %v3456_v54 }
 0x2db   :  { %v3859_v40 = vshrl.u32 %v3751_v9, 16  ;;  %v3862_v41 = vshll.u32 %v3751_v9, 16  ;;  %v3115_v26 = vpop.permute.xlu0 %3114 }
 0x2dc   :  { %v3033_v44 = vpop.permute.xlu1 %3032 }
 0x2dd   :  { %v3861_v63 = vrot.slane %v3859_v40, 3  ;;  %v3864_v29 = vrot.slane %v3862_v41, 4  ;;  %v3504_v18 = vsel %vm3469_vm7, %v2795_v43, %v3033_v44  ;;  %v2797_v44 = vsel %vm963_vm1, 0, %v7048_v4  ;;  %vm8188_vm1 = vmmov %vm8179_vm3 }
 0x2de   :  { %v3544_v23 = vsel %vm3520_vm10, %v3504_v18, %v3115_v26 }
 0x2df   :  { %v3865_v34 = vor.u32 %v3864_v29, %v3861_v63  ;;  %v3166_v39 = vpop.permute.xlu0 %3165 }
 0x2e0   :  { %v3035_v27 = vpop.permute.xlu1 %3034  ;;  %v3578_v31 = vsel %vm8179_vm3, %v3544_v23, %v3166_v39 }
 0x2e1   :  { %v3866_v13 = vsel %vm8182_vm4, %v3857_v62, %v3865_v34  ;;  %v3507_v33 = vsel %vm3469_vm7, %v2796_v3, %v3035_v27  ;;  %vm8187_vm4 = vmmov %vm8179_vm3 }
 0x2e2   :  { %4512 = vmatmul.mubr.msk.bf16.gmra.mrb[16].mxu1 %vm3942_vm9, %v3866_v13  ;;  %vm8190_vm3 = vmmov %vm8189_vm6 }
 0x2e3   :  { %v3207_v7 = vpop.permute.xlu0 %3206 }
 0x2e4   :  { %v3117_v10 = vpop.permute.xlu1 %3116  ;;  %v3613_v48 = vsel %vm3589_vm13, %v3578_v31, %v3207_v7 }
 0x2e5   :  { %v3546_v17 = vsel %vm3520_vm10, %v3507_v33, %v3117_v10 }
 0x2e7   :  { %v3291_v56 = vpop.permute.xlu0 %3290 }
 0x2e8   :  { %v3168_v28 = vpop.permute.xlu1 %3167  ;;  %v3648_v6 = vsel %vm3624_vm0, %v3613_v48, %v3291_v56 }
 0x2e9   :  { %v3580_v19 = vsel %vm8184_vm11, %v3546_v17, %v3168_v28  ;;  %vm8192_vm11 = vmmov %vm8188_vm1 }
 0x2eb   :  { %v3341_v2 = vpop.permute.xlu0 %3340 }
 0x2ec   :  { %v3209_v37 = vpop.permute.xlu1 %3208  ;;  %v3683_v14 = vsel %vm3659_vm2, %v3648_v6, %v3341_v2 }
 0x2ed   :  { %v3615_v61 = vsel %vm3589_vm13, %v3580_v19, %v3209_v37 }
 0x2ef   :  { %v3376_v38 = vpop.permute.xlu0 %3375 }
 0x2f0   :  { %v3293_v46 = vpop.permute.xlu1 %3292  ;;  %v3718_v15 = vsel %vm3694_vm8, %v3683_v14, %v3376_v38 }
 0x2f1   :  { %v3650_v8 = vsel %vm3624_vm0, %v3615_v61, %v3293_v46 }
 0x2f3   :  { %v3458_v0 = vpop.permute.xlu0 %3457 }
 0x2f4   :  { %v3753_v50 = vsel %vm3729_vm5, %v3718_v15, %v3458_v0  ;;  %v3343_v35 = vpop.permute.xlu1 %3342 }
 0x2f5   :  { %v3867_v5 = vshrl.u32 %v3753_v50, 16  ;;  %v3870_v21 = vshll.u32 %v3753_v50, 16  ;;  %v3685_v58 = vsel %vm3659_vm2, %v3650_v8, %v3343_v35 }
 0x2f7   :  { %v3869_v51 = vrot.slane %v3867_v5, 3  ;;  %v3872_v45 = vrot.slane %v3870_v21, 4  ;;  %v3460_v24 = vpop.permute.xlu0 %3459 }
 0x2f8   :  { %v3378_v47 = vpop.permute.xlu1 %3377 }
 0x2f9   :  { %v3873_v20 = vor.u32 %v3872_v45, %v3869_v51  ;;  %v3720_v12 = vsel %vm3694_vm8, %v3685_v58, %v3378_v47 }
 0x2fa   :  { %v3755_v32 = vsel %vm3729_vm5, %v3720_v12, %v3460_v24 }
 0x2fb   :  { %v3875_v49 = vshrl.u32 %v3755_v32, 16  ;;  %v3878_v42 = vshll.u32 %v3755_v32, 16  ;;  %v3119_v25 = vpop.permute.xlu0 %3118  ;;  %v3874_v62 = vsel %vm8185_vm14, %v3865_v34, %v3873_v20  ;;  %vm8193_vm14 = vcmp.ne.s16.totalorder %v8168_v1, 0 }
 0x2fc   :  { %4515 = vmatprep.mubr.msk.bf16.mxu1 %vm3942_vm9, %v3874_v62  ;;  %v3037_v52 = vpop.permute.xlu1 %3036 }
 0x2fd   :  { %v3877_v54 = vrot.slane %v3875_v49, 3  ;;  %v3880_v22 = vrot.slane %v3878_v42, 4  ;;  %v3510_v29 = vsel %vm3469_vm7, %v2797_v44, %v3037_v52  ;;  %v2799_v49 = vsel %vm8191_vm12, 0, %v7216_v11 }
 0x2fe   :  { %v3548_v39 = vsel %vm3520_vm10, %v3510_v29, %v3119_v25  ;;  %v2800_v44 = vsel %vm8193_vm14, 0, %v7219_v16 }
 0x2ff   :  { %v3881_v30 = vor.u32 %v3880_v22, %v3877_v54  ;;  %v3170_v36 = vpop.permute.xlu0 %3169 }
 0x300   :  { %v3039_v59 = vpop.permute.xlu1 %3038  ;;  %v3582_v13 = vsel %vm8187_vm4, %v3548_v39, %v3170_v36  ;;  %vm8195_vm4 = vmmov %vm8190_vm3 }
 0x301   :  { %v3882_v9 = vsel %vm8186_vm15, %v3873_v20, %v3881_v30  ;;  %v3513_v28 = vsel %vm3469_vm7, %v2798_v55, %v3039_v59  ;;  %vm8194_vm15 = vmmov %vm8188_vm1 }
 0x302   :  { %4516 = vmatmul.mubr.msk.bf16.gmra.mrb[20].mxu1 %vm3942_vm9, %v3882_v9 }
 0x303   :  { %v3211_v40 = vpop.permute.xlu0 %3210 }
 0x304   :  { %v3121_v41 = vpop.permute.xlu1 %3120  ;;  %v3617_v10 = vsel %vm3589_vm13, %v3582_v13, %v3211_v40 }
 0x305   :  { %v3550_v23 = vsel %vm3520_vm10, %v3513_v28, %v3121_v41 }
 0x307   :  { %v3295_v26 = vpop.permute.xlu0 %3294 }
 0x308   :  { %v3172_v63 = vpop.permute.xlu1 %3171  ;;  %v3652_v43 = vsel %vm3624_vm0, %v3617_v10, %v3295_v26 }
 0x309   :  { %v3584_v38 = vsel %vm8188_vm1, %v3550_v23, %v3172_v63 }
 0x30b   :  { %v3345_v34 = vpop.permute.xlu0 %3344 }
 0x30c   :  { %v3213_v27 = vpop.permute.xlu1 %3212  ;;  %v3687_v4 = vsel %vm3659_vm2, %v3652_v43, %v3345_v34 }
 0x30d   :  { %v3619_v6 = vsel %vm3589_vm13, %v3584_v38, %v3213_v27 }
 0x30f   :  { %v3380_v7 = vpop.permute.xlu0 %3379 }
 0x310   :  { %v3297_v56 = vpop.permute.xlu1 %3296  ;;  %v3722_v18 = vsel %vm3694_vm8, %v3687_v4, %v3380_v7 }
 0x311   :  { %v3654_v60 = vsel %vm3624_vm0, %v3619_v6, %v3297_v56 }
 0x313   :  { %v3462_v2 = vpop.permute.xlu0 %3461 }
 0x314   :  { %v3757_v37 = vsel %vm3729_vm5, %v3722_v18, %v3462_v2  ;;  %v3347_v31 = vpop.permute.xlu1 %3346 }
 0x315   :  { %v3883_v48 = vshrl.u32 %v3757_v37, 16  ;;  %v3886_v46 = vshll.u32 %v3757_v37, 16  ;;  %v3689_v33 = vsel %vm3659_vm2, %v3654_v60, %v3347_v31 }
 0x317   :  { %v3885_v53 = vrot.slane %v3883_v48, 3  ;;  %v3888_v3 = vrot.slane %v3886_v46, 4  ;;  %v3464_v14 = vpop.permute.xlu0 %3463  ;;  %v7589_v46 = vld [vmem:[%s7667_s4] ss:$0 sm:$0xff] }
 0x318   :  { %v3382_v15 = vpop.permute.xlu1 %3381 }
 0x319   :  { %v3889_v0 = vor.u32 %v3888_v3, %v3885_v53  ;;  %v3724_v17 = vsel %vm3694_vm8, %v3689_v33, %v3382_v15 }
 0x31a   :  { %v3759_v50 = vsel %vm3729_vm5, %v3724_v17, %v3464_v14 }
 0x31b   :  { %v3891_v35 = vshrl.u32 %v3759_v50, 16  ;;  %v3894_v19 = vshll.u32 %v3759_v50, 16  ;;  %v3123_v5 = vpop.permute.xlu0 %3122  ;;  %v3890_v21 = vsel %vm8189_vm6, %v3881_v30, %v3889_v0 }
 0x31c   :  { %4519 = vmatprep.mubr.msk.bf16.mxu1 %vm3942_vm9, %v3890_v21  ;;  %v3041_v61 = vpop.permute.xlu1 %3040 }
 0x31d   :  { %v3893_v8 = vrot.slane %v3891_v35, 3  ;;  %v3896_v51 = vrot.slane %v3894_v19, 4  ;;  %v3516_v25 = vsel %vm3469_vm7, %v2799_v49, %v3041_v61 }
 0x31e   :  { %v3552_v52 = vsel %vm3520_vm10, %v3516_v25, %v3123_v5 }
 0x31f   :  { %v3897_v45 = vor.u32 %v3896_v51, %v3893_v8  ;;  %v3174_v24 = vpop.permute.xlu0 %3173 }
 0x320   :  { %v3043_v58 = vpop.permute.xlu1 %3042  ;;  %v3586_v22 = vsel %vm8192_vm11, %v3552_v52, %v3174_v24 }
 0x321   :  { %v3898_v47 = vsel %vm8190_vm3, %v3889_v0, %v3897_v45  ;;  %v3519_v34 = vsel %vm3469_vm7, %v2800_v44, %v3043_v58  ;;  %vm8196_vm7 = vmmov %vm8190_vm3 }
 0x322   :  { %4520 = vmatmul.mubr.msk.bf16.gmra.mrb[24].mxu1 %vm3942_vm9, %v3898_v47 }
 0x323   :  { %v3215_v20 = vpop.permute.xlu0 %3214 }
 0x324   :  { %v3125_v12 = vpop.permute.xlu1 %3124  ;;  %v3621_v36 = vsel %vm3589_vm13, %v3586_v22, %v3215_v20 }
 0x325   :  { %v3554_v39 = vsel %vm3520_vm10, %v3519_v34, %v3125_v12 }
 0x327   :  { %v3299_v32 = vpop.permute.xlu0 %3298 }
 0x328   :  { %v3176_v42 = vpop.permute.xlu1 %3175  ;;  %v3656_v9 = vsel %vm3624_vm0, %v3621_v36, %v3299_v32 }
 0x329   :  { %v3588_v7 = vsel %vm8194_vm15, %v3554_v39, %v3176_v42 }
 0x32b   :  { %v3349_v62 = vpop.permute.xlu0 %3348 }
 0x32c   :  { %v3217_v54 = vpop.permute.xlu1 %3216  ;;  %v3691_v40 = vsel %vm3659_vm2, %v3656_v9, %v3349_v62 }
 0x32d   :  { %v3623_v56 = vsel %vm3589_vm13, %v3588_v7, %v3217_v54  ;;  %vm8197_vm13 = vmmov 0  }
 0x32f   :  { %v3384_v30 = vpop.permute.xlu0 %3383 }
 0x330   :  { %v3301_v59 = vpop.permute.xlu1 %3300  ;;  %v3726_v57 = vsel %vm3694_vm8, %v3691_v40, %v3384_v30 }
 0x331   :  { %v3658_v55 = vsel %vm3624_vm0, %v3623_v56, %v3301_v59 }
 0x333   :  { %v3466_v11 = vpop.permute.xlu0 %3465 }
 0x334   :  { %v3761_v41 = vsel %vm3729_vm5, %v3726_v57, %v3466_v11  ;;  %v3351_v26 = vpop.permute.xlu1 %3350 }
 0x335   :  { %v3899_v63 = vshrl.u32 %v3761_v41, 16  ;;  %v3902_v29 = vshll.u32 %v3761_v41, 16  ;;  %v3693_v4 = vsel %vm3659_vm2, %v3658_v55, %v3351_v26 }
 0x337   :  { %v3901_v27 = vrot.slane %v3899_v63, 3  ;;  %v3904_v13 = vrot.slane %v3902_v29, 4 }
 0x338   :  { %v3386_v10 = vpop.permute.xlu1 %3385 }
 0x339   :  { %v3905_v43 = vor.u32 %v3904_v13, %v3901_v27  ;;  %v3728_v1 = vsel %vm3694_vm8, %v3693_v4, %v3386_v10 }
 0x33b   :  { %v3906_v16 = vsel %vm8195_vm4, %v3897_v45, %v3905_v43 }
 0x33c   :  { %4523 = vmatprep.mubr.msk.bf16.mxu1 %vm3942_vm9, %v3906_v16  ;;  %v3468_v28 = vpop.permute.xlu1 %3467 }
 0x33d   :  { %v3763_v18 = vsel %vm3729_vm5, %v3728_v1, %v3468_v28 }
 0x33e   :  { %v3907_v2 = vshrl.u32 %v3763_v18, 16  ;;  %v3910_v23 = vshll.u32 %v3763_v18, 16  ;;  %v4606_v18 = vmov 998259584  }
 0x33f   :  { %4235 = vmatprep.mubr.bf16.mxu0 %v4606_v18 }
 0x340   :  { %v3909_v37 = vrot.slane %v3907_v2, 3  ;;  %v3912_v31 = vrot.slane %v3910_v23, 4 }
 0x342   :  { %v3913_v38 = vor.u32 %v3912_v31, %v3909_v37 }
 0x344   :  { %v3914_v48 = vsel %vm8196_vm7, %v3905_v43, %v3913_v38 }
 0x345   :  { %4524 = vmatmul.mubr.msk.bf16.gmra.mrb[28].mxu1 %vm3942_vm9, %v3914_v48 }
 0x34d   :  { %v4497_v6 = vpop.f32.mrb[0].mxu1 }
 0x34e   :  { %v4037_v60 = vadd.f32 %v4497_v6, %v7589_v46  ;;  %v4028_v53 = vpop.f32.mrb[1].mxu1 }
 0x34f   :  { %v4029_v3 = vadd.f32 %v7589_v46, %v4028_v53  ;;  %v4498_v14 = vpop.f32.mrb[2].mxu1 }
 0x350   :  { %v4040_v33 = vadd.f32 %v4498_v14, %v7589_v46  ;;  %v4031_v15 = vpop.f32.mrb[3].mxu1  ;;  %v4157_v17 = vmax.f32 %v4037_v60, 0.0 }
 0x351   :  { %v4032_v0 = vadd.f32 %v7589_v46, %v4031_v15  ;;  %v4155_v35 = vmax.f32 %v4029_v3, 0.0 }
 0x352   :  { %v4158_v50 = vmax.f32 %v4040_v33, 0.0 }
 0x353   :  { %v4156_v19 = vmax.f32 %v4032_v0, 0.0 }
 0x354   :  { %v4188_v5 = vpack.c.bf16 %v4158_v50, %v4157_v17 }
 0x355   :  { %v4187_v21 = vpack.c.bf16 %v4156_v19, %v4155_v35 }
 0x362   :  { %v4501_v61 = vpop.f32.mrb[4].mxu1 }
 0x363   :  { %v4053_v8 = vadd.f32 %v4501_v61, %v7589_v46  ;;  %v4044_v51 = vpop.f32.mrb[5].mxu1 }
 0x364   :  { %v4045_v45 = vadd.f32 %v7589_v46, %v4044_v51  ;;  %v4502_v24 = vpop.f32.mrb[6].mxu1 }
 0x365   :  { %v4056_v58 = vadd.f32 %v4502_v24, %v7589_v46  ;;  %v4047_v47 = vpop.f32.mrb[7].mxu1  ;;  %v4161_v12 = vmax.f32 %v4053_v8, 0.0 }
 0x366   :  { %v4048_v20 = vadd.f32 %v7589_v46, %v4047_v47  ;;  %v4159_v49 = vmax.f32 %v4045_v45, 0.0 }
 0x367   :  { %v4162_v32 = vmax.f32 %v4056_v58, 0.0 }
 0x368   :  { %v4160_v42 = vmax.f32 %v4048_v20, 0.0 }
 0x369   :  { %v7599_v25 = vpack.c.bf16 %v4162_v32, %v4161_v12 }
 0x36a   :  { %v7601_v62 = vpack.c.bf16 %v4160_v42, %v4159_v49 }
 0x382   :  { %v4505_v52 = vpop.f32.mrb[8].mxu1 }
 0x383   :  { %v4069_v54 = vadd.f32 %v4505_v52, %v7589_v46  ;;  %v4060_v22 = vpop.f32.mrb[9].mxu1 }
 0x384   :  { %v4061_v30 = vadd.f32 %v7589_v46, %v4060_v22  ;;  %v4506_v36 = vpop.f32.mrb[10].mxu1 }
 0x385   :  { %v4072_v59 = vadd.f32 %v4506_v36, %v7589_v46  ;;  %v4063_v9 = vpop.f32.mrb[11].mxu1  ;;  %v4165_v57 = vmax.f32 %v4069_v54, 0.0 }
 0x386   :  { %v4064_v40 = vadd.f32 %v7589_v46, %v4063_v9  ;;  %v4163_v41 = vmax.f32 %v4061_v30, 0.0 }
 0x387   :  { %v4166_v11 = vmax.f32 %v4072_v59, 0.0 }
 0x388   :  { %v4164_v26 = vmax.f32 %v4064_v40, 0.0 }
 0x389   :  { %v7607_v44 = vpack.c.bf16 %v4166_v11, %v4165_v57 }
 0x38a   :  { %v7609_v63 = vpack.c.bf16 %v4164_v26, %v4163_v41 }
 0x39a   :  { %v4509_v29 = vpop.f32.mrb[12].mxu1 }
 0x39b   :  { %v4085_v34 = vadd.f32 %v4509_v29, %v7589_v46  ;;  %v4076_v39 = vpop.f32.mrb[13].mxu1 }
 0x39c   :  { %v4077_v27 = vadd.f32 %v7589_v46, %v4076_v39  ;;  %v4510_v13 = vpop.f32.mrb[14].mxu1 }
 0x39d   :  { %v4088_v7 = vadd.f32 %v4510_v13, %v7589_v46  ;;  %v4079_v10 = vpop.f32.mrb[15].mxu1  ;;  %v4169_v43 = vmax.f32 %v4085_v34, 0.0 }
 0x39e   :  { %v4080_v56 = vadd.f32 %v7589_v46, %v4079_v10  ;;  %v4167_v4 = vmax.f32 %v4077_v27, 0.0 }
 0x39f   :  { %v4170_v55 = vmax.f32 %v4088_v7, 0.0 }
 0x3a0   :  { %v4168_v16 = vmax.f32 %v4080_v56, 0.0 }
 0x3a1   :  { %v7615_v1 = vpack.c.bf16 %v4170_v55, %v4169_v43  ;;  %v4607_v55 = vmov 0.0  }
 0x3a2   :  { %v7617_v28 = vpack.c.bf16 %v4168_v16, %v4167_v4 }
 0x3b5   :  { %v4513_v2 = vpop.f32.mrb[16].mxu1 }
 0x3b6   :  { %v4101_v23 = vadd.f32 %v4513_v2, %v7589_v46  ;;  %v4092_v37 = vpop.f32.mrb[17].mxu1 }
 0x3b7   :  { %v4093_v31 = vadd.f32 %v7589_v46, %v4092_v37  ;;  %v4514_v38 = vpop.f32.mrb[18].mxu1 }
 0x3b8   :  { %v4104_v48 = vadd.f32 %v4514_v38, %v7589_v46  ;;  %v4095_v6 = vpop.f32.mrb[19].mxu1  ;;  %v4173_v53 = vmax.f32 %v4101_v23, 0.0 }
 0x3b9   :  { %v4096_v60 = vadd.f32 %v7589_v46, %v4095_v6  ;;  %v4171_v14 = vmax.f32 %v4093_v31, 0.0 }
 0x3ba   :  { %v4174_v3 = vmax.f32 %v4104_v48, 0.0 }
 0x3bb   :  { %v4172_v33 = vmax.f32 %v4096_v60, 0.0 }
 0x3bc   :  { %v4196_v15 = vpack.c.bf16 %v4174_v3, %v4173_v53 }
 0x3bd   :  { %v4195_v0 = vpack.c.bf16 %v4172_v33, %v4171_v14 }
 0x3bf   :  { %4425 = vmatprep.subr.bf16.mxu0 %v4195_v0 }
 0x3c0   :  { %4426 = vmatpush3.bf16.msra.mxu0 %v4187_v21 }
 0x3c1   :  { %4427 = vmatprep.subr.bf16.mxu0 %v4196_v15 }
 0x3c4   :  { %4428 = vmatpush3.bf16.msra.mxu0 %v4188_v5 }
 0x3d5   :  { %v4517_v17 = vpop.f32.mrb[20].mxu1 }
 0x3d6   :  { %v4117_v50 = vadd.f32 %v4517_v17, %v7589_v46  ;;  %v4108_v35 = vpop.f32.mrb[21].mxu1 }
 0x3d7   :  { %v4109_v19 = vadd.f32 %v7589_v46, %v4108_v35  ;;  %v4518_v61 = vpop.f32.mrb[22].mxu1 }
 0x3d8   :  { %v4120_v8 = vadd.f32 %v4518_v61, %v7589_v46  ;;  %v4111_v51 = vpop.f32.mrb[23].mxu1  ;;  %v4177_v24 = vmax.f32 %v4117_v50, 0.0 }
 0x3d9   :  { %v4112_v45 = vadd.f32 %v7589_v46, %v4111_v51  ;;  %v4175_v47 = vmax.f32 %v4109_v19, 0.0 }
 0x3da   :  { %v4178_v58 = vmax.f32 %v4120_v8, 0.0 }
 0x3db   :  { %v4176_v20 = vmax.f32 %v4112_v45, 0.0 }
 0x3dc   :  { %v4198_v12 = vpack.c.bf16 %v4178_v58, %v4177_v24 }
 0x3dd   :  { %v4197_v21 = vpack.c.bf16 %v4176_v20, %v4175_v47 }
 0x3df   :  { %4429 = vmatprep.subr.bf16.mxu0 %v4197_v21 }
 0x3e0   :  { %4430 = vmatpush3.bf16.msra.mxu0 %v7601_v62 }
 0x3e1   :  { %4431 = vmatprep.subr.bf16.mxu0 %v4198_v12 }
 0x3e4   :  { %4432 = vmatpush3.bf16.msra.mxu0 %v7599_v25 }
 0x3f5   :  { %v4521_v5 = vpop.f32.mrb[24].mxu1 }
 0x3f6   :  { %v4133_v32 = vadd.f32 %v4521_v5, %v7589_v46  ;;  %v4124_v49 = vpop.f32.mrb[25].mxu1 }
 0x3f7   :  { %v4125_v42 = vadd.f32 %v7589_v46, %v4124_v49  ;;  %v4522_v52 = vpop.f32.mrb[26].mxu1 }
 0x3f8   :  { %v4136_v54 = vadd.f32 %v4522_v52, %v7589_v46  ;;  %v4127_v22 = vpop.f32.mrb[27].mxu1  ;;  %v4181_v36 = vmax.f32 %v4133_v32, 0.0 }
 0x3f9   :  { %v4128_v30 = vadd.f32 %v7589_v46, %v4127_v22  ;;  %v4179_v9 = vmax.f32 %v4125_v42, 0.0 }
 0x3fa   :  { %v4182_v59 = vmax.f32 %v4136_v54, 0.0 }
 0x3fb   :  { %v4180_v40 = vmax.f32 %v4128_v30, 0.0 }
 0x3fc   :  { %v4200_v62 = vpack.c.bf16 %v4182_v59, %v4181_v36 }
 0x3fd   :  { %v4199_v57 = vpack.c.bf16 %v4180_v40, %v4179_v9 }
 0x3ff   :  { %4433 = vmatprep.subr.bf16.mxu0 %v4199_v57 }
 0x400   :  { %4434 = vmatpush3.bf16.msra.mxu0 %v7609_v63 }
 0x401   :  { %4435 = vmatprep.subr.bf16.mxu0 %v4200_v62 }
 0x404   :  { %4436 = vmatpush3.bf16.msra.mxu0 %v7607_v44  ;;  %v4562_v44 = vld [vmem:[%s7668_s5] sm:$0xff]   ;;  %s4564_s5 = scalar_lea.vmem %s4304_s0, 16 }
 0x405   :  { %p4565_p0 = scmp.ne.s32.totalorder %s4304_s0, %s4564_s5  ;;  %p4570_p2 = scmp.lt.s32.totalorder %s4568_s17, %s4564_s5 }
 0x407   :  { %p4571_p3 = por %p4570_p2, %p4569_p1 }
 0x409   :  { %p4572_p4 = pnand %p4571_p3, %p4565_p0 }
 0x418   :  { %v4525_v25 = vpop.f32.mrb[28].mxu1 }
 0x419   :  { %v4149_v11 = vadd.f32 %v4525_v25, %v7589_v46  ;;  %v4140_v41 = vpop.f32.mrb[29].mxu1 }
 0x41a   :  { %v4141_v26 = vadd.f32 %v7589_v46, %v4140_v41  ;;  %v4526_v29 = vpop.f32.mrb[30].mxu1 }
 0x41b   :  { %v4152_v34 = vadd.f32 %v4526_v29, %v7589_v46  ;;  %v4143_v39 = vpop.f32.mrb[31].mxu1  ;;  %v4185_v13 = vmax.f32 %v4149_v11, 0.0 }
 0x41c   :  { %v4144_v27 = vadd.f32 %v7589_v46, %v4143_v39  ;;  %v4183_v10 = vmax.f32 %v4141_v26, 0.0 }
 0x41d   :  { %v4186_v7 = vmax.f32 %v4152_v34, 0.0 }
 0x41e   :  { %v4184_v56 = vmax.f32 %v4144_v27, 0.0 }
 0x41f   :  { %v4202_v63 = vpack.c.bf16 %v4186_v7, %v4185_v13 }
 0x420   :  { %v4201_v43 = vpack.c.bf16 %v4184_v56, %v4183_v10 }
 0x422   :  { %4437 = vmatprep.subr.bf16.mxu0 %v4201_v43 }
 0x423   :  { %4438 = vmatpush3.bf16.msra.mxu0 %v7617_v28 }
 0x424   :  { %4439 = vmatprep.subr.bf16.mxu0 %v4202_v63 }
 0x427   :  { %4440 = vmatpush3.bf16.msra.mxu0 %v7615_v1  ;;  %v4246_v1 = vld [vmem:[%s7669_s6] sm:$0x1] }
 0x428   :  { %4527 = vmatprep.subr.bf16.mxu0 %v4607_v55 }
 0x42a   :  { %4236 = vmatmul.mubr.bf16.vlgmr.msra.gmra.mrb[32].mxu0 %v4606_v18 }
 0x42b   :  { %4529 = vmatprep.mubr.msk.bf16.mxu0 %vm8197_vm13, %v4607_v55  ;;  %4528 = vmatpush3.bf16.msra.mxu0 %v4562_v44 }
 0x4fd   :  { %v4441_v46 = vpop.f32.mrb[32].mxu0 }
 0x4fe   :  { %v4442_v4 = vpop.f32.mrb[33].mxu0 }
 0x4ff   :  { %v4443_v16 = vadd.f32 %v4442_v4, %v4441_v46  ;;  %v4444_v2 = vpop.f32.mrb[34].mxu0 }
 0x500   :  { %v4445_v23 = vpop.f32.mrb[35].mxu0 }
 0x501   :  { %v4243_v28 = vpack.c.bf16 %v4443_v16, %v4443_v16 }
 0x503   :  { %4530 = vmatmul.mubr.msk.bf16.vlgmr.msra.gmra.mrb[36].mxu0 %vm3520_vm10, %v4243_v28 }
 0x5d6   :  { %v4290_v18 = vpop.f32.mrb[36].mxu0 }
 0x5d7   :  { %v4291_v37 = vadd.f32 %v4290_v18, %v4246_v1  ;;  %v4531_v31 = vpop.f32.mrb[37].mxu0 }
 0x5d8   :  { %v4293_v38 = vpop.f32.mrb[38].mxu0 }
 0x5d9   :  { %4296 = vst [vmem:[#allocation2] sm:$0x1] %v4291_v37  ;;  %v4532_v48 = vpop.f32.mrb[39].mxu0 }
 0x5da   :  { %4575 = shalt.err (!%p4572_p4)
}
 0x5db   :  { %s4576_s6 = scalar_lea.hbm %s7670_s7, 16 }
 0x5dc   :  { %p4577_p5 = scmp.ne.s32.totalorder %s7670_s7, %s4576_s6  ;;  %p4580_p6 = scmp.lt.u32.totalorder %s4576_s6, %s7670_s7 }
 0x5de   :  { %p4582_p7 = pnand %p4580_p6, %p4577_p5 }
 0x5e0   :  { %4585 = shalt.err (!%p4582_p7)
}
 0x5e1   :  { %4306 = dma.vmem_to_hbm [thread:$0]  %s4304_s0, 16, %s7670_s7, [#allocation3]  }
 0x5e2   :  { %4586 = dma.done.wait [#allocation3], 16  }
 0x5e3   :  { %4587 = vsyncadd [#allocation3], 4294967280 }
 0x5e4   :  { %4310 = vsyncpa [#allocation3], 1 }

</bundles_post_ra>
